<compile_context>
chip_gen: v6e
topology: v6e:2x2x1
jax: 0.10.0
libtpu: 0.0.40
codegen_flags: <defaults>
</compile_context>

<pallas_src>
import functools

import numpy as np
import jax
import jax.numpy as jnp
from jax.experimental import pallas as pl
from jax.experimental.pallas import tpu as pltpu


# ---------------------------------------------------------------------------
# Constant pooling matrices (built at trace time from static shapes only)
# ---------------------------------------------------------------------------
def _pool_scatter_matrix(N, H, W):
    """Maps 2x2-max-pooled positions of an HxW layer into the next layer's
    zero-padded, flattened activation ((H/2+2) x (W/2+2) per image)."""
    Wp2 = W + 2
    Lp = (H + 2) * (W + 2)
    LH = N * Lp - 3 * Wp2 - 3
    Hn, Wn = H // 2, W // 2
    Wn2 = Wn + 2
    Lpn = (Hn + 2) * (Wn + 2)
    S = np.zeros((LH, N * Lpn), np.float32)
    for n in range(N):
        for i in range(Hn):
            for j in range(Wn):
                src = n * Lp + (2 * i) * Wp2 + 2 * j
                dst = n * Lpn + (i + 1) * Wn2 + (j + 1)
                S[src, dst] = 1.0
    return S


def _avg_pool_matrix(N, H, W):
    """AdaptiveAvgPool2d(1) over the 2x2-max-pooled map, as a (LH, N) matmul."""
    Wp2 = W + 2
    Lp = (H + 2) * (W + 2)
    LH = N * Lp - 3 * Wp2 - 3
    Hp, Wp = H // 2, W // 2
    A = np.zeros((LH, N), np.float32)
    inv = 1.0 / float(Hp * Wp)
    for n in range(N):
        for i in range(Hp):
            for j in range(Wp):
                A[n * Lp + (2 * i) * Wp2 + 2 * j, n] = inv
    return A


# ---------------------------------------------------------------------------
# Fused network kernel
# ---------------------------------------------------------------------------
def _make_network_kernel(N, layer_cfgs):
    """layer_cfgs: list of (H, W, Cin, Cout) per conv->bn->relu->maxpool block.

    Ref order: x_flat, (w_taps, scale, shift)*L, S*(L-1), A,
               fc1_wT, fc1_b, fc2_wT, fc2_b, out.
    """
    L = len(layer_cfgs)

    def kernel(*refs):
        x_ref = refs[0]
        pos = 1
        conv_refs = refs[pos:pos + 3 * L]; pos += 3 * L
        s_refs = refs[pos:pos + (L - 1)]; pos += (L - 1)
        a_ref = refs[pos]; pos += 1
        fw1_ref, fb1_ref, fw2_ref, fb2_ref = refs[pos:pos + 4]; pos += 4
        o_ref = refs[pos]

        act = x_ref[...]                                  # (Cin0, N*Lp0), f32
        featT = None
        for li, (H, W, Cin, Cout) in enumerate(layer_cfgs):
            w_ref, sc_ref, sh_ref = conv_refs[3 * li:3 * li + 3]
            Wp2 = W + 2
            LA = N * (H + 2) * (W + 2)
            LC = LA - 2 * Wp2 - 2                         # conv-output length
            assert act.shape == (Cin, LA), (act.shape, (Cin, LA))

            # --- 3x3 conv = 9 accumulating MXU matmuls over lane-shifted windows
            acc = None
            for dy in range(3):
                for dx in range(3):
                    off = dy * Wp2 + dx
                    win = act[:, off:off + LC]            # (Cin, LC) lane shift
                    t = jnp.dot(w_ref[dy * 3 + dx], win,
                                preferred_element_type=jnp.float32)
                    acc = t if acc is None else acc + t

            # --- folded eval-mode BatchNorm + conv bias, then ReLU (lane-dense VPU)
            y = jnp.maximum(acc * sc_ref[...] + sh_ref[...], 0.0)

            # --- 2x2 max-pool: max over four lane-shifted slices
            LH = LC - Wp2 - 1
            pool = jnp.maximum(
                jnp.maximum(y[:, 0:LH], y[:, 1:LH + 1]),
                jnp.maximum(y[:, Wp2:Wp2 + LH], y[:, Wp2 + 1:Wp2 + 1 + LH]))

            if li < L - 1:
                # downsample + zero-re-pad for the next layer: one selection matmul
                act = jnp.dot(pool, s_refs[li][...],
                              preferred_element_type=jnp.float32)
            else:
                # AdaptiveAvgPool2d(1): one averaging matmul -> (Cl, N)
                featT = jnp.dot(pool, a_ref[...],
                                preferred_element_type=jnp.float32)

        # --- head (transposed orientation, no in-kernel transpose):
        #     hT = fc1_wT @ featT ; ReLU ; logitsT = fc2_wT @ hT
        hT = jnp.maximum(
            jnp.dot(fw1_ref[...], featT, preferred_element_type=jnp.float32)
            + fb1_ref[...], 0.0)
        logitsT = (jnp.dot(fw2_ref[...], hT, preferred_element_type=jnp.float32)
                   + fb2_ref[...])
        o_ref[...] = logitsT.astype(o_ref.dtype)          # (num_classes, N)

    return kernel


def _build_pallas_forward(N, layer_cfgs, dense_units, num_classes):
    L = len(layer_cfgs)
    kernel = _make_network_kernel(N, layer_cfgs)

    def full_spec(shape):
        return pl.BlockSpec(shape, lambda i, _nd=len(shape): (0,) * _nd)

    H0, W0, C0, _ = layer_cfgs[0]
    in_specs = [full_spec((C0, N * (H0 + 2) * (W0 + 2)))]
    for (H, W, Cin, Cout) in layer_cfgs:
        in_specs += [full_spec((9, Cout, Cin)),
                     full_spec((Cout, 1)),
                     full_spec((Cout, 1))]
    for li in range(L - 1):
        H, W, _, _ = layer_cfgs[li]
        Hn, Wn = H // 2, W // 2
        LH = N * (H + 2) * (W + 2) - 3 * (W + 2) - 3
        in_specs.append(full_spec((LH, N * (Hn + 2) * (Wn + 2))))
    Hl, Wl, _, Cl = layer_cfgs[-1]
    LHl = N * (Hl + 2) * (Wl + 2) - 3 * (Wl + 2) - 3
    in_specs.append(full_spec((LHl, N)))
    in_specs += [full_spec((dense_units, Cl)), full_spec((dense_units, 1)),
                 full_spec((num_classes, dense_units)), full_spec((num_classes, 1))]

    return pl.pallas_call(
        kernel,
        out_shape=jax.ShapeDtypeStruct((num_classes, N), jnp.float32),
        grid=(1,),                                        # single fused invocation
        in_specs=in_specs,
        out_specs=full_spec((num_classes, N)),
        compiler_params=pltpu.CompilerParams(dimension_semantics=("arbitrary",)),
    )


# ---------------------------------------------------------------------------
# Parameter init (deterministic, shapes from the module's __init__)
# ---------------------------------------------------------------------------
def init_params(key, conv_layers, f1, f2, f3, dense_units):
    assert 2 <= conv_layers <= 3
    filters = [f1, f2, f3][:conv_layers]
    params = {}
    cin = 3
    for i, cout in enumerate(filters, start=1):
        key, kw, kb = jax.random.split(key, 3)
        bound = 1.0 / jnp.sqrt(cin * 9)
        params[f"conv{i}"] = {
            # HWIO layout; equivalent PyTorch weight = transpose(w, (3, 2, 0, 1))
            "w": jax.random.uniform(kw, (3, 3, cin, cout), jnp.float32, -bound, bound),
            "b": jax.random.uniform(kb, (cout,), jnp.float32, -bound, bound),
            "gamma": jnp.ones((cout,), jnp.float32),
            "beta": jnp.zeros((cout,), jnp.float32),
            "mean": jnp.zeros((cout,), jnp.float32),
            "var": jnp.ones((cout,), jnp.float32),
        }
        cin = cout

    key, k1, k1b, k2, k2b = jax.random.split(key, 5)
    b1 = 1.0 / jnp.sqrt(cin)
    params["fc1_w"] = jax.random.uniform(k1, (cin, dense_units), jnp.float32, -b1, b1)
    params["fc1_b"] = jax.random.uniform(k1b, (dense_units,), jnp.float32, -b1, b1)
    b2 = 1.0 / jnp.sqrt(dense_units)
    params["fc2_w"] = jax.random.uniform(k2, (dense_units, 10), jnp.float32, -b2, b2)
    params["fc2_b"] = jax.random.uniform(k2b, (10,), jnp.float32, -b2, b2)
    return params, conv_layers


# ---------------------------------------------------------------------------
# Forward wrapper (layout plumbing + BN folding only; all arithmetic in-kernel)
# ---------------------------------------------------------------------------
def customizable_network_forward(params, conv_layers, x_nchw, num_classes=10, eps=1e-5):
    x = x_nchw.astype(jnp.float32)
    N, C, H, W = x.shape

    # Layout plumbing: channel-major, zero-embedded (Conv2d padding=1), with the
    # (batch, padded-spatial) axes flattened onto the 128-wide TPU lane axis.
    xp = jnp.pad(x, ((0, 0), (0, 0), (1, 1), (1, 1)))
    x_flat = jnp.transpose(xp, (1, 0, 2, 3)).reshape(C, N * (H + 2) * (W + 2))

    layer_cfgs = []
    conv_args = []
    cin, h, w = C, H, W
    for i in range(1, conv_layers + 1):
        p = params[f"conv{i}"]
        cout = p["w"].shape[-1]
        layer_cfgs.append((h, w, cin, cout))
        # per-tap (Cout, Cin) weight matrices, tap index = dy*3 + dx
        w_taps = jnp.transpose(p["w"], (0, 1, 3, 2)).reshape(9, cout, cin)
        # fold conv bias + eval-mode BatchNorm into per-channel scale/shift
        scale = p["gamma"] / jnp.sqrt(p["var"] + eps)
        shift = scale * (p["b"] - p["mean"]) + p["beta"]
        conv_args += [w_taps, scale.reshape(cout, 1), shift.reshape(cout, 1)]
        cin, h, w = cout, h // 2, w // 2

    # constant selection / averaging matrices (shape-only, trace-time)
    sel_args = []
    for li in range(conv_layers - 1):
        Hl, Wl, _, _ = layer_cfgs[li]
        sel_args.append(jnp.asarray(_pool_scatter_matrix(N, Hl, Wl)))
    Hl, Wl, _, Cl = layer_cfgs[-1]
    avg_arg = jnp.asarray(_avg_pool_matrix(N, Hl, Wl))

    dense_units = params["fc1_w"].shape[1]
    head_args = [params["fc1_w"].T, params["fc1_b"].reshape(dense_units, 1),
                 params["fc2_w"].T, params["fc2_b"].reshape(num_classes, 1)]

    fwd = _build_pallas_forward(N, layer_cfgs, dense_units, num_classes)
    out_t = fwd(x_flat, *conv_args, *sel_args, avg_arg, *head_args)  # (10, N)
    return out_t.T                                                    # (N, 10)


if __name__ == "__main__":
    key = jax.random.PRNGKey(0)
    k_params, k_x = jax.random.split(key)

    # Module config: conv_layers=3, filters (8, 16, 32), dense_units=32
    params, conv_layers = init_params(k_params, conv_layers=3,
                                      f1=8, f2=16, f3=32, dense_units=32)

    # Input consistent with the module: NCHW, 3 input channels, 16x16 spatial
    x = jax.random.normal(k_x, (2, 3, 16, 16), dtype=jnp.float32)

    fwd = jax.jit(functools.partial(customizable_network_forward, params, conv_layers))
    out = jax.block_until_ready(fwd(x))
    assert out.shape == (2, 10), out.shape
    assert bool(jnp.all(jnp.isfinite(out)))
    print("KERNEL_OK")
</pallas_src>

<mosaic_0001>
module attributes {stable_mosaic.version = 11 : i64} {
  func.func @kernel(%arg0: i32, %arg1: memref<3x648xf32, #tpu.memory_space<vmem>>, %arg2: memref<9x8x3xf32, #tpu.memory_space<vmem>>, %arg3: memref<8x1xf32, #tpu.memory_space<vmem>>, %arg4: memref<8x1xf32, #tpu.memory_space<vmem>>, %arg5: memref<9x16x8xf32, #tpu.memory_space<vmem>>, %arg6: memref<16x1xf32, #tpu.memory_space<vmem>>, %arg7: memref<16x1xf32, #tpu.memory_space<vmem>>, %arg8: memref<9x32x16xf32, #tpu.memory_space<vmem>>, %arg9: memref<32x1xf32, #tpu.memory_space<vmem>>, %arg10: memref<32x1xf32, #tpu.memory_space<vmem>>, %arg11: memref<591x200xf32, #tpu.memory_space<vmem>>, %arg12: memref<167x72xf32, #tpu.memory_space<vmem>>, %arg13: memref<51x2xf32, #tpu.memory_space<vmem>>, %arg14: memref<32x32xf32, #tpu.memory_space<vmem>>, %arg15: memref<32x1xf32, #tpu.memory_space<vmem>>, %arg16: memref<10x32xf32, #tpu.memory_space<vmem>>, %arg17: memref<10x1xf32, #tpu.memory_space<vmem>>, %arg18: memref<10x2xf32, #tpu.memory_space<vmem>>) attributes {dimension_semantics = [#tpu.dimension_semantics<arbitrary>], iteration_bounds = array<i64: 1>, scalar_prefetch = 0 : i64, scratch_operands = 0 : i64, tpu.core_type = #tpu.core_type<tc>, window_params = [{pipeline_mode = #tpu.pipeline_mode<synchronous>, transform_indices = @transform_0, window_bounds = array<i64: 3, 648>}, {pipeline_mode = #tpu.pipeline_mode<synchronous>, transform_indices = @transform_1, window_bounds = array<i64: 9, 8, 3>}, {pipeline_mode = #tpu.pipeline_mode<synchronous>, transform_indices = @transform_2, window_bounds = array<i64: 8, 1>}, {pipeline_mode = #tpu.pipeline_mode<synchronous>, transform_indices = @transform_3, window_bounds = array<i64: 8, 1>}, {pipeline_mode = #tpu.pipeline_mode<synchronous>, transform_indices = @transform_4, window_bounds = array<i64: 9, 16, 8>}, {pipeline_mode = #tpu.pipeline_mode<synchronous>, transform_indices = @transform_5, window_bounds = array<i64: 16, 1>}, {pipeline_mode = #tpu.pipeline_mode<synchronous>, transform_indices = @transform_6, window_bounds = array<i64: 16, 1>}, {pipeline_mode = #tpu.pipeline_mode<synchronous>, transform_indices = @transform_7, window_bounds = array<i64: 9, 32, 16>}, {pipeline_mode = #tpu.pipeline_mode<synchronous>, transform_indices = @transform_8, window_bounds = array<i64: 32, 1>}, {pipeline_mode = #tpu.pipeline_mode<synchronous>, transform_indices = @transform_9, window_bounds = array<i64: 32, 1>}, {pipeline_mode = #tpu.pipeline_mode<synchronous>, transform_indices = @transform_10, window_bounds = array<i64: 591, 200>}, {pipeline_mode = #tpu.pipeline_mode<synchronous>, transform_indices = @transform_11, window_bounds = array<i64: 167, 72>}, {pipeline_mode = #tpu.pipeline_mode<synchronous>, transform_indices = @transform_12, window_bounds = array<i64: 51, 2>}, {pipeline_mode = #tpu.pipeline_mode<synchronous>, transform_indices = @transform_13, window_bounds = array<i64: 32, 32>}, {pipeline_mode = #tpu.pipeline_mode<synchronous>, transform_indices = @transform_14, window_bounds = array<i64: 32, 1>}, {pipeline_mode = #tpu.pipeline_mode<synchronous>, transform_indices = @transform_15, window_bounds = array<i64: 10, 32>}, {pipeline_mode = #tpu.pipeline_mode<synchronous>, transform_indices = @transform_16, window_bounds = array<i64: 10, 1>}, {pipeline_mode = #tpu.pipeline_mode<synchronous>, transform_indices = @transform_17, window_bounds = array<i64: 10, 2>}]} {
    %c0 = arith.constant 0 : index
    %c0_0 = arith.constant 0 : index
    %0 = vector.load %arg1[%c0, %c0_0] : memref<3x648xf32, #tpu.memory_space<vmem>>, vector<3x648xf32>
    %1 = vector.extract_strided_slice %0 {offsets = [0, 0], sizes = [3, 610], strides = [1, 1]} : vector<3x648xf32> to vector<3x610xf32>
    %c0_1 = arith.constant 0 : index
    %c0_2 = arith.constant 0 : index
    %c0_3 = arith.constant 0 : index
    %2 = vector.load %arg2[%c0_1, %c0_2, %c0_3] : memref<9x8x3xf32, #tpu.memory_space<vmem>>, vector<1x8x3xf32>
    %3 = vector.shape_cast %2 : vector<1x8x3xf32> to vector<8x3xf32>
    %cst = arith.constant dense<0.000000e+00> : vector<8x610xf32>
    %4 = tpu.matmul %3, %1, %cst {dimension_numbers = #tpu.dot_dimension_numbers<[1], [0], [0], [1], [0, 0, 1, 1], [], []>} : vector<8x3xf32>, vector<3x610xf32>, vector<8x610xf32> -> vector<8x610xf32>
    %5 = vector.extract_strided_slice %0 {offsets = [0, 1], sizes = [3, 610], strides = [1, 1]} : vector<3x648xf32> to vector<3x610xf32>
    %c1 = arith.constant 1 : index
    %c0_4 = arith.constant 0 : index
    %c0_5 = arith.constant 0 : index
    %6 = vector.load %arg2[%c1, %c0_4, %c0_5] : memref<9x8x3xf32, #tpu.memory_space<vmem>>, vector<1x8x3xf32>
    %7 = vector.shape_cast %6 : vector<1x8x3xf32> to vector<8x3xf32>
    %cst_6 = arith.constant dense<0.000000e+00> : vector<8x610xf32>
    %8 = tpu.matmul %7, %5, %cst_6 {dimension_numbers = #tpu.dot_dimension_numbers<[1], [0], [0], [1], [0, 0, 1, 1], [], []>} : vector<8x3xf32>, vector<3x610xf32>, vector<8x610xf32> -> vector<8x610xf32>
    %9 = arith.addf %4, %8 : vector<8x610xf32>
    %10 = vector.extract_strided_slice %0 {offsets = [0, 2], sizes = [3, 610], strides = [1, 1]} : vector<3x648xf32> to vector<3x610xf32>
    %c2 = arith.constant 2 : index
    %c0_7 = arith.constant 0 : index
    %c0_8 = arith.constant 0 : index
    %11 = vector.load %arg2[%c2, %c0_7, %c0_8] : memref<9x8x3xf32, #tpu.memory_space<vmem>>, vector<1x8x3xf32>
    %12 = vector.shape_cast %11 : vector<1x8x3xf32> to vector<8x3xf32>
    %cst_9 = arith.constant dense<0.000000e+00> : vector<8x610xf32>
    %13 = tpu.matmul %12, %10, %cst_9 {dimension_numbers = #tpu.dot_dimension_numbers<[1], [0], [0], [1], [0, 0, 1, 1], [], []>} : vector<8x3xf32>, vector<3x610xf32>, vector<8x610xf32> -> vector<8x610xf32>
    %14 = arith.addf %9, %13 : vector<8x610xf32>
    %15 = vector.extract_strided_slice %0 {offsets = [0, 18], sizes = [3, 610], strides = [1, 1]} : vector<3x648xf32> to vector<3x610xf32>
    %c3 = arith.constant 3 : index
    %c0_10 = arith.constant 0 : index
    %c0_11 = arith.constant 0 : index
    %16 = vector.load %arg2[%c3, %c0_10, %c0_11] : memref<9x8x3xf32, #tpu.memory_space<vmem>>, vector<1x8x3xf32>
    %17 = vector.shape_cast %16 : vector<1x8x3xf32> to vector<8x3xf32>
    %cst_12 = arith.constant dense<0.000000e+00> : vector<8x610xf32>
    %18 = tpu.matmul %17, %15, %cst_12 {dimension_numbers = #tpu.dot_dimension_numbers<[1], [0], [0], [1], [0, 0, 1, 1], [], []>} : vector<8x3xf32>, vector<3x610xf32>, vector<8x610xf32> -> vector<8x610xf32>
    %19 = arith.addf %14, %18 : vector<8x610xf32>
    %20 = vector.extract_strided_slice %0 {offsets = [0, 19], sizes = [3, 610], strides = [1, 1]} : vector<3x648xf32> to vector<3x610xf32>
    %c4 = arith.constant 4 : index
    %c0_13 = arith.constant 0 : index
    %c0_14 = arith.constant 0 : index
    %21 = vector.load %arg2[%c4, %c0_13, %c0_14] : memref<9x8x3xf32, #tpu.memory_space<vmem>>, vector<1x8x3xf32>
    %22 = vector.shape_cast %21 : vector<1x8x3xf32> to vector<8x3xf32>
    %cst_15 = arith.constant dense<0.000000e+00> : vector<8x610xf32>
    %23 = tpu.matmul %22, %20, %cst_15 {dimension_numbers = #tpu.dot_dimension_numbers<[1], [0], [0], [1], [0, 0, 1, 1], [], []>} : vector<8x3xf32>, vector<3x610xf32>, vector<8x610xf32> -> vector<8x610xf32>
    %24 = arith.addf %19, %23 : vector<8x610xf32>
    %25 = vector.extract_strided_slice %0 {offsets = [0, 20], sizes = [3, 610], strides = [1, 1]} : vector<3x648xf32> to vector<3x610xf32>
    %c5 = arith.constant 5 : index
    %c0_16 = arith.constant 0 : index
    %c0_17 = arith.constant 0 : index
    %26 = vector.load %arg2[%c5, %c0_16, %c0_17] : memref<9x8x3xf32, #tpu.memory_space<vmem>>, vector<1x8x3xf32>
    %27 = vector.shape_cast %26 : vector<1x8x3xf32> to vector<8x3xf32>
    %cst_18 = arith.constant dense<0.000000e+00> : vector<8x610xf32>
    %28 = tpu.matmul %27, %25, %cst_18 {dimension_numbers = #tpu.dot_dimension_numbers<[1], [0], [0], [1], [0, 0, 1, 1], [], []>} : vector<8x3xf32>, vector<3x610xf32>, vector<8x610xf32> -> vector<8x610xf32>
    %29 = arith.addf %24, %28 : vector<8x610xf32>
    %30 = vector.extract_strided_slice %0 {offsets = [0, 36], sizes = [3, 610], strides = [1, 1]} : vector<3x648xf32> to vector<3x610xf32>
    %c6 = arith.constant 6 : index
    %c0_19 = arith.constant 0 : index
    %c0_20 = arith.constant 0 : index
    %31 = vector.load %arg2[%c6, %c0_19, %c0_20] : memref<9x8x3xf32, #tpu.memory_space<vmem>>, vector<1x8x3xf32>
    %32 = vector.shape_cast %31 : vector<1x8x3xf32> to vector<8x3xf32>
    %cst_21 = arith.constant dense<0.000000e+00> : vector<8x610xf32>
    %33 = tpu.matmul %32, %30, %cst_21 {dimension_numbers = #tpu.dot_dimension_numbers<[1], [0], [0], [1], [0, 0, 1, 1], [], []>} : vector<8x3xf32>, vector<3x610xf32>, vector<8x610xf32> -> vector<8x610xf32>
    %34 = arith.addf %29, %33 : vector<8x610xf32>
    %35 = vector.extract_strided_slice %0 {offsets = [0, 37], sizes = [3, 610], strides = [1, 1]} : vector<3x648xf32> to vector<3x610xf32>
    %c7 = arith.constant 7 : index
    %c0_22 = arith.constant 0 : index
    %c0_23 = arith.constant 0 : index
    %36 = vector.load %arg2[%c7, %c0_22, %c0_23] : memref<9x8x3xf32, #tpu.memory_space<vmem>>, vector<1x8x3xf32>
    %37 = vector.shape_cast %36 : vector<1x8x3xf32> to vector<8x3xf32>
    %cst_24 = arith.constant dense<0.000000e+00> : vector<8x610xf32>
    %38 = tpu.matmul %37, %35, %cst_24 {dimension_numbers = #tpu.dot_dimension_numbers<[1], [0], [0], [1], [0, 0, 1, 1], [], []>} : vector<8x3xf32>, vector<3x610xf32>, vector<8x610xf32> -> vector<8x610xf32>
    %39 = arith.addf %34, %38 : vector<8x610xf32>
    %40 = vector.extract_strided_slice %0 {offsets = [0, 38], sizes = [3, 610], strides = [1, 1]} : vector<3x648xf32> to vector<3x610xf32>
    %c8 = arith.constant 8 : index
    %c0_25 = arith.constant 0 : index
    %c0_26 = arith.constant 0 : index
    %41 = vector.load %arg2[%c8, %c0_25, %c0_26] : memref<9x8x3xf32, #tpu.memory_space<vmem>>, vector<1x8x3xf32>
    %42 = vector.shape_cast %41 : vector<1x8x3xf32> to vector<8x3xf32>
    %cst_27 = arith.constant dense<0.000000e+00> : vector<8x610xf32>
    %43 = tpu.matmul %42, %40, %cst_27 {dimension_numbers = #tpu.dot_dimension_numbers<[1], [0], [0], [1], [0, 0, 1, 1], [], []>} : vector<8x3xf32>, vector<3x610xf32>, vector<8x610xf32> -> vector<8x610xf32>
    %44 = arith.addf %39, %43 : vector<8x610xf32>
    %c0_28 = arith.constant 0 : index
    %c0_29 = arith.constant 0 : index
    %45 = vector.load %arg3[%c0_28, %c0_29] : memref<8x1xf32, #tpu.memory_space<vmem>>, vector<8x1xf32>
    %46 = vector.broadcast %45 : vector<8x1xf32> to vector<8x610xf32>
    %47 = arith.mulf %44, %46 : vector<8x610xf32>
    %c0_30 = arith.constant 0 : index
    %c0_31 = arith.constant 0 : index
    %48 = vector.load %arg4[%c0_30, %c0_31] : memref<8x1xf32, #tpu.memory_space<vmem>>, vector<8x1xf32>
    %49 = vector.broadcast %48 : vector<8x1xf32> to vector<8x610xf32>
    %50 = arith.addf %47, %49 : vector<8x610xf32>
    %cst_32 = arith.constant 0.000000e+00 : f32
    %51 = vector.broadcast %cst_32 : f32 to vector<8x610xf32>
    %52 = arith.maximumf %50, %51 : vector<8x610xf32>
    %53 = vector.extract_strided_slice %52 {offsets = [0, 0], sizes = [8, 591], strides = [1, 1]} : vector<8x610xf32> to vector<8x591xf32>
    %54 = vector.extract_strided_slice %52 {offsets = [0, 1], sizes = [8, 591], strides = [1, 1]} : vector<8x610xf32> to vector<8x591xf32>
    %55 = arith.maximumf %53, %54 : vector<8x591xf32>
    %56 = vector.extract_strided_slice %52 {offsets = [0, 18], sizes = [8, 591], strides = [1, 1]} : vector<8x610xf32> to vector<8x591xf32>
    %57 = vector.extract_strided_slice %52 {offsets = [0, 19], sizes = [8, 591], strides = [1, 1]} : vector<8x610xf32> to vector<8x591xf32>
    %58 = arith.maximumf %56, %57 : vector<8x591xf32>
    %59 = arith.maximumf %55, %58 : vector<8x591xf32>
    %c0_33 = arith.constant 0 : index
    %c0_34 = arith.constant 0 : index
    %60 = vector.load %arg11[%c0_33, %c0_34] : memref<591x200xf32, #tpu.memory_space<vmem>>, vector<591x200xf32>
    %cst_35 = arith.constant dense<0.000000e+00> : vector<8x200xf32>
    %61 = tpu.matmul %59, %60, %cst_35 {dimension_numbers = #tpu.dot_dimension_numbers<[1], [0], [0], [1], [0, 0, 1, 1], [], []>} : vector<8x591xf32>, vector<591x200xf32>, vector<8x200xf32> -> vector<8x200xf32>
    %62 = vector.extract_strided_slice %61 {offsets = [0, 0], sizes = [8, 178], strides = [1, 1]} : vector<8x200xf32> to vector<8x178xf32>
    %c0_36 = arith.constant 0 : index
    %c0_37 = arith.constant 0 : index
    %c0_38 = arith.constant 0 : index
    %63 = vector.load %arg5[%c0_36, %c0_37, %c0_38] : memref<9x16x8xf32, #tpu.memory_space<vmem>>, vector<1x16x8xf32>
    %64 = vector.shape_cast %63 : vector<1x16x8xf32> to vector<16x8xf32>
    %cst_39 = arith.constant dense<0.000000e+00> : vector<16x178xf32>
    %65 = tpu.matmul %64, %62, %cst_39 {dimension_numbers = #tpu.dot_dimension_numbers<[1], [0], [0], [1], [0, 0, 1, 1], [], []>} : vector<16x8xf32>, vector<8x178xf32>, vector<16x178xf32> -> vector<16x178xf32>
    %66 = vector.extract_strided_slice %61 {offsets = [0, 1], sizes = [8, 178], strides = [1, 1]} : vector<8x200xf32> to vector<8x178xf32>
    %c1_40 = arith.constant 1 : index
    %c0_41 = arith.constant 0 : index
    %c0_42 = arith.constant 0 : index
    %67 = vector.load %arg5[%c1_40, %c0_41, %c0_42] : memref<9x16x8xf32, #tpu.memory_space<vmem>>, vector<1x16x8xf32>
    %68 = vector.shape_cast %67 : vector<1x16x8xf32> to vector<16x8xf32>
    %cst_43 = arith.constant dense<0.000000e+00> : vector<16x178xf32>
    %69 = tpu.matmul %68, %66, %cst_43 {dimension_numbers = #tpu.dot_dimension_numbers<[1], [0], [0], [1], [0, 0, 1, 1], [], []>} : vector<16x8xf32>, vector<8x178xf32>, vector<16x178xf32> -> vector<16x178xf32>
    %70 = arith.addf %65, %69 : vector<16x178xf32>
    %71 = vector.extract_strided_slice %61 {offsets = [0, 2], sizes = [8, 178], strides = [1, 1]} : vector<8x200xf32> to vector<8x178xf32>
    %c2_44 = arith.constant 2 : index
    %c0_45 = arith.constant 0 : index
    %c0_46 = arith.constant 0 : index
    %72 = vector.load %arg5[%c2_44, %c0_45, %c0_46] : memref<9x16x8xf32, #tpu.memory_space<vmem>>, vector<1x16x8xf32>
    %73 = vector.shape_cast %72 : vector<1x16x8xf32> to vector<16x8xf32>
    %cst_47 = arith.constant dense<0.000000e+00> : vector<16x178xf32>
    %74 = tpu.matmul %73, %71, %cst_47 {dimension_numbers = #tpu.dot_dimension_numbers<[1], [0], [0], [1], [0, 0, 1, 1], [], []>} : vector<16x8xf32>, vector<8x178xf32>, vector<16x178xf32> -> vector<16x178xf32>
    %75 = arith.addf %70, %74 : vector<16x178xf32>
    %76 = vector.extract_strided_slice %61 {offsets = [0, 10], sizes = [8, 178], strides = [1, 1]} : vector<8x200xf32> to vector<8x178xf32>
    %c3_48 = arith.constant 3 : index
    %c0_49 = arith.constant 0 : index
    %c0_50 = arith.constant 0 : index
    %77 = vector.load %arg5[%c3_48, %c0_49, %c0_50] : memref<9x16x8xf32, #tpu.memory_space<vmem>>, vector<1x16x8xf32>
    %78 = vector.shape_cast %77 : vector<1x16x8xf32> to vector<16x8xf32>
    %cst_51 = arith.constant dense<0.000000e+00> : vector<16x178xf32>
    %79 = tpu.matmul %78, %76, %cst_51 {dimension_numbers = #tpu.dot_dimension_numbers<[1], [0], [0], [1], [0, 0, 1, 1], [], []>} : vector<16x8xf32>, vector<8x178xf32>, vector<16x178xf32> -> vector<16x178xf32>
    %80 = arith.addf %75, %79 : vector<16x178xf32>
    %81 = vector.extract_strided_slice %61 {offsets = [0, 11], sizes = [8, 178], strides = [1, 1]} : vector<8x200xf32> to vector<8x178xf32>
    %c4_52 = arith.constant 4 : index
    %c0_53 = arith.constant 0 : index
    %c0_54 = arith.constant 0 : index
    %82 = vector.load %arg5[%c4_52, %c0_53, %c0_54] : memref<9x16x8xf32, #tpu.memory_space<vmem>>, vector<1x16x8xf32>
    %83 = vector.shape_cast %82 : vector<1x16x8xf32> to vector<16x8xf32>
    %cst_55 = arith.constant dense<0.000000e+00> : vector<16x178xf32>
    %84 = tpu.matmul %83, %81, %cst_55 {dimension_numbers = #tpu.dot_dimension_numbers<[1], [0], [0], [1], [0, 0, 1, 1], [], []>} : vector<16x8xf32>, vector<8x178xf32>, vector<16x178xf32> -> vector<16x178xf32>
    %85 = arith.addf %80, %84 : vector<16x178xf32>
    %86 = vector.extract_strided_slice %61 {offsets = [0, 12], sizes = [8, 178], strides = [1, 1]} : vector<8x200xf32> to vector<8x178xf32>
    %c5_56 = arith.constant 5 : index
    %c0_57 = arith.constant 0 : index
    %c0_58 = arith.constant 0 : index
    %87 = vector.load %arg5[%c5_56, %c0_57, %c0_58] : memref<9x16x8xf32, #tpu.memory_space<vmem>>, vector<1x16x8xf32>
    %88 = vector.shape_cast %87 : vector<1x16x8xf32> to vector<16x8xf32>
    %cst_59 = arith.constant dense<0.000000e+00> : vector<16x178xf32>
    %89 = tpu.matmul %88, %86, %cst_59 {dimension_numbers = #tpu.dot_dimension_numbers<[1], [0], [0], [1], [0, 0, 1, 1], [], []>} : vector<16x8xf32>, vector<8x178xf32>, vector<16x178xf32> -> vector<16x178xf32>
    %90 = arith.addf %85, %89 : vector<16x178xf32>
    %91 = vector.extract_strided_slice %61 {offsets = [0, 20], sizes = [8, 178], strides = [1, 1]} : vector<8x200xf32> to vector<8x178xf32>
    %c6_60 = arith.constant 6 : index
    %c0_61 = arith.constant 0 : index
    %c0_62 = arith.constant 0 : index
    %92 = vector.load %arg5[%c6_60, %c0_61, %c0_62] : memref<9x16x8xf32, #tpu.memory_space<vmem>>, vector<1x16x8xf32>
    %93 = vector.shape_cast %92 : vector<1x16x8xf32> to vector<16x8xf32>
    %cst_63 = arith.constant dense<0.000000e+00> : vector<16x178xf32>
    %94 = tpu.matmul %93, %91, %cst_63 {dimension_numbers = #tpu.dot_dimension_numbers<[1], [0], [0], [1], [0, 0, 1, 1], [], []>} : vector<16x8xf32>, vector<8x178xf32>, vector<16x178xf32> -> vector<16x178xf32>
    %95 = arith.addf %90, %94 : vector<16x178xf32>
    %96 = vector.extract_strided_slice %61 {offsets = [0, 21], sizes = [8, 178], strides = [1, 1]} : vector<8x200xf32> to vector<8x178xf32>
    %c7_64 = arith.constant 7 : index
    %c0_65 = arith.constant 0 : index
    %c0_66 = arith.constant 0 : index
    %97 = vector.load %arg5[%c7_64, %c0_65, %c0_66] : memref<9x16x8xf32, #tpu.memory_space<vmem>>, vector<1x16x8xf32>
    %98 = vector.shape_cast %97 : vector<1x16x8xf32> to vector<16x8xf32>
    %cst_67 = arith.constant dense<0.000000e+00> : vector<16x178xf32>
    %99 = tpu.matmul %98, %96, %cst_67 {dimension_numbers = #tpu.dot_dimension_numbers<[1], [0], [0], [1], [0, 0, 1, 1], [], []>} : vector<16x8xf32>, vector<8x178xf32>, vector<16x178xf32> -> vector<16x178xf32>
    %100 = arith.addf %95, %99 : vector<16x178xf32>
    %101 = vector.extract_strided_slice %61 {offsets = [0, 22], sizes = [8, 178], strides = [1, 1]} : vector<8x200xf32> to vector<8x178xf32>
    %c8_68 = arith.constant 8 : index
    %c0_69 = arith.constant 0 : index
    %c0_70 = arith.constant 0 : index
    %102 = vector.load %arg5[%c8_68, %c0_69, %c0_70] : memref<9x16x8xf32, #tpu.memory_space<vmem>>, vector<1x16x8xf32>
    %103 = vector.shape_cast %102 : vector<1x16x8xf32> to vector<16x8xf32>
    %cst_71 = arith.constant dense<0.000000e+00> : vector<16x178xf32>
    %104 = tpu.matmul %103, %101, %cst_71 {dimension_numbers = #tpu.dot_dimension_numbers<[1], [0], [0], [1], [0, 0, 1, 1], [], []>} : vector<16x8xf32>, vector<8x178xf32>, vector<16x178xf32> -> vector<16x178xf32>
    %105 = arith.addf %100, %104 : vector<16x178xf32>
    %c0_72 = arith.constant 0 : index
    %c0_73 = arith.constant 0 : index
    %106 = vector.load %arg6[%c0_72, %c0_73] : memref<16x1xf32, #tpu.memory_space<vmem>>, vector<16x1xf32>
    %107 = vector.broadcast %106 : vector<16x1xf32> to vector<16x178xf32>
    %108 = arith.mulf %105, %107 : vector<16x178xf32>
    %c0_74 = arith.constant 0 : index
    %c0_75 = arith.constant 0 : index
    %109 = vector.load %arg7[%c0_74, %c0_75] : memref<16x1xf32, #tpu.memory_space<vmem>>, vector<16x1xf32>
    %110 = vector.broadcast %109 : vector<16x1xf32> to vector<16x178xf32>
    %111 = arith.addf %108, %110 : vector<16x178xf32>
    %cst_76 = arith.constant 0.000000e+00 : f32
    %112 = vector.broadcast %cst_76 : f32 to vector<16x178xf32>
    %113 = arith.maximumf %111, %112 : vector<16x178xf32>
    %114 = vector.extract_strided_slice %113 {offsets = [0, 0], sizes = [16, 167], strides = [1, 1]} : vector<16x178xf32> to vector<16x167xf32>
    %115 = vector.extract_strided_slice %113 {offsets = [0, 1], sizes = [16, 167], strides = [1, 1]} : vector<16x178xf32> to vector<16x167xf32>
    %116 = arith.maximumf %114, %115 : vector<16x167xf32>
    %117 = vector.extract_strided_slice %113 {offsets = [0, 10], sizes = [16, 167], strides = [1, 1]} : vector<16x178xf32> to vector<16x167xf32>
    %118 = vector.extract_strided_slice %113 {offsets = [0, 11], sizes = [16, 167], strides = [1, 1]} : vector<16x178xf32> to vector<16x167xf32>
    %119 = arith.maximumf %117, %118 : vector<16x167xf32>
    %120 = arith.maximumf %116, %119 : vector<16x167xf32>
    %c0_77 = arith.constant 0 : index
    %c0_78 = arith.constant 0 : index
    %121 = vector.load %arg12[%c0_77, %c0_78] : memref<167x72xf32, #tpu.memory_space<vmem>>, vector<167x72xf32>
    %cst_79 = arith.constant dense<0.000000e+00> : vector<16x72xf32>
    %122 = tpu.matmul %120, %121, %cst_79 {dimension_numbers = #tpu.dot_dimension_numbers<[1], [0], [0], [1], [0, 0, 1, 1], [], []>} : vector<16x167xf32>, vector<167x72xf32>, vector<16x72xf32> -> vector<16x72xf32>
    %123 = vector.extract_strided_slice %122 {offsets = [0, 0], sizes = [16, 58], strides = [1, 1]} : vector<16x72xf32> to vector<16x58xf32>
    %c0_80 = arith.constant 0 : index
    %c0_81 = arith.constant 0 : index
    %c0_82 = arith.constant 0 : index
    %124 = vector.load %arg8[%c0_80, %c0_81, %c0_82] : memref<9x32x16xf32, #tpu.memory_space<vmem>>, vector<1x32x16xf32>
    %125 = vector.shape_cast %124 : vector<1x32x16xf32> to vector<32x16xf32>
    %cst_83 = arith.constant dense<0.000000e+00> : vector<32x58xf32>
    %126 = tpu.matmul %125, %123, %cst_83 {dimension_numbers = #tpu.dot_dimension_numbers<[1], [0], [0], [1], [0, 0, 1, 1], [], []>} : vector<32x16xf32>, vector<16x58xf32>, vector<32x58xf32> -> vector<32x58xf32>
    %127 = vector.extract_strided_slice %122 {offsets = [0, 1], sizes = [16, 58], strides = [1, 1]} : vector<16x72xf32> to vector<16x58xf32>
    %c1_84 = arith.constant 1 : index
    %c0_85 = arith.constant 0 : index
    %c0_86 = arith.constant 0 : index
    %128 = vector.load %arg8[%c1_84, %c0_85, %c0_86] : memref<9x32x16xf32, #tpu.memory_space<vmem>>, vector<1x32x16xf32>
    %129 = vector.shape_cast %128 : vector<1x32x16xf32> to vector<32x16xf32>
    %cst_87 = arith.constant dense<0.000000e+00> : vector<32x58xf32>
    %130 = tpu.matmul %129, %127, %cst_87 {dimension_numbers = #tpu.dot_dimension_numbers<[1], [0], [0], [1], [0, 0, 1, 1], [], []>} : vector<32x16xf32>, vector<16x58xf32>, vector<32x58xf32> -> vector<32x58xf32>
    %131 = arith.addf %126, %130 : vector<32x58xf32>
    %132 = vector.extract_strided_slice %122 {offsets = [0, 2], sizes = [16, 58], strides = [1, 1]} : vector<16x72xf32> to vector<16x58xf32>
    %c2_88 = arith.constant 2 : index
    %c0_89 = arith.constant 0 : index
    %c0_90 = arith.constant 0 : index
    %133 = vector.load %arg8[%c2_88, %c0_89, %c0_90] : memref<9x32x16xf32, #tpu.memory_space<vmem>>, vector<1x32x16xf32>
    %134 = vector.shape_cast %133 : vector<1x32x16xf32> to vector<32x16xf32>
    %cst_91 = arith.constant dense<0.000000e+00> : vector<32x58xf32>
    %135 = tpu.matmul %134, %132, %cst_91 {dimension_numbers = #tpu.dot_dimension_numbers<[1], [0], [0], [1], [0, 0, 1, 1], [], []>} : vector<32x16xf32>, vector<16x58xf32>, vector<32x58xf32> -> vector<32x58xf32>
    %136 = arith.addf %131, %135 : vector<32x58xf32>
    %137 = vector.extract_strided_slice %122 {offsets = [0, 6], sizes = [16, 58], strides = [1, 1]} : vector<16x72xf32> to vector<16x58xf32>
    %c3_92 = arith.constant 3 : index
    %c0_93 = arith.constant 0 : index
    %c0_94 = arith.constant 0 : index
    %138 = vector.load %arg8[%c3_92, %c0_93, %c0_94] : memref<9x32x16xf32, #tpu.memory_space<vmem>>, vector<1x32x16xf32>
    %139 = vector.shape_cast %138 : vector<1x32x16xf32> to vector<32x16xf32>
    %cst_95 = arith.constant dense<0.000000e+00> : vector<32x58xf32>
    %140 = tpu.matmul %139, %137, %cst_95 {dimension_numbers = #tpu.dot_dimension_numbers<[1], [0], [0], [1], [0, 0, 1, 1], [], []>} : vector<32x16xf32>, vector<16x58xf32>, vector<32x58xf32> -> vector<32x58xf32>
    %141 = arith.addf %136, %140 : vector<32x58xf32>
    %142 = vector.extract_strided_slice %122 {offsets = [0, 7], sizes = [16, 58], strides = [1, 1]} : vector<16x72xf32> to vector<16x58xf32>
    %c4_96 = arith.constant 4 : index
    %c0_97 = arith.constant 0 : index
    %c0_98 = arith.constant 0 : index
    %143 = vector.load %arg8[%c4_96, %c0_97, %c0_98] : memref<9x32x16xf32, #tpu.memory_space<vmem>>, vector<1x32x16xf32>
    %144 = vector.shape_cast %143 : vector<1x32x16xf32> to vector<32x16xf32>
    %cst_99 = arith.constant dense<0.000000e+00> : vector<32x58xf32>
    %145 = tpu.matmul %144, %142, %cst_99 {dimension_numbers = #tpu.dot_dimension_numbers<[1], [0], [0], [1], [0, 0, 1, 1], [], []>} : vector<32x16xf32>, vector<16x58xf32>, vector<32x58xf32> -> vector<32x58xf32>
    %146 = arith.addf %141, %145 : vector<32x58xf32>
    %147 = vector.extract_strided_slice %122 {offsets = [0, 8], sizes = [16, 58], strides = [1, 1]} : vector<16x72xf32> to vector<16x58xf32>
    %c5_100 = arith.constant 5 : index
    %c0_101 = arith.constant 0 : index
    %c0_102 = arith.constant 0 : index
    %148 = vector.load %arg8[%c5_100, %c0_101, %c0_102] : memref<9x32x16xf32, #tpu.memory_space<vmem>>, vector<1x32x16xf32>
    %149 = vector.shape_cast %148 : vector<1x32x16xf32> to vector<32x16xf32>
    %cst_103 = arith.constant dense<0.000000e+00> : vector<32x58xf32>
    %150 = tpu.matmul %149, %147, %cst_103 {dimension_numbers = #tpu.dot_dimension_numbers<[1], [0], [0], [1], [0, 0, 1, 1], [], []>} : vector<32x16xf32>, vector<16x58xf32>, vector<32x58xf32> -> vector<32x58xf32>
    %151 = arith.addf %146, %150 : vector<32x58xf32>
    %152 = vector.extract_strided_slice %122 {offsets = [0, 12], sizes = [16, 58], strides = [1, 1]} : vector<16x72xf32> to vector<16x58xf32>
    %c6_104 = arith.constant 6 : index
    %c0_105 = arith.constant 0 : index
    %c0_106 = arith.constant 0 : index
    %153 = vector.load %arg8[%c6_104, %c0_105, %c0_106] : memref<9x32x16xf32, #tpu.memory_space<vmem>>, vector<1x32x16xf32>
    %154 = vector.shape_cast %153 : vector<1x32x16xf32> to vector<32x16xf32>
    %cst_107 = arith.constant dense<0.000000e+00> : vector<32x58xf32>
    %155 = tpu.matmul %154, %152, %cst_107 {dimension_numbers = #tpu.dot_dimension_numbers<[1], [0], [0], [1], [0, 0, 1, 1], [], []>} : vector<32x16xf32>, vector<16x58xf32>, vector<32x58xf32> -> vector<32x58xf32>
    %156 = arith.addf %151, %155 : vector<32x58xf32>
    %157 = vector.extract_strided_slice %122 {offsets = [0, 13], sizes = [16, 58], strides = [1, 1]} : vector<16x72xf32> to vector<16x58xf32>
    %c7_108 = arith.constant 7 : index
    %c0_109 = arith.constant 0 : index
    %c0_110 = arith.constant 0 : index
    %158 = vector.load %arg8[%c7_108, %c0_109, %c0_110] : memref<9x32x16xf32, #tpu.memory_space<vmem>>, vector<1x32x16xf32>
    %159 = vector.shape_cast %158 : vector<1x32x16xf32> to vector<32x16xf32>
    %cst_111 = arith.constant dense<0.000000e+00> : vector<32x58xf32>
    %160 = tpu.matmul %159, %157, %cst_111 {dimension_numbers = #tpu.dot_dimension_numbers<[1], [0], [0], [1], [0, 0, 1, 1], [], []>} : vector<32x16xf32>, vector<16x58xf32>, vector<32x58xf32> -> vector<32x58xf32>
    %161 = arith.addf %156, %160 : vector<32x58xf32>
    %162 = vector.extract_strided_slice %122 {offsets = [0, 14], sizes = [16, 58], strides = [1, 1]} : vector<16x72xf32> to vector<16x58xf32>
    %c8_112 = arith.constant 8 : index
    %c0_113 = arith.constant 0 : index
    %c0_114 = arith.constant 0 : index
    %163 = vector.load %arg8[%c8_112, %c0_113, %c0_114] : memref<9x32x16xf32, #tpu.memory_space<vmem>>, vector<1x32x16xf32>
    %164 = vector.shape_cast %163 : vector<1x32x16xf32> to vector<32x16xf32>
    %cst_115 = arith.constant dense<0.000000e+00> : vector<32x58xf32>
    %165 = tpu.matmul %164, %162, %cst_115 {dimension_numbers = #tpu.dot_dimension_numbers<[1], [0], [0], [1], [0, 0, 1, 1], [], []>} : vector<32x16xf32>, vector<16x58xf32>, vector<32x58xf32> -> vector<32x58xf32>
    %166 = arith.addf %161, %165 : vector<32x58xf32>
    %c0_116 = arith.constant 0 : index
    %c0_117 = arith.constant 0 : index
    %167 = vector.load %arg9[%c0_116, %c0_117] : memref<32x1xf32, #tpu.memory_space<vmem>>, vector<32x1xf32>
    %168 = vector.broadcast %167 : vector<32x1xf32> to vector<32x58xf32>
    %169 = arith.mulf %166, %168 : vector<32x58xf32>
    %c0_118 = arith.constant 0 : index
    %c0_119 = arith.constant 0 : index
    %170 = vector.load %arg10[%c0_118, %c0_119] : memref<32x1xf32, #tpu.memory_space<vmem>>, vector<32x1xf32>
    %171 = vector.broadcast %170 : vector<32x1xf32> to vector<32x58xf32>
    %172 = arith.addf %169, %171 : vector<32x58xf32>
    %cst_120 = arith.constant 0.000000e+00 : f32
    %173 = vector.broadcast %cst_120 : f32 to vector<32x58xf32>
    %174 = arith.maximumf %172, %173 : vector<32x58xf32>
    %175 = vector.extract_strided_slice %174 {offsets = [0, 0], sizes = [32, 51], strides = [1, 1]} : vector<32x58xf32> to vector<32x51xf32>
    %176 = vector.extract_strided_slice %174 {offsets = [0, 1], sizes = [32, 51], strides = [1, 1]} : vector<32x58xf32> to vector<32x51xf32>
    %177 = arith.maximumf %175, %176 : vector<32x51xf32>
    %178 = vector.extract_strided_slice %174 {offsets = [0, 6], sizes = [32, 51], strides = [1, 1]} : vector<32x58xf32> to vector<32x51xf32>
    %179 = vector.extract_strided_slice %174 {offsets = [0, 7], sizes = [32, 51], strides = [1, 1]} : vector<32x58xf32> to vector<32x51xf32>
    %180 = arith.maximumf %178, %179 : vector<32x51xf32>
    %181 = arith.maximumf %177, %180 : vector<32x51xf32>
    %c0_121 = arith.constant 0 : index
    %c0_122 = arith.constant 0 : index
    %182 = vector.load %arg13[%c0_121, %c0_122] : memref<51x2xf32, #tpu.memory_space<vmem>>, vector<51x2xf32>
    %cst_123 = arith.constant dense<0.000000e+00> : vector<32x2xf32>
    %183 = tpu.matmul %181, %182, %cst_123 {dimension_numbers = #tpu.dot_dimension_numbers<[1], [0], [0], [1], [0, 0, 1, 1], [], []>} : vector<32x51xf32>, vector<51x2xf32>, vector<32x2xf32> -> vector<32x2xf32>
    %c0_124 = arith.constant 0 : index
    %c0_125 = arith.constant 0 : index
    %184 = vector.load %arg14[%c0_124, %c0_125] : memref<32x32xf32, #tpu.memory_space<vmem>>, vector<32x32xf32>
    %cst_126 = arith.constant dense<0.000000e+00> : vector<32x2xf32>
    %185 = tpu.matmul %184, %183, %cst_126 {dimension_numbers = #tpu.dot_dimension_numbers<[1], [0], [0], [1], [0, 0, 1, 1], [], []>} : vector<32x32xf32>, vector<32x2xf32>, vector<32x2xf32> -> vector<32x2xf32>
    %c0_127 = arith.constant 0 : index
    %c0_128 = arith.constant 0 : index
    %186 = vector.load %arg15[%c0_127, %c0_128] : memref<32x1xf32, #tpu.memory_space<vmem>>, vector<32x1xf32>
    %187 = vector.broadcast %186 : vector<32x1xf32> to vector<32x2xf32>
    %188 = arith.addf %185, %187 : vector<32x2xf32>
    %cst_129 = arith.constant 0.000000e+00 : f32
    %189 = vector.broadcast %cst_129 : f32 to vector<32x2xf32>
    %190 = arith.maximumf %188, %189 : vector<32x2xf32>
    %c0_130 = arith.constant 0 : index
    %c0_131 = arith.constant 0 : index
    %191 = vector.load %arg16[%c0_130, %c0_131] : memref<10x32xf32, #tpu.memory_space<vmem>>, vector<10x32xf32>
    %cst_132 = arith.constant dense<0.000000e+00> : vector<10x2xf32>
    %192 = tpu.matmul %191, %190, %cst_132 {dimension_numbers = #tpu.dot_dimension_numbers<[1], [0], [0], [1], [0, 0, 1, 1], [], []>} : vector<10x32xf32>, vector<32x2xf32>, vector<10x2xf32> -> vector<10x2xf32>
    %c0_133 = arith.constant 0 : index
    %c0_134 = arith.constant 0 : index
    %193 = vector.load %arg17[%c0_133, %c0_134] : memref<10x1xf32, #tpu.memory_space<vmem>>, vector<10x1xf32>
    %194 = vector.broadcast %193 : vector<10x1xf32> to vector<10x2xf32>
    %195 = arith.addf %192, %194 : vector<10x2xf32>
    %c0_135 = arith.constant 0 : index
    %c0_136 = arith.constant 0 : index
    %196 = vector.load %arg18[%c0_135, %c0_136] : memref<10x2xf32, #tpu.memory_space<vmem>>, vector<10x2xf32>
    tpu.vector_store %arg18[%c0_135, %c0_136], %195 {strides = array<i32>} : memref<10x2xf32, #tpu.memory_space<vmem>>, vector<10x2xf32>,
    return
  }
  func.func @transform_0(%arg0: i32) -> (i32, i32) {
    %c0_i32 = arith.constant 0 : i32
    %c0_i32_0 = arith.constant 0 : i32
    %c0_i32_1 = arith.constant 0 : i32
    return %c0_i32, %c0_i32_0 : i32, i32
  }
  func.func @transform_1(%arg0: i32) -> (i32, i32, i32) {
    %c0_i32 = arith.constant 0 : i32
    %c0_i32_0 = arith.constant 0 : i32
    %c0_i32_1 = arith.constant 0 : i32
    %c0_i32_2 = arith.constant 0 : i32
    return %c0_i32, %c0_i32_0, %c0_i32_1 : i32, i32, i32
  }
  func.func @transform_2(%arg0: i32) -> (i32, i32) {
    %c0_i32 = arith.constant 0 : i32
    %c0_i32_0 = arith.constant 0 : i32
    %c0_i32_1 = arith.constant 0 : i32
    return %c0_i32, %c0_i32_0 : i32, i32
  }
  func.func @transform_3(%arg0: i32) -> (i32, i32) {
    %c0_i32 = arith.constant 0 : i32
    %c0_i32_0 = arith.constant 0 : i32
    %c0_i32_1 = arith.constant 0 : i32
    return %c0_i32, %c0_i32_0 : i32, i32
  }
  func.func @transform_4(%arg0: i32) -> (i32, i32, i32) {
    %c0_i32 = arith.constant 0 : i32
    %c0_i32_0 = arith.constant 0 : i32
    %c0_i32_1 = arith.constant 0 : i32
    %c0_i32_2 = arith.constant 0 : i32
    return %c0_i32, %c0_i32_0, %c0_i32_1 : i32, i32, i32
  }
  func.func @transform_5(%arg0: i32) -> (i32, i32) {
    %c0_i32 = arith.constant 0 : i32
    %c0_i32_0 = arith.constant 0 : i32
    %c0_i32_1 = arith.constant 0 : i32
    return %c0_i32, %c0_i32_0 : i32, i32
  }
  func.func @transform_6(%arg0: i32) -> (i32, i32) {
    %c0_i32 = arith.constant 0 : i32
    %c0_i32_0 = arith.constant 0 : i32
    %c0_i32_1 = arith.constant 0 : i32
    return %c0_i32, %c0_i32_0 : i32, i32
  }
  func.func @transform_7(%arg0: i32) -> (i32, i32, i32) {
    %c0_i32 = arith.constant 0 : i32
    %c0_i32_0 = arith.constant 0 : i32
    %c0_i32_1 = arith.constant 0 : i32
    %c0_i32_2 = arith.constant 0 : i32
    return %c0_i32, %c0_i32_0, %c0_i32_1 : i32, i32, i32
  }
  func.func @transform_8(%arg0: i32) -> (i32, i32) {
    %c0_i32 = arith.constant 0 : i32
    %c0_i32_0 = arith.constant 0 : i32
    %c0_i32_1 = arith.constant 0 : i32
    return %c0_i32, %c0_i32_0 : i32, i32
  }
  func.func @transform_9(%arg0: i32) -> (i32, i32) {
    %c0_i32 = arith.constant 0 : i32
    %c0_i32_0 = arith.constant 0 : i32
    %c0_i32_1 = arith.constant 0 : i32
    return %c0_i32, %c0_i32_0 : i32, i32
  }
  func.func @transform_10(%arg0: i32) -> (i32, i32) {
    %c0_i32 = arith.constant 0 : i32
    %c0_i32_0 = arith.constant 0 : i32
    %c0_i32_1 = arith.constant 0 : i32
    return %c0_i32, %c0_i32_0 : i32, i32
  }
  func.func @transform_11(%arg0: i32) -> (i32, i32) {
    %c0_i32 = arith.constant 0 : i32
    %c0_i32_0 = arith.constant 0 : i32
    %c0_i32_1 = arith.constant 0 : i32
    return %c0_i32, %c0_i32_0 : i32, i32
  }
  func.func @transform_12(%arg0: i32) -> (i32, i32) {
    %c0_i32 = arith.constant 0 : i32
    %c0_i32_0 = arith.constant 0 : i32
    %c0_i32_1 = arith.constant 0 : i32
    return %c0_i32, %c0_i32_0 : i32, i32
  }
  func.func @transform_13(%arg0: i32) -> (i32, i32) {
    %c0_i32 = arith.constant 0 : i32
    %c0_i32_0 = arith.constant 0 : i32
    %c0_i32_1 = arith.constant 0 : i32
    return %c0_i32, %c0_i32_0 : i32, i32
  }
  func.func @transform_14(%arg0: i32) -> (i32, i32) {
    %c0_i32 = arith.constant 0 : i32
    %c0_i32_0 = arith.constant 0 : i32
    %c0_i32_1 = arith.constant 0 : i32
    return %c0_i32, %c0_i32_0 : i32, i32
  }
  func.func @transform_15(%arg0: i32) -> (i32, i32) {
    %c0_i32 = arith.constant 0 : i32
    %c0_i32_0 = arith.constant 0 : i32
    %c0_i32_1 = arith.constant 0 : i32
    return %c0_i32, %c0_i32_0 : i32, i32
  }
  func.func @transform_16(%arg0: i32) -> (i32, i32) {
    %c0_i32 = arith.constant 0 : i32
    %c0_i32_0 = arith.constant 0 : i32
    %c0_i32_1 = arith.constant 0 : i32
    return %c0_i32, %c0_i32_0 : i32, i32
  }
  func.func @transform_17(%arg0: i32) -> (i32, i32) {
    %c0_i32 = arith.constant 0 : i32
    %c0_i32_0 = arith.constant 0 : i32
    %c0_i32_1 = arith.constant 0 : i32
    return %c0_i32, %c0_i32_0 : i32, i32
  }
}

</mosaic_0001>

<bundles_post_ra>
// kernel: customizable_network_forward.1
= control target key start
LH: loop header
LB: loop body
LE: loop exit
PB: predicated region body
PF: predicated region fallthrough
CT: control target
= control target key end

     0   :  { %s6932_s0 = inlined_call_operand.vmem [shape: f32[3,648], index: 0, kind: input, shape index: {}]   ;;  %s6933_s1 = inlined_call_operand.vmem [shape: f32[9,8,3], index: 1, kind: input, shape index: {}]   ;;  %s6934_s2 = inlined_call_operand.vmem [shape: f32[8,1], index: 2, kind: input, shape index: {}]   ;;  %s6935_s3 = inlined_call_operand.hbm [shape: f32[8,1], index: 3, kind: input, shape index: {}]   ;;  %s6936_s4 = inlined_call_operand.vmem [shape: f32[9,16,8], index: 4, kind: input, shape index: {}]   ;;  %s6937_s5 = inlined_call_operand.vmem [shape: f32[16,1], index: 5, kind: input, shape index: {}]   ;;  %s6938_s6 = inlined_call_operand.hbm [shape: f32[16,1], index: 6, kind: input, shape index: {}]   ;;  %s6939_s7 = inlined_call_operand.vmem [shape: f32[9,32,16], index: 7, kind: input, shape index: {}]   ;;  %s6940_s8 = inlined_call_operand.vmem [shape: f32[32,1], index: 8, kind: input, shape index: {}]   ;;  %s6941_s9 = inlined_call_operand.hbm [shape: f32[32,1], index: 9, kind: input, shape index: {}]   ;;  %s6942_s10 = inlined_call_operand.hbm [shape: f32[591,200], index: 10, kind: input, shape index: {}]   ;;  %s6943_s11 = inlined_call_operand.vmem [shape: f32[167,72], index: 11, kind: input, shape index: {}]   ;;  %s6944_s12 = inlined_call_operand.vmem [shape: f32[51,2], index: 12, kind: input, shape index: {}]   ;;  %s6945_s13 = inlined_call_operand.hbm [shape: f32[32,32], index: 13, kind: input, shape index: {}]   ;;  %s6946_s14 = inlined_call_operand.vmem [shape: f32[32,1], index: 14, kind: input, shape index: {}]   ;;  %s6947_s15 = inlined_call_operand.hbm [shape: f32[10,32], index: 15, kind: input, shape index: {}]   ;;  %s6948_s16 = inlined_call_operand.hbm [shape: f32[10,1], index: 16, kind: input, shape index: {}]   ;;  %s6949_s17 = inlined_call_operand.vmem [shape: f32[10,2], index: 17, kind: output, shape index: {}]  }
   0x1   :  { %6952 = sst [smem:[#allocation17_spill]] %s6932_s0 }
   0x2   :  { %6953 = sst [smem:[#allocation18_spill]] %s6933_s1 }
   0x3   :  { %22 = vsyncpa [#allocation3], 0 }
   0x4   :  { %23 = vsyncpa [#allocation5], 0 }
   0x5   :  { %24 = vsyncpa [#allocation8], 0 }
   0x6   :  { %25 = vsyncpa [#allocation11], 0  ;;  %s5991_s24 = smov [#allocation4]  }
   0x7   :  { %s51_s25 = sshll.u32 %s5991_s24, 4  ;;  %s52_s25 = int_to_ptr.vmem [resolvable:$true] %s51_s25 }
   0x8   :  { %s5851_s26 = scalar_lea.vmem %s52_s25, 256  ;;  %p5856_p1 = scmp.lt.s32.totalorder %s52_s25, %s52_s25 }
   0x9   :  { %p5852_p0 = scmp.ne.s32.totalorder %s52_s25, %s5851_s26  ;;  %p5857_p2 = scmp.lt.s32.totalorder %s5851_s26, %s5851_s26 }
   0xb   :  { %p5858_p3 = por %p5857_p2, %p5856_p1 }
   0xd   :  { %p5859_p4 = pnand %p5858_p3, %p5852_p0 }
   0xf   :  { %5862 = shalt.err (!%p5859_p4)
}
  0x10   :  { %s5992_s27 = smov 128   ;;  %s5993_s28 = smov 8  }
  0x11   :  { %57 = dma.hbm_to_vmem [thread:$0]  %s6938_s6, 256, %s52_s25, [#allocation5], %s5992_s27, %s5992_s27, %s5993_s28  }
  0x12   :  { %s5994_s30 = smov [#allocation7]  }
  0x13   :  { %s79_s18 = sshll.u32 %s5994_s30, 4  ;;  %s80_s18 = int_to_ptr.vmem [resolvable:$true] %s79_s18 }
  0x14   :  { %s5871_s19 = scalar_lea.vmem %s80_s18, 18944  ;;  %p5876_p6 = scmp.lt.s32.totalorder %s80_s18, %s80_s18 }
  0x15   :  { %p5872_p5 = scmp.ne.s32.totalorder %s80_s18, %s5871_s19  ;;  %p5877_p7 = scmp.lt.s32.totalorder %s5871_s19, %s5871_s19 }
  0x17   :  { %p5878_p8 = por %p5877_p7, %p5876_p6 }
  0x19   :  { %p5879_p9 = pnand %p5878_p8, %p5872_p5 }
  0x1b   :  { %5882 = shalt.err (!%p5879_p9)
}
  0x1c   :  { %s5995_s1 = smov 256   ;;  %s5996_s20 = smov 16  }
  0x1d   :  { %85 = dma.hbm_to_vmem [thread:$0]  %s6942_s10, 18944, %s80_s18, [#allocation8], %s5995_s1, %s5995_s1, %s5996_s20  }
  0x1e   :  { %s5997_s23 = smov [#allocation10]   ;;  %s5998_s26 = smov [#allocation2]  }
  0x1f   :  { %s109_s24 = sshll.u32 %s5997_s23, 4  ;;  %s38_s6 = sshll.u32 %s5998_s26, 4  ;;  %s110_s24 = int_to_ptr.vmem [resolvable:$true] %s109_s24  ;;  %s39_s6 = int_to_ptr.vmem [resolvable:$true] %s38_s6 }
  0x20   :  { %s5891_s25 = scalar_lea.vmem %s110_s24, 256  ;;  %p5896_p11 = scmp.lt.s32.totalorder %s110_s24, %s110_s24 }
  0x21   :  { %p5892_p10 = scmp.ne.s32.totalorder %s110_s24, %s5891_s25  ;;  %p5897_p12 = scmp.lt.s32.totalorder %s5891_s25, %s5891_s25 }
  0x23   :  { %p5898_p13 = por %p5897_p12, %p5896_p11 }
  0x25   :  { %p5899_p0 = pnand %p5898_p13, %p5892_p10 }
  0x27   :  { %5902 = shalt.err (!%p5899_p0)
}
  0x28   :  { %115 = dma.hbm_to_vmem [thread:$0]  %s6947_s15, 256, %s110_s24, [#allocation11], %s5992_s27, %s5992_s27, %s5993_s28  }
  0x29   :  { %s5911_s10 = scalar_lea.vmem %s39_s6, 128  ;;  %p5916_p2 = scmp.lt.s32.totalorder %s39_s6, %s39_s6 }
  0x2a   :  { %p5912_p1 = scmp.ne.s32.totalorder %s39_s6, %s5911_s10  ;;  %p5917_p3 = scmp.lt.s32.totalorder %s5911_s10, %s5911_s10 }
  0x2c   :  { %p5918_p4 = por %p5917_p3, %p5916_p2 }
  0x2e   :  { %p5919_p5 = pnand %p5918_p4, %p5912_p1 }
  0x30   :  { %5922 = shalt.err (!%p5919_p5)
}
  0x31   :  { %41 = dma.hbm_to_vmem [thread:$0]  %s6935_s3, 128, %s39_s6, [#allocation3]  }
  0x32   :  { %s5999_s19 = smov [#allocation6]   ;;  %s6000_s20 = smov [#allocation9]  }
  0x33   :  { %s67_s1 = sshll.u32 %s5999_s19, 4  ;;  %s95_s21 = sshll.u32 %s6000_s20, 4  ;;  %s68_s1 = int_to_ptr.vmem [resolvable:$true] %s67_s1  ;;  %s96_s21 = int_to_ptr.vmem [resolvable:$true] %s95_s21 }
  0x34   :  { %s5931_s22 = scalar_lea.vmem %s68_s1, 512  ;;  %p5936_p7 = scmp.lt.s32.totalorder %s68_s1, %s68_s1 }
  0x35   :  { %p5932_p6 = scmp.ne.s32.totalorder %s68_s1, %s5931_s22  ;;  %p5937_p8 = scmp.lt.s32.totalorder %s5931_s22, %s5931_s22 }
  0x37   :  { %p5938_p9 = por %p5937_p8, %p5936_p7 }
  0x39   :  { %p5939_p10 = pnand %p5938_p9, %p5932_p6 }
  0x3b   :  { %5942 = shalt.err (!%p5939_p10)
}
  0x3c   :  { %73 = dma.hbm_to_vmem [thread:$0]  %s6941_s9, 512, %s68_s1, [#allocation5], %s5992_s27, %s5992_s27, %s5993_s28  }
  0x3d   :  { %s5951_s3 = scalar_lea.vmem %s96_s21, 512  ;;  %p5956_p12 = scmp.lt.s32.totalorder %s96_s21, %s96_s21 }
  0x3e   :  { %p5952_p11 = scmp.ne.s32.totalorder %s96_s21, %s5951_s3  ;;  %p5957_p13 = scmp.lt.s32.totalorder %s5951_s3, %s5951_s3 }
  0x40   :  { %p5958_p0 = por %p5957_p13, %p5956_p12 }
  0x42   :  { %p5959_p1 = pnand %p5958_p0, %p5952_p11 }
  0x44   :  { %5962 = shalt.err (!%p5959_p1)
}
  0x45   :  { %101 = dma.hbm_to_vmem [thread:$0]  %s6945_s13, 512, %s96_s21, [#allocation8], %s5992_s27, %s5992_s27, %s5993_s28  }
  0x46   :  { %s6001_s6 = smov [#allocation12]  }
  0x47   :  { %s121_s25 = sshll.u32 %s6001_s6, 4  ;;  %s122_s25 = int_to_ptr.vmem [resolvable:$true] %s121_s25 }
  0x48   :  { %s5971_s29 = scalar_lea.vmem %s122_s25, 256  ;;  %p5976_p3 = scmp.lt.s32.totalorder %s122_s25, %s122_s25 }
  0x49   :  { %p5972_p2 = scmp.ne.s32.totalorder %s122_s25, %s5971_s29  ;;  %p5977_p4 = scmp.lt.s32.totalorder %s5971_s29, %s5971_s29 }
  0x4b   :  { %p5978_p5 = por %p5977_p4, %p5976_p3 }
  0x4d   :  { %p5979_p6 = pnand %p5978_p5, %p5972_p2 }
  0x4f   :  { %5982 = shalt.err (!%p5979_p6)
}
  0x50   :  { %127 = dma.hbm_to_vmem [thread:$0]  %s6948_s16, 256, %s122_s25, [#allocation11], %s5992_s27, %s5992_s27, %s5993_s28  }
  0x51   :  { %5983 = dma.done.wait [#allocation3], 128  }
  0x52   :  { %5984 = vsyncadd [#allocation3], 4294967168 }
  0x53   :  { %5985 = dma.done.wait [#allocation5], 768  }
  0x54   :  { %5986 = vsyncadd [#allocation5], 4294966528 }
  0x55   :  { %5987 = dma.done.wait [#allocation8], 19456  }
  0x56   :  { %5988 = vsyncadd [#allocation8], 4294947840 }
  0x57   :  { %5989 = dma.done.wait [#allocation11], 512  }
  0x58   :  { %5990 = vsyncadd [#allocation11], 4294966784  ;;  %v6002_v0 = vmov 0.0   ;;  %s6954_s30 = sld [smem:[#allocation17_spill]]  ;;  %s6003_s27 = smov 127   ;;  %v6011_v7 = vmov 0  }
  0x59   :  { %325 = vmatprep.mubr.f32.mxu1 %v6002_v0  ;;  %254 = vmatprep.mubr.f32.mxu0 %v6002_v0  ;;  %s6004_s1 = smov 126   ;;  %s6005_s20 = smov 110   ;;  %v2366_v8 = vld [vmem:[%s6934_s2] sm:$0xff]  ;;  %vm170_vm0 = vcmask 1039360   ;;  %vm179_vm1 = vcmask 1042432   ;;  %vm175_vm2 = vcmask 23552  }
  0x5a   :  { %s6006_s21 = smov 109   ;;  %s6007_s22 = smov 108   ;;  %5823 = vset.pattern.permute.xlu1 %v6011_v7  ;;  %5824 = vset.pattern.permute.xlu0 %v6011_v7  ;;  %v2377_v9 = vld [vmem:[#allocation2] sm:$0xff]  ;;  %vm6012_vm3 = vmmov 0   ;;  %vm639_vm4 = vcmask 1031168   ;;  %vm886_vm5 = vcmask 900096  }
  0x5b   :  { %s6008_s15 = smov 92   ;;  %s6009_s23 = smov 91   ;;  %vm1133_vm6 = vcmask 891904   ;;  %vm1380_vm7 = vcmask 883712   ;;  %vm1630_vm8 = vcmask 752640   ;;  %vm1880_vm9 = vcmask 744448  }
  0x5c   :  { %s6010_s3 = smov 90   ;;  %s6955_s29 = sld [smem:[#allocation18_spill]]  ;;  %vm2130_vm10 = vcmask 736256   ;;  %vm2603_vm11 = vcmask 1046528   ;;  %vm2599_vm12 = vcmask 646144   ;;  %vm2837_vm13 = vcmask 64512  }
  0x5d   :  { %s6014_s6 = smov 117   ;;  %s6015_s25 = smov 116   ;;  %vm3108_vm14 = vcmask 965632   ;;  %vm3304_vm15 = vcmask 949248  }
  0x5e   :  { %v6154_v1 = vld [vmem:[%s6954_s30 + $0x10] sm:$0x77]  ;;  %v6159_v2 = vld [vmem:[%s6954_s30 + $0x8] sm:$0x77]  ;;  %v6172_v4 = vld [vmem:[%s6954_s30] sm:$0x77] }
  0x5f   :  { %168 = vrot.lane.b32.xlu1 %v6154_v1, %s6003_s27  ;;  %164 = vrot.lane.b32.xlu0 %v6159_v2, %s6003_s27  ;;  %v6167_v3 = vcombine.high %v6159_v2, %v6159_v2  ;;  %v6180_v5 = vcombine.high %v6172_v4, %v6172_v4  ;;  %v1617_v6 = vcombine.high %v6154_v1, %v6154_v1  ;;  %s6017_s2 = smov 106   ;;  %s6019_s9 = smov 121  }
  0x60   :  { %s6020_s10 = smov 120  }
  0x62   :  { %v5315_v16 = vld [vmem:[%s6955_s29 + $0x8] sm:$0xff]  ;;  %v152_v21 = vld [vmem:[%s6955_s29] sm:$0xff]  ;;  %v5332_v33 = vld [vmem:[%s6955_s29 + $0x10] sm:$0xff] }
  0x63   :  { %166 = vrot.lane.b32.xlu1 %v6167_v3, %s6003_s27  ;;  %160 = vrot.lane.b32.xlu0 %v6172_v4, %s6003_s27  ;;  %v5341_v37 = vld [vmem:[%s6955_s29 + $0x18] sm:$0xff]  ;;  %v5350_v47 = vld [vmem:[%s6955_s29 + $0x20] sm:$0xff] }
  0x64   :  { %v5359_v56 = vld [vmem:[%s6955_s29 + $0x28] sm:$0xff] }
  0x67   :  { %631 = vrot.lane.b32.xlu1 %v6180_v5, %s6004_s1  ;;  %162 = vrot.lane.b32.xlu0 %v6180_v5, %s6003_s27 }
  0x6b   :  { %635 = vrot.lane.b32.xlu1 %v6167_v3, %s6004_s1  ;;  %633 = vrot.lane.b32.xlu0 %v6159_v2, %s6004_s1 }
  0x6f   :  { %629 = vrot.lane.b32.xlu1 %v6172_v4, %s6004_s1  ;;  %637 = vrot.lane.b32.xlu0 %v6154_v1, %s6004_s1 }
  0x73   :  { %880 = vrot.lane.b32.xlu1 %v6159_v2, %s6005_s20  ;;  %878 = vrot.lane.b32.xlu0 %v6180_v5, %s6005_s20 }
  0x77   :  { %882 = vrot.lane.b32.xlu1 %v6167_v3, %s6005_s20  ;;  %876 = vrot.lane.b32.xlu0 %v6172_v4, %s6005_s20 }
  0x7b   :  { %1125 = vrot.lane.b32.xlu1 %v6180_v5, %s6006_s21  ;;  %884 = vrot.lane.b32.xlu0 %v6154_v1, %s6005_s20 }
  0x7f   :  { %1129 = vrot.lane.b32.xlu1 %v6167_v3, %s6006_s21  ;;  %1127 = vrot.lane.b32.xlu0 %v6159_v2, %s6006_s21 }
  0x83   :  { %1123 = vrot.lane.b32.xlu1 %v6172_v4, %s6006_s21  ;;  %1131 = vrot.lane.b32.xlu0 %v6154_v1, %s6006_s21 }
  0x87   :  { %1374 = vrot.lane.b32.xlu1 %v6159_v2, %s6007_s22  ;;  %1372 = vrot.lane.b32.xlu0 %v6180_v5, %s6007_s22 }
  0x8b   :  { %1376 = vrot.lane.b32.xlu1 %v6167_v3, %s6007_s22  ;;  %1370 = vrot.lane.b32.xlu0 %v6172_v4, %s6007_s22 }
  0x8f   :  { %1620 = vrot.lane.b32.xlu1 %v6180_v5, %s6008_s15  ;;  %1378 = vrot.lane.b32.xlu0 %v6154_v1, %s6007_s22 }
  0x93   :  { %1624 = vrot.lane.b32.xlu1 %v6167_v3, %s6008_s15  ;;  %1622 = vrot.lane.b32.xlu0 %v6159_v2, %s6008_s15 }
  0x97   :  { %1618 = vrot.lane.b32.xlu1 %v6172_v4, %s6008_s15  ;;  %1626 = vrot.lane.b32.xlu0 %v6154_v1, %s6008_s15 }
  0x9b   :  { %1872 = vrot.lane.b32.xlu1 %v6159_v2, %s6009_s23  ;;  %1870 = vrot.lane.b32.xlu0 %v6180_v5, %s6009_s23 }
  0x9f   :  { %1868 = vrot.lane.b32.xlu1 %v6172_v4, %s6009_s23  ;;  %1628 = vrot.lane.b32.xlu0 %v1617_v6, %s6008_s15 }
  0xa3   :  { %1876 = vrot.lane.b32.xlu1 %v6154_v1, %s6009_s23  ;;  %1874 = vrot.lane.b32.xlu0 %v6167_v3, %s6009_s23 }
  0xa7   :  { %2120 = vrot.lane.b32.xlu1 %v6180_v5, %s6010_s3  ;;  %1878 = vrot.lane.b32.xlu0 %v1617_v6, %s6009_s23 }
  0xab   :  { %2124 = vrot.lane.b32.xlu1 %v6167_v3, %s6010_s3  ;;  %2122 = vrot.lane.b32.xlu0 %v6159_v2, %s6010_s3 }
  0xaf   :  { %2118 = vrot.lane.b32.xlu1 %v6172_v4, %s6010_s3  ;;  %2126 = vrot.lane.b32.xlu0 %v6154_v1, %s6010_s3 }
  0xb3   :  { %2128 = vrot.lane.b32.xlu0 %v1617_v6, %s6010_s3  ;;  %2369 = vperm.xlu1 %5823, %v2366_v8  }
  0xb7   :  { %2380 = vperm.xlu0 %5824, %v2377_v9  }
  0xd1   :  { %v169_v10 = vpop.permute.xlu1 %168  ;;  %v165_v11 = vpop.permute.xlu0 %164 }
  0xd5   :  { %v167_v12 = vpop.permute.xlu1 %166  ;;  %v161_v13 = vpop.permute.xlu0 %160 }
  0xd6   :  { %v174_v14 = vsel %vm170_vm0, %v167_v12, %v169_v10  ;;  %v173_v15 = vsel %vm170_vm0, %v165_v11, %v167_v12 }
  0xd7   :  { %5319 = vmatprep.subr.msk.mxu1 %vm179_vm1, %v174_v14 }
  0xd8   :  { %5320 = vmatpush1.msk.msra.mxu1 %vm179_vm1, %v173_v15 }
  0xd9   :  { %v632_v17 = vpop.permute.xlu1 %631  ;;  %v163_v18 = vpop.permute.xlu0 %162  ;;  %5321 = vmatmul.mubr.msk.f32.vlgmr.msra.gmra.mxu1 %vm175_vm2, %v5315_v16  ;;  %5324 = vmatprep.subr.msk.mxu1 %vm179_vm1, %v6180_v5 }
  0xda   :  { %v172_v19 = vsel %vm170_vm0, %v163_v18, %v165_v11  ;;  %v171_v20 = vsel %vm170_vm0, %v161_v13, %v163_v18  ;;  %5325 = vmatpush1.msk.msra.mxu1 %vm179_vm1, %v6172_v4  ;;  %479 = vmatprep.mubr.f32.mxu1 %v6002_v0  ;;  %v5368_v4 = vld [vmem:[%s6955_s29 + $0x30] sm:$0xff]  ;;  %v5377_v13 = vld [vmem:[%s6955_s29 + $0x38] sm:$0xff] }
  0xdb   :  { %5316 = vmatprep.subr.msk.mxu0 %vm179_vm1, %v172_v19  ;;  %5616 = vmatprep.subr.mxu1 %v6002_v0 }
  0xdc   :  { %5317 = vmatpush1.msk.msra.mxu0 %vm179_vm1, %v171_v20 }
  0xdd   :  { %v636_v22 = vpop.permute.xlu1 %635  ;;  %5318 = vmatmul.mubr.msk.f32.vlgmr.msra.gmra.mxu0 %vm175_vm2, %v5315_v16  ;;  %5611 = vmatprep.subr.mxu0 %v6002_v0  ;;  %v634_v23 = vpop.permute.xlu0 %633 }
  0xde   :  { %5612 = vmatpush3.msk.msra.mxu0 %vm179_vm1, %v169_v10  ;;  %5613 = vmatprep.mubr.msk.f32.mxu0 %vm6012_vm3, %v6002_v0  ;;  %v641_v26 = vsel %vm639_vm4, %v632_v17, %v634_v23  ;;  %v642_v28 = vsel %vm639_vm4, %v634_v23, %v636_v22 }
  0xdf   :  { %5326 = vmatmul.mubr.msk.f32.vlgmr.msra.gmra.mxu1 %vm175_vm2, %v152_v21  ;;  %5327 = vmatprep.subr.msk.mxu0 %vm179_vm1, %v6167_v3 }
  0xe0   :  { %5617 = vmatpush3.msk.msra.mxu1 %vm179_vm1, %v6154_v1  ;;  %5618 = vmatprep.mubr.msk.f32.mxu1 %vm6012_vm3, %v6002_v0 }
  0xe1   :  { %v630_v24 = vpop.permute.xlu1 %629  ;;  %5614 = vmatmul.mubr.msk.f32.vlgmr.msra.gmra.mxu0 %vm175_vm2, %v5315_v16  ;;  %v638_v25 = vpop.permute.xlu0 %637 }
  0xe2   :  { %5328 = vmatpush1.msk.msra.mxu0 %vm179_vm1, %v6159_v2  ;;  %v643_v27 = vsel %vm639_vm4, %v636_v22, %v638_v25  ;;  %550 = vmatprep.mubr.f32.mxu0 %v6002_v0  ;;  %v640_v29 = vsel %vm639_vm4, %v630_v24, %v632_v17 }
  0xe3   :  { %5333 = vmatprep.subr.msk.mxu0 %vm179_vm1, %v641_v26  ;;  %5336 = vmatprep.subr.msk.mxu1 %vm179_vm1, %v643_v27 }
  0xe4   :  { %5619 = vmatmul.mubr.msk.f32.vlgmr.msra.gmra.mxu1 %vm175_vm2, %v152_v21 }
  0xe5   :  { %5337 = vmatpush1.msk.msra.mxu1 %vm179_vm1, %v642_v28  ;;  %v881_v30 = vpop.permute.xlu1 %880  ;;  %5329 = vmatmul.mubr.msk.f32.vlgmr.msra.gmra.mxu0 %vm175_vm2, %v152_v21  ;;  %v879_v31 = vpop.permute.xlu0 %878  ;;  %v5386_v28 = vld [vmem:[%s6955_s29 + $0x40] sm:$0xff]  ;;  %s6016_s29 = smov 107  }
  0xe6   :  { %5334 = vmatpush1.msk.msra.mxu0 %vm179_vm1, %v640_v29  ;;  %v888_v32 = vsel %vm886_vm5, %v879_v31, %v881_v30  ;;  %721 = vmatprep.mubr.f32.mxu0 %v6002_v0 }
  0xe7   :  { %5342 = vmatprep.subr.msk.mxu1 %vm179_vm1, %v888_v32  ;;  %5621 = vmatprep.subr.mxu0 %v6002_v0 }
  0xe8   :  { %792 = vmatprep.mubr.f32.mxu1 %v6002_v0 }
  0xe9   :  { %v883_v34 = vpop.permute.xlu1 %882  ;;  %5335 = vmatmul.mubr.msk.f32.vlgmr.msra.gmra.mxu0 %vm175_vm2, %v5332_v33  ;;  %v877_v35 = vpop.permute.xlu0 %876  ;;  %5338 = vmatmul.mubr.msk.f32.vlgmr.msra.gmra.mxu1 %vm175_vm2, %v5332_v33 }
  0xea   :  { %5622 = vmatpush3.msk.msra.mxu0 %vm179_vm1, %v638_v25  ;;  %v887_v36 = vsel %vm886_vm5, %v877_v35, %v879_v31  ;;  %968 = vmatprep.mubr.f32.mxu1 %v6002_v0  ;;  %v889_v41 = vsel %vm886_vm5, %v881_v30, %v883_v34 }
  0xeb   :  { %5343 = vmatpush1.msk.msra.mxu1 %vm179_vm1, %v887_v36  ;;  %5623 = vmatprep.mubr.msk.f32.mxu0 %vm6012_vm3, %v6002_v0 }
  0xec   :  { %5626 = vmatprep.subr.mxu1 %v6002_v0 }
  0xed   :  { %v1126_v38 = vpop.permute.xlu1 %1125  ;;  %v885_v39 = vpop.permute.xlu0 %884  ;;  %5344 = vmatmul.mubr.msk.f32.vlgmr.msra.gmra.mxu1 %vm175_vm2, %v5341_v37  ;;  %5624 = vmatmul.mubr.msk.f32.vlgmr.msra.gmra.mxu0 %vm175_vm2, %v5332_v33 }
  0xee   :  { %v890_v40 = vsel %vm886_vm5, %v883_v34, %v885_v39  ;;  %5627 = vmatpush3.msk.msra.mxu1 %vm179_vm1, %v885_v39  ;;  %1039 = vmatprep.mubr.f32.mxu0 %v6002_v0 }
  0xef   :  { %5345 = vmatprep.subr.msk.mxu0 %vm179_vm1, %v890_v40  ;;  %5628 = vmatprep.mubr.msk.f32.mxu1 %vm6012_vm3, %v6002_v0 }
  0xf0   :  { %5346 = vmatpush1.msk.msra.mxu0 %vm179_vm1, %v889_v41 }
  0xf1   :  { %v1130_v42 = vpop.permute.xlu1 %1129  ;;  %v1128_v43 = vpop.permute.xlu0 %1127  ;;  %5347 = vmatmul.mubr.msk.f32.vlgmr.msra.gmra.mxu0 %vm175_vm2, %v5341_v37  ;;  %5629 = vmatmul.mubr.msk.f32.vlgmr.msra.gmra.mxu1 %vm175_vm2, %v5341_v37 }
  0xf2   :  { %v1135_v44 = vsel %vm1133_vm6, %v1126_v38, %v1128_v43  ;;  %1215 = vmatprep.mubr.f32.mxu0 %v6002_v0  ;;  %1286 = vmatprep.mubr.f32.mxu1 %v6002_v0  ;;  %v1136_v50 = vsel %vm1133_vm6, %v1128_v43, %v1130_v42 }
  0xf3   :  { %5351 = vmatprep.subr.msk.mxu0 %vm179_vm1, %v1135_v44 }
  0xf5   :  { %v1124_v45 = vpop.permute.xlu1 %1123  ;;  %v1132_v46 = vpop.permute.xlu0 %1131 }
  0xf6   :  { %v1134_v48 = vsel %vm1133_vm6, %v1124_v45, %v1126_v38  ;;  %v1137_v49 = vsel %vm1133_vm6, %v1130_v42, %v1132_v46  ;;  %vm5106_vm6 = vcmask 261120  }
  0xf7   :  { %5352 = vmatpush1.msk.msra.mxu0 %vm179_vm1, %v1134_v48  ;;  %5354 = vmatprep.subr.msk.mxu1 %vm179_vm1, %v1137_v49 }
  0xf8   :  { %5353 = vmatmul.mubr.msk.f32.vlgmr.msra.gmra.mxu0 %vm175_vm2, %v5350_v47  ;;  %5355 = vmatpush1.msk.msra.mxu1 %vm179_vm1, %v1136_v50 }
  0xf9   :  { %5631 = vmatprep.subr.mxu0 %v6002_v0  ;;  %v1375_v51 = vpop.permute.xlu1 %1374  ;;  %v1373_v52 = vpop.permute.xlu0 %1372  ;;  %5356 = vmatmul.mubr.msk.f32.vlgmr.msra.gmra.mxu1 %vm175_vm2, %v5350_v47 }
  0xfa   :  { %5632 = vmatpush3.msk.msra.mxu0 %vm179_vm1, %v1132_v46  ;;  %v1382_v53 = vsel %vm1380_vm7, %v1373_v52, %v1375_v51  ;;  %5633 = vmatprep.mubr.msk.f32.mxu0 %vm6012_vm3, %v6002_v0 }
  0xfb   :  { %5360 = vmatprep.subr.msk.mxu1 %vm179_vm1, %v1382_v53  ;;  %1462 = vmatprep.mubr.f32.mxu1 %v6002_v0 }
  0xfc   :  { %5634 = vmatmul.mubr.msk.f32.vlgmr.msra.gmra.mxu0 %vm175_vm2, %v5350_v47 }
  0xfd   :  { %v1377_v54 = vpop.permute.xlu1 %1376  ;;  %v1371_v55 = vpop.permute.xlu0 %1370  ;;  %1533 = vmatprep.mubr.f32.mxu0 %v6002_v0 }
  0xfe   :  { %v1381_v57 = vsel %vm1380_vm7, %v1371_v55, %v1373_v52  ;;  %v1383_v61 = vsel %vm1380_vm7, %v1375_v51, %v1377_v54 }
  0xff   :  { %5361 = vmatpush1.msk.msra.mxu1 %vm179_vm1, %v1381_v57 }
 0x100   :  { %5362 = vmatmul.mubr.msk.f32.vlgmr.msra.gmra.mxu1 %vm175_vm2, %v5359_v56  ;;  %5636 = vmatprep.subr.mxu1 %v6002_v0 }
 0x101   :  { %v1621_v58 = vpop.permute.xlu1 %1620  ;;  %v1379_v59 = vpop.permute.xlu0 %1378  ;;  %5638 = vmatprep.mubr.msk.f32.mxu1 %vm6012_vm3, %v6002_v0 }
 0x102   :  { %v1384_v60 = vsel %vm1380_vm7, %v1377_v54, %v1379_v59  ;;  %5637 = vmatpush3.msk.msra.mxu1 %vm179_vm1, %v1379_v59 }
 0x103   :  { %5363 = vmatprep.subr.msk.mxu0 %vm179_vm1, %v1384_v60 }
 0x104   :  { %5364 = vmatpush1.msk.msra.mxu0 %vm179_vm1, %v1383_v61  ;;  %5639 = vmatmul.mubr.msk.f32.vlgmr.msra.gmra.mxu1 %vm175_vm2, %v5359_v56 }
 0x105   :  { %v1625_v62 = vpop.permute.xlu1 %1624  ;;  %5365 = vmatmul.mubr.msk.f32.vlgmr.msra.gmra.mxu0 %vm175_vm2, %v5359_v56  ;;  %v1623_v63 = vpop.permute.xlu0 %1622  ;;  %1784 = vmatprep.mubr.f32.mxu1 %v6002_v0 }
 0x106   :  { %v1632_v1 = vsel %vm1630_vm8, %v1621_v58, %v1623_v63  ;;  %1713 = vmatprep.mubr.f32.mxu0 %v6002_v0  ;;  %v1633_v7 = vsel %vm1630_vm8, %v1623_v63, %v1625_v62 }
 0x107   :  { %5369 = vmatprep.subr.msk.mxu0 %vm179_vm1, %v1632_v1 }
 0x109   :  { %v1619_v2 = vpop.permute.xlu1 %1618  ;;  %v1627_v3 = vpop.permute.xlu0 %1626 }
 0x10a   :  { %v1631_v5 = vsel %vm1630_vm8, %v1619_v2, %v1621_v58  ;;  %v1634_v6 = vsel %vm1630_vm8, %v1625_v62, %v1627_v3 }
 0x10b   :  { %5370 = vmatpush1.msk.msra.mxu0 %vm179_vm1, %v1631_v5  ;;  %5372 = vmatprep.subr.msk.mxu1 %vm179_vm1, %v1634_v6 }
 0x10c   :  { %5371 = vmatmul.mubr.msk.f32.vlgmr.msra.gmra.mxu0 %vm175_vm2, %v5368_v4  ;;  %5373 = vmatpush1.msk.msra.mxu1 %vm179_vm1, %v1633_v7 }
 0x10d   :  { %v1873_v8 = vpop.permute.xlu1 %1872  ;;  %v1871_v9 = vpop.permute.xlu0 %1870  ;;  %5374 = vmatmul.mubr.msk.f32.vlgmr.msra.gmra.mxu1 %vm175_vm2, %v5368_v4  ;;  %5641 = vmatprep.subr.mxu0 %v6002_v0 }
 0x10e   :  { %v1882_v10 = vsel %vm1880_vm9, %v1871_v9, %v1873_v8  ;;  %5643 = vmatprep.mubr.msk.f32.mxu0 %vm6012_vm3, %v6002_v0  ;;  %1963 = vmatprep.mubr.f32.mxu1 %v6002_v0 }
 0x10f   :  { %5378 = vmatprep.subr.msk.mxu1 %vm179_vm1, %v1882_v10 }
 0x111   :  { %v1869_v11 = vpop.permute.xlu1 %1868  ;;  %v1629_v12 = vpop.permute.xlu0 %1628 }
 0x112   :  { %v1881_v14 = vsel %vm1880_vm9, %v1869_v11, %v1871_v9  ;;  %v1635_v15 = vsel %vm1630_vm8, %v1627_v3, %v1629_v12  ;;  %vm5303_vm8 = vcmask 15360  }
 0x113   :  { %5642 = vmatpush3.msk.msra.mxu0 %vm179_vm1, %v1635_v15  ;;  %5379 = vmatpush1.msk.msra.mxu1 %vm179_vm1, %v1881_v14 }
 0x114   :  { %5644 = vmatmul.mubr.msk.f32.vlgmr.msra.gmra.mxu0 %vm175_vm2, %v5368_v4  ;;  %5380 = vmatmul.mubr.msk.f32.vlgmr.msra.gmra.mxu1 %vm175_vm2, %v5377_v13 }
 0x115   :  { %v1877_v16 = vpop.permute.xlu1 %1876  ;;  %v1875_v17 = vpop.permute.xlu0 %1874  ;;  %2034 = vmatprep.mubr.f32.mxu0 %v6002_v0  ;;  %5646 = vmatprep.subr.mxu1 %v6002_v0 }
 0x116   :  { %v1883_v18 = vsel %vm1880_vm9, %v1873_v8, %v1875_v17  ;;  %v1884_v19 = vsel %vm1880_vm9, %v1875_v17, %v1877_v16  ;;  %5648 = vmatprep.mubr.msk.f32.mxu1 %vm6012_vm3, %v6002_v0 }
 0x117   :  { %5381 = vmatprep.subr.msk.mxu0 %vm179_vm1, %v1884_v19 }
 0x118   :  { %5382 = vmatpush1.msk.msra.mxu0 %vm179_vm1, %v1883_v18 }
 0x119   :  { %v2121_v20 = vpop.permute.xlu1 %2120  ;;  %5383 = vmatmul.mubr.msk.f32.vlgmr.msra.gmra.mxu0 %vm175_vm2, %v5377_v13  ;;  %v1879_v21 = vpop.permute.xlu0 %1878 }
 0x11a   :  { %v1885_v22 = vsel %vm1880_vm9, %v1877_v16, %v1879_v21  ;;  %2213 = vmatprep.mubr.f32.mxu0 %v6002_v0 }
 0x11b   :  { %5647 = vmatpush3.msk.msra.mxu1 %vm179_vm1, %v1885_v22 }
 0x11c   :  { %5649 = vmatmul.mubr.msk.f32.vlgmr.msra.gmra.mxu1 %vm175_vm2, %v5377_v13 }
 0x11d   :  { %v2125_v23 = vpop.permute.xlu1 %2124  ;;  %v2123_v24 = vpop.permute.xlu0 %2122  ;;  %2284 = vmatprep.mubr.f32.mxu1 %v6002_v0 }
 0x11e   :  { %v2132_v25 = vsel %vm2130_vm10, %v2121_v20, %v2123_v24  ;;  %v2133_v31 = vsel %vm2130_vm10, %v2123_v24, %v2125_v23 }
 0x11f   :  { %5387 = vmatprep.subr.msk.mxu0 %vm179_vm1, %v2132_v25 }
 0x121   :  { %v2119_v26 = vpop.permute.xlu1 %2118  ;;  %v2127_v27 = vpop.permute.xlu0 %2126 }
 0x122   :  { %v2131_v29 = vsel %vm2130_vm10, %v2119_v26, %v2121_v20  ;;  %v2134_v30 = vsel %vm2130_vm10, %v2125_v23, %v2127_v27 }
 0x123   :  { %5388 = vmatpush1.msk.msra.mxu0 %vm179_vm1, %v2131_v29  ;;  %5390 = vmatprep.subr.msk.mxu1 %vm179_vm1, %v2134_v30 }
 0x124   :  { %5389 = vmatmul.mubr.msk.f32.vlgmr.msra.gmra.mxu0 %vm175_vm2, %v5386_v28  ;;  %5391 = vmatpush1.msk.msra.mxu1 %vm179_vm1, %v2133_v31 }
 0x125   :  { %v2129_v32 = vpop.permute.xlu0 %2128  ;;  %5392 = vmatmul.mubr.msk.f32.vlgmr.msra.gmra.mxu1 %vm175_vm2, %v5386_v28  ;;  %5651 = vmatprep.subr.mxu0 %v6002_v0 }
 0x126   :  { %v2135_v33 = vsel %vm2130_vm10, %v2127_v27, %v2129_v32  ;;  %5653 = vmatprep.mubr.msk.f32.mxu0 %vm6012_vm3, %v6002_v0  ;;  %vm3499_vm3 = vcmask 875520  }
 0x127   :  { %5652 = vmatpush3.msk.msra.mxu0 %vm179_vm1, %v2135_v33 }
 0x128   :  { %5654 = vmatmul.mubr.msk.f32.vlgmr.msra.gmra.mxu0 %vm175_vm2, %v5386_v28  ;;  %vm3206_vm2 = vcmask 957440  }
 0x199   :  { %v327_v34 = vpop.f32.mrf.mxu1 }
 0x19b   :  { %v329_v35 = vpop.f32.mrf.mxu1 }
 0x19d   :  { %v256_v36 = vpop.f32.mrf.mxu0 }
 0x19f   :  { %v258_v37 = vpop.f32.mrf.mxu0  ;;  %v481_v38 = vpop.f32.mrf.mxu1 }
 0x1a0   :  { %v482_v9 = vadd.f32 %v481_v38, %v256_v36 }
 0x1a1   :  { %v398_v39 = vpop.f32.mrf.mxu0  ;;  %v483_v40 = vpop.f32.mrf.mxu1 }
 0x1a2   :  { %v484_v12 = vadd.f32 %v483_v40, %v258_v37 }
 0x1a3   :  { %v5615_v41 = vpop.f32.mrf.mxu0 }
 0x1a4   :  { %v623_v42 = vpop.f32.mrf.mxu1 }
 0x1a5   :  { %v552_v43 = vpop.f32.mrf.mxu0  ;;  %v624_v16 = vadd.f32 %v623_v42, %v398_v39 }
 0x1a6   :  { %v5620_v44 = vpop.f32.mrf.mxu1  ;;  %v553_v10 = vadd.f32 %v552_v43, %v327_v34 }
 0x1a7   :  { %v554_v45 = vpop.f32.mrf.mxu0 }
 0x1a8   :  { %v555_v13 = vadd.f32 %v554_v45, %v329_v35 }
 0x1a9   :  { %v723_v46 = vpop.f32.mrf.mxu0  ;;  %v794_v47 = vpop.f32.mrf.mxu1 }
 0x1aa   :  { %v869_v17 = vadd.f32 %v723_v46, %v482_v9  ;;  %v871_v18 = vadd.f32 %v794_v47, %v553_v10 }
 0x1ab   :  { %v725_v48 = vpop.f32.mrf.mxu0  ;;  %v796_v49 = vpop.f32.mrf.mxu1 }
 0x1ac   :  { %v870_v21 = vadd.f32 %v725_v48, %v484_v12  ;;  %v872_v22 = vadd.f32 %v796_v49, %v555_v13 }
 0x1ad   :  { %v865_v50 = vpop.f32.mrf.mxu0  ;;  %v970_v51 = vpop.f32.mrf.mxu1 }
 0x1ae   :  { %v873_v23 = vadd.f32 %v865_v50, %v624_v16  ;;  %v1116_v24 = vadd.f32 %v970_v51, %v869_v17 }
 0x1af   :  { %v5625_v52 = vpop.f32.mrf.mxu0  ;;  %v972_v53 = vpop.f32.mrf.mxu1 }
 0x1b0   :  { %v1117_v27 = vadd.f32 %v972_v53, %v870_v21  ;;  %v2482_v21 = vld [vmem:[#allocation7 + $0xf8] sm:$0xff] }
 0x1b1   :  { %v1041_v54 = vpop.f32.mrf.mxu0  ;;  %v1112_v55 = vpop.f32.mrf.mxu1  ;;  %2610 = vmatprep.subr.mxu1 %v2482_v21  ;;  %v2521_v21 = vld [vmem:[#allocation7 + $0x230] sm:$0xff] }
 0x1b2   :  { %v1118_v25 = vadd.f32 %v1041_v54, %v871_v18  ;;  %v1120_v30 = vadd.f32 %v1112_v55, %v873_v23  ;;  %v2370_v55 = vpop.permute.xlu1 %2369  ;;  %v2480_v23 = vld [vmem:[#allocation7 + $0xe8] sm:$0xff] }
 0x1b3   :  { %v5630_v56 = vpop.f32.mrf.mxu1  ;;  %v1043_v57 = vpop.f32.mrf.mxu0 }
 0x1b4   :  { %v1119_v28 = vadd.f32 %v1043_v57, %v872_v22  ;;  %v2481_v22 = vld [vmem:[#allocation7 + $0xf0] sm:$0xff] }
 0x1b5   :  { %2611 = vmatpush1.msra.mxu1 %v2481_v22  ;;  %v2454_v22 = vld [vmem:[#allocation7 + $0x18] sm:$0xff] }
 0x1b6   :  { %2612 = vmatprep.subr.mxu1 %v2480_v23  ;;  %v2520_v23 = vld [vmem:[#allocation7 + $0x228] sm:$0xff] }
 0x1b8   :  { %v1217_v58 = vpop.f32.mrf.mxu0 }
 0x1b9   :  { %v1288_v60 = vpop.f32.mrf.mxu1  ;;  %v1363_v31 = vadd.f32 %v1217_v58, %v1116_v24  ;;  %v2479_v24 = vld [vmem:[#allocation7 + $0xe0] sm:$0xff] }
 0x1ba   :  { %v1219_v59 = vpop.f32.mrf.mxu0  ;;  %v1365_v32 = vadd.f32 %v1288_v60, %v1118_v25  ;;  %v2546_v25 = vld [vmem:[#allocation7 + $0x2f8] sm:$0xff]  ;;  %2613 = vmatpush1.msra.mxu1 %v2479_v24  ;;  %v2453_v24 = vld [vmem:[#allocation7 + $0x10] sm:$0xff] }
 0x1bb   :  { %v1290_v62 = vpop.f32.mrf.mxu1  ;;  %v1364_v35 = vadd.f32 %v1219_v59, %v1117_v27  ;;  %v2545_v27 = vld [vmem:[#allocation7 + $0x2f0] sm:$0xff]  ;;  %2681 = vmatprep.subr.mxu0 %v2546_v25  ;;  %v2519_v25 = vld [vmem:[#allocation7 + $0x220] sm:$0xff] }
 0x1bc   :  { %v1359_v61 = vpop.f32.mrf.mxu0  ;;  %v1366_v37 = vadd.f32 %v1290_v62, %v1119_v28  ;;  %v2381_v62 = vpop.permute.xlu0 %2380  ;;  %v2544_v28 = vld [vmem:[#allocation7 + $0x2e8] sm:$0xff]  ;;  %2682 = vmatpush1.msra.mxu0 %v2545_v27  ;;  %v2518_v27 = vld [vmem:[#allocation7 + $0x218] sm:$0xff] }
 0x1bd   :  { %v1367_v39 = vadd.f32 %v1359_v61, %v1120_v30  ;;  %v2543_v30 = vld [vmem:[#allocation7 + $0x2e0] sm:$0xff]  ;;  %2683 = vmatprep.subr.mxu0 %v2544_v28 }
 0x1be   :  { %v5635_v63 = vpop.f32.mrf.mxu0  ;;  %2684 = vmatpush1.msra.mxu0 %v2543_v30  ;;  %v2451_v28 = vld [vmem:[#allocation7] sm:$0xff]  ;;  %v2514_v30 = vld [vmem:[#allocation7 + $0x1f8] sm:$0xff] }
 0x1c0   :  { %v1464_v1 = vpop.f32.mrf.mxu1 }
 0x1c1   :  { %v1610_v36 = vadd.f32 %v1464_v1, %v1363_v31  ;;  %v2476_v31 = vld [vmem:[#allocation7 + $0xc8] sm:$0xff] }
 0x1c2   :  { %v1466_v2 = vpop.f32.mrf.mxu1 }
 0x1c3   :  { %v1611_v40 = vadd.f32 %v1466_v2, %v1364_v35  ;;  %v2474_v35 = vld [vmem:[#allocation7 + $0xb8] sm:$0xff] }
 0x1c4   :  { %v1606_v3 = vpop.f32.mrf.mxu1 }
 0x1c5   :  { %v1535_v5 = vpop.f32.mrf.mxu0  ;;  %v1614_v45 = vadd.f32 %v1606_v3, %v1367_v39  ;;  %v2472_v39 = vld [vmem:[#allocation7 + $0xa8] sm:$0xff] }
 0x1c6   :  { %v5640_v4 = vpop.f32.mrf.mxu1  ;;  %v1612_v38 = vadd.f32 %v1535_v5, %v1365_v32  ;;  %v2542_v32 = vld [vmem:[#allocation7 + $0x2d8] sm:$0xff] }
 0x1c7   :  { %v1537_v6 = vpop.f32.mrf.mxu0  ;;  %2685 = vmatprep.subr.mxu0 %v2542_v32  ;;  %v2513_v32 = vld [vmem:[#allocation7 + $0x1f0] sm:$0xff] }
 0x1c8   :  { %v1613_v42 = vadd.f32 %v1537_v6, %v1366_v37  ;;  %v2473_v37 = vld [vmem:[#allocation7 + $0xb0] sm:$0xff] }
 0x1cc   :  { %v1715_v7 = vpop.f32.mrf.mxu0 }
 0x1cd   :  { %v1786_v8 = vpop.f32.mrf.mxu1  ;;  %v1861_v41 = vadd.f32 %v1715_v7, %v1610_v36  ;;  %v2540_v36 = vld [vmem:[#allocation7 + $0x2c8] sm:$0xff] }
 0x1ce   :  { %v1717_v11 = vpop.f32.mrf.mxu0  ;;  %v1863_v43 = vadd.f32 %v1786_v8, %v1612_v38  ;;  %v2539_v38 = vld [vmem:[#allocation7 + $0x2c0] sm:$0xff] }
 0x1cf   :  { %v1788_v14 = vpop.f32.mrf.mxu1  ;;  %v1862_v46 = vadd.f32 %v1717_v11, %v1611_v40  ;;  %v2538_v40 = vld [vmem:[#allocation7 + $0x2b8] sm:$0xff] }
 0x1d0   :  { %v1864_v48 = vadd.f32 %v1788_v14, %v1613_v42  ;;  %v2537_v42 = vld [vmem:[#allocation7 + $0x2b0] sm:$0xff] }
 0x1d4   :  { %v1857_v15 = vpop.f32.mrf.mxu0  ;;  %v1965_v19 = vpop.f32.mrf.mxu1 }
 0x1d5   :  { %v2111_v47 = vadd.f32 %v1965_v19, %v1861_v41  ;;  %v1865_v51 = vadd.f32 %v1857_v15, %v1614_v45  ;;  %v2471_v41 = vld [vmem:[#allocation7 + $0xa0] sm:$0xff]  ;;  %v2469_v45 = vld [vmem:[#allocation7 + $0x90] sm:$0xff] }
 0x1d6   :  { %v5645_v20 = vpop.f32.mrf.mxu0  ;;  %v1967_v26 = vpop.f32.mrf.mxu1 }
 0x1d7   :  { %v2112_v52 = vadd.f32 %v1967_v26, %v1862_v46  ;;  %v2478_v26 = vld [vmem:[#allocation7 + $0xd8] sm:$0xff]  ;;  %v2535_v46 = vld [vmem:[#allocation7 + $0x2a0] sm:$0xff] }
 0x1d8   :  { %2614 = vmatprep.subr.mxu1 %v2478_v26  ;;  %v2452_v26 = vld [vmem:[#allocation7 + $0x8] sm:$0xff] }
 0x1d9   :  { %v2036_v33 = vpop.f32.mrf.mxu0 }
 0x1da   :  { %v2113_v49 = vadd.f32 %v2036_v33, %v1863_v43  ;;  %v2475_v33 = vld [vmem:[#allocation7 + $0xc0] sm:$0xff]  ;;  %v2470_v43 = vld [vmem:[#allocation7 + $0x98] sm:$0xff] }
 0x1db   :  { %v2038_v44 = vpop.f32.mrf.mxu0 }
 0x1dc   :  { %v2107_v29 = vpop.f32.mrf.mxu1  ;;  %v2114_v56 = vadd.f32 %v2038_v44, %v1864_v48  ;;  %v2536_v44 = vld [vmem:[#allocation7 + $0x2a8] sm:$0xff]  ;;  %v2534_v48 = vld [vmem:[#allocation7 + $0x298] sm:$0xff] }
 0x1dd   :  { %v2115_v59 = vadd.f32 %v2107_v29, %v1865_v51  ;;  %v2477_v29 = vld [vmem:[#allocation7 + $0xd0] sm:$0xff]  ;;  %v2466_v51 = vld [vmem:[#allocation7 + $0x78] sm:$0xff] }
 0x1de   :  { %v5650_v34 = vpop.f32.mrf.mxu1  ;;  %2615 = vmatpush1.msra.mxu1 %v2477_v29  ;;  %v2517_v29 = vld [vmem:[#allocation7 + $0x210] sm:$0xff] }
 0x1df   :  { %v2541_v34 = vld [vmem:[#allocation7 + $0x2d0] sm:$0xff]  ;;  %2616 = vmatprep.subr.mxu1 %v2476_v31  ;;  %v2516_v31 = vld [vmem:[#allocation7 + $0x208] sm:$0xff] }
 0x1e0   :  { %2617 = vmatpush1.msra.mxu1 %v2475_v33  ;;  %2686 = vmatpush1.msra.mxu0 %v2541_v34  ;;  %v2515_v33 = vld [vmem:[#allocation7 + $0x200] sm:$0xff]  ;;  %v2512_v34 = vld [vmem:[#allocation7 + $0x1e8] sm:$0xff] }
 0x1e1   :  { %2618 = vmatprep.subr.mxu1 %v2474_v35  ;;  %2687 = vmatprep.subr.mxu0 %v2540_v36  ;;  %v2578_v35 = vld [vmem:[#allocation7 + $0x3f8] sm:$0xff]  ;;  %v2511_v36 = vld [vmem:[#allocation7 + $0x1e0] sm:$0xff] }
 0x1e2   :  { %2619 = vmatpush1.msra.mxu1 %v2473_v37  ;;  %2688 = vmatpush1.msra.mxu0 %v2539_v38  ;;  %v2577_v37 = vld [vmem:[#allocation7 + $0x3f0] sm:$0xff]  ;;  %v2510_v38 = vld [vmem:[#allocation7 + $0x1d8] sm:$0xff] }
 0x1e3   :  { %2620 = vmatprep.subr.mxu1 %v2472_v39  ;;  %2689 = vmatprep.subr.mxu0 %v2538_v40  ;;  %v2576_v39 = vld [vmem:[#allocation7 + $0x3e8] sm:$0xff]  ;;  %v2509_v40 = vld [vmem:[#allocation7 + $0x1d0] sm:$0xff] }
 0x1e4   :  { %v2215_v50 = vpop.f32.mrf.mxu0  ;;  %2621 = vmatpush1.msra.mxu1 %v2471_v41  ;;  %2690 = vmatpush1.msra.mxu0 %v2537_v42  ;;  %v2575_v41 = vld [vmem:[#allocation7 + $0x3e0] sm:$0xff]  ;;  %v2508_v42 = vld [vmem:[#allocation7 + $0x1c8] sm:$0xff] }
 0x1e5   :  { %v2361_v53 = vadd.f32 %v2215_v50, %v2111_v47  ;;  %v2286_v54 = vpop.f32.mrf.mxu1  ;;  %v2468_v47 = vld [vmem:[#allocation7 + $0x88] sm:$0xff]  ;;  %2622 = vmatprep.subr.mxu1 %v2470_v43  ;;  %2691 = vmatprep.subr.mxu0 %v2536_v44  ;;  %v2533_v50 = vld [vmem:[#allocation7 + $0x290] sm:$0xff]  ;;  %v2574_v43 = vld [vmem:[#allocation7 + $0x3d8] sm:$0xff] }
 0x1e6   :  { %v2363_v57 = vadd.f32 %v2286_v54, %v2113_v49  ;;  %v2217_v58 = vpop.f32.mrf.mxu0  ;;  %v2467_v49 = vld [vmem:[#allocation7 + $0x80] sm:$0xff]  ;;  %2623 = vmatpush1.msra.mxu1 %v2469_v45  ;;  %2692 = vmatpush1.msra.mxu0 %v2535_v46  ;;  %v2573_v45 = vld [vmem:[#allocation7 + $0x3d0] sm:$0xff]  ;;  %v2506_v46 = vld [vmem:[#allocation7 + $0x1b8] sm:$0xff] }
 0x1e7   :  { %v2362_v60 = vadd.f32 %v2217_v58, %v2112_v52  ;;  %v2288_v61 = vpop.f32.mrf.mxu1  ;;  %v2372_v5 = vmul.f32 %v2370_v55, %v2361_v53  ;;  %v2532_v52 = vld [vmem:[#allocation7 + $0x288] sm:$0xff]  ;;  %2624 = vmatprep.subr.mxu1 %v2468_v47  ;;  %2693 = vmatprep.subr.mxu0 %v2534_v48  ;;  %v2465_v53 = vld [vmem:[#allocation7 + $0x70] sm:$0xff]  ;;  %v2531_v54 = vld [vmem:[#allocation7 + $0x280] sm:$0xff] }
 0x1e8   :  { %v2364_v63 = vadd.f32 %v2288_v61, %v2114_v56  ;;  %v2357_v1 = vpop.f32.mrf.mxu0  ;;  %v2374_v2 = vmul.f32 %v2370_v55, %v2363_v57  ;;  %2625 = vmatpush1.msra.mxu1 %v2467_v49  ;;  %2694 = vmatpush1.msra.mxu0 %v2533_v50  ;;  %v2530_v56 = vld [vmem:[#allocation7 + $0x278] sm:$0xff]  ;;  %v2463_v57 = vld [vmem:[#allocation7 + $0x60] sm:$0xff]  ;;  %v2529_v58 = vld [vmem:[#allocation7 + $0x270] sm:$0xff] }
 0x1e9   :  { %v2373_v3 = vmul.f32 %v2370_v55, %v2362_v60  ;;  %v2365_v4 = vadd.f32 %v2357_v1, %v2115_v59  ;;  %v6431_v15 = vadd.f32 %v2381_v62, %v2372_v5  ;;  %2626 = vmatprep.subr.mxu1 %v2466_v51  ;;  %2695 = vmatprep.subr.mxu0 %v2532_v52  ;;  %v2462_v59 = vld [vmem:[#allocation7 + $0x58] sm:$0xff]  ;;  %v2528_v60 = vld [vmem:[#allocation7 + $0x268] sm:$0xff]  ;;  %v2461_v61 = vld [vmem:[#allocation7 + $0x50] sm:$0xff] }
 0x1ea   :  { %v2375_v6 = vmul.f32 %v2370_v55, %v2364_v63  ;;  %v6421_v7 = vadd.f32 %v2381_v62, %v2374_v2  ;;  %v5655_v8 = vpop.f32.mrf.mxu0  ;;  %2627 = vmatpush1.msra.mxu1 %v2465_v53  ;;  %2696 = vmatpush1.msra.mxu0 %v2531_v54  ;;  %v2460_v63 = vld [vmem:[#allocation7 + $0x48] sm:$0xff]  ;;  %v2526_v1 = vld [vmem:[#allocation7 + $0x258] sm:$0xff]  ;;  %v2459_v2 = vld [vmem:[#allocation7 + $0x40] sm:$0xff] }
 0x1eb   :  { %v2376_v9 = vmul.f32 %v2370_v55, %v2365_v4  ;;  %v6423_v10 = vadd.f32 %v2381_v62, %v2373_v3  ;;  %v2388_v19 = vmax.f32 %v6431_v15, 0.0  ;;  %v2464_v55 = vld [vmem:[#allocation7 + $0x68] sm:$0xff]  ;;  %2697 = vmatprep.subr.mxu0 %v2530_v56  ;;  %v2525_v3 = vld [vmem:[#allocation7 + $0x250] sm:$0xff]  ;;  %v2458_v4 = vld [vmem:[#allocation7 + $0x38] sm:$0xff] }
 0x1ec   :  { %v2390_v11 = vmax.f32 %v6421_v7, 0.0  ;;  %v6426_v12 = vadd.f32 %v2381_v62, %v2375_v6  ;;  %2628 = vmatprep.subr.mxu1 %v2464_v55  ;;  %2698 = vmatpush1.msra.mxu0 %v2529_v58  ;;  %v2524_v5 = vld [vmem:[#allocation7 + $0x248] sm:$0xff]  ;;  %v2457_v6 = vld [vmem:[#allocation7 + $0x30] sm:$0xff]  ;;  %v2523_v8 = vld [vmem:[#allocation7 + $0x240] sm:$0xff] }
 0x1ed   :  { %v6428_v13 = vadd.f32 %v2381_v62, %v2376_v9  ;;  %v2389_v14 = vmax.f32 %v6423_v10, 0.0  ;;  %v2527_v62 = vld [vmem:[#allocation7 + $0x260] sm:$0xff]  ;;  %2629 = vmatpush1.msra.mxu1 %v2463_v57  ;;  %2699 = vmatprep.subr.mxu0 %v2528_v60  ;;  %v2456_v9 = vld [vmem:[#allocation7 + $0x28] sm:$0xff]  ;;  %v2505_v48 = vld [vmem:[#allocation7 + $0x1b0] sm:$0xff] }
 0x1ee   :  { %v2391_v18 = vmax.f32 %v6426_v12, 0.0  ;;  %2630 = vmatprep.subr.mxu1 %v2462_v59  ;;  %2700 = vmatpush1.msra.mxu0 %v2527_v62  ;;  %v2507_v44 = vld [vmem:[#allocation7 + $0x1c0] sm:$0xff]  ;;  %v2572_v47 = vld [vmem:[#allocation7 + $0x3c8] sm:$0xff]  ;;  %v2570_v51 = vld [vmem:[#allocation7 + $0x3b8] sm:$0xff] }
 0x1ef   :  { %v2392_v16 = vmax.f32 %v6428_v13, 0.0  ;;  %v5825_v17 = vpack.i.bf16 %v2390_v11, %v2389_v14  ;;  %2631 = vmatpush1.msra.mxu1 %v2461_v61  ;;  %2701 = vmatprep.subr.mxu0 %v2526_v1  ;;  %v2571_v49 = vld [vmem:[#allocation7 + $0x3c0] sm:$0xff]  ;;  %v2504_v50 = vld [vmem:[#allocation7 + $0x1a8] sm:$0xff]  ;;  %v2569_v53 = vld [vmem:[#allocation7 + $0x3b0] sm:$0xff] }
 0x1f0   :  { %v5830_v20 = vpack.i.bf16 %v2388_v19, %v2391_v18  ;;  %2632 = vmatprep.subr.mxu1 %v2460_v63  ;;  %2702 = vmatpush1.msra.mxu0 %v2525_v3  ;;  %v2503_v52 = vld [vmem:[#allocation7 + $0x1a0] sm:$0xff]  ;;  %v2502_v54 = vld [vmem:[#allocation7 + $0x198] sm:$0xff]  ;;  %v2568_v55 = vld [vmem:[#allocation7 + $0x3a8] sm:$0xff] }
 0x1f1   :  { %2406 = vrot.lane.b32.xlu0 %v2392_v16, %s6003_s27  ;;  %5826 = vrot.lane.b32.xlu1 %v5825_v17, %s6003_s27  ;;  %v2522_v17 = vld [vmem:[#allocation7 + $0x238] sm:$0xff]  ;;  %v2501_v56 = vld [vmem:[#allocation7 + $0x190] sm:$0xff]  ;;  %v2567_v57 = vld [vmem:[#allocation7 + $0x3a0] sm:$0xff] }
 0x1f2   :  { %2633 = vmatpush1.msra.mxu1 %v2459_v2  ;;  %2703 = vmatprep.subr.mxu0 %v2524_v5  ;;  %v2500_v58 = vld [vmem:[#allocation7 + $0x188] sm:$0xff]  ;;  %v2566_v59 = vld [vmem:[#allocation7 + $0x398] sm:$0xff]  ;;  %v2499_v60 = vld [vmem:[#allocation7 + $0x180] sm:$0xff] }
 0x1f3   :  { %2634 = vmatprep.subr.mxu1 %v2458_v4  ;;  %2704 = vmatpush1.msra.mxu0 %v2523_v8  ;;  %v2565_v61 = vld [vmem:[#allocation7 + $0x390] sm:$0xff]  ;;  %v2498_v62 = vld [vmem:[#allocation7 + $0x178] sm:$0xff]  ;;  %v2564_v63 = vld [vmem:[#allocation7 + $0x388] sm:$0xff] }
 0x1f4   :  { %2635 = vmatpush1.msra.mxu1 %v2457_v6  ;;  %2705 = vmatprep.subr.mxu0 %v2522_v17  ;;  %v2497_v1 = vld [vmem:[#allocation7 + $0x170] sm:$0xff]  ;;  %v2563_v2 = vld [vmem:[#allocation7 + $0x380] sm:$0xff]  ;;  %v2496_v3 = vld [vmem:[#allocation7 + $0x168] sm:$0xff] }
 0x1f5   :  { %5831 = vrot.lane.b32.xlu1 %v5830_v20, %s6003_s27  ;;  %v2455_v20 = vld [vmem:[#allocation7 + $0x20] sm:$0xff]  ;;  %2636 = vmatprep.subr.mxu1 %v2456_v9  ;;  %v2562_v4 = vld [vmem:[#allocation7 + $0x378] sm:$0xff]  ;;  %v2561_v6 = vld [vmem:[#allocation7 + $0x370] sm:$0xff] }
 0x1f6   :  { %2637 = vmatpush1.msra.mxu1 %v2455_v20  ;;  %2706 = vmatpush1.msra.mxu0 %v2521_v21  ;;  %v2495_v5 = vld [vmem:[#allocation7 + $0x160] sm:$0xff]  ;;  %v2494_v8 = vld [vmem:[#allocation7 + $0x158] sm:$0xff]  ;;  %v2560_v9 = vld [vmem:[#allocation7 + $0x368] sm:$0xff] }
 0x1f7   :  { %2638 = vmatprep.subr.mxu1 %v2454_v22  ;;  %2707 = vmatprep.subr.mxu0 %v2520_v23  ;;  %v2493_v17 = vld [vmem:[#allocation7 + $0x150] sm:$0xff]  ;;  %v2559_v20 = vld [vmem:[#allocation7 + $0x360] sm:$0xff]  ;;  %v2492_v21 = vld [vmem:[#allocation7 + $0x148] sm:$0xff] }
 0x1f8   :  { %2639 = vmatpush1.msra.mxu1 %v2453_v24  ;;  %2708 = vmatpush1.msra.mxu0 %v2519_v25  ;;  %v2558_v22 = vld [vmem:[#allocation7 + $0x358] sm:$0xff]  ;;  %v2491_v23 = vld [vmem:[#allocation7 + $0x140] sm:$0xff]  ;;  %v2557_v24 = vld [vmem:[#allocation7 + $0x350] sm:$0xff] }
 0x1f9   :  { %2640 = vmatprep.subr.mxu1 %v2452_v26  ;;  %2709 = vmatprep.subr.mxu0 %v2518_v27  ;;  %v2490_v25 = vld [vmem:[#allocation7 + $0x138] sm:$0xff]  ;;  %v2489_v26 = vld [vmem:[#allocation7 + $0x130] sm:$0xff]  ;;  %v2556_v27 = vld [vmem:[#allocation7 + $0x348] sm:$0xff] }
 0x1fa   :  { %2641 = vmatpush1.msra.mxu1 %v2451_v28  ;;  %2710 = vmatpush1.msra.mxu0 %v2517_v29  ;;  %v2488_v28 = vld [vmem:[#allocation7 + $0x128] sm:$0xff]  ;;  %v2555_v29 = vld [vmem:[#allocation7 + $0x340] sm:$0xff]  ;;  %v2597_v12 = vld [vmem:[#allocation7 + $0x490] sm:$0x7f] }
 0x1fb   :  { %2642 = vmatprep.subr.mxu1 %v2514_v30  ;;  %2711 = vmatprep.subr.mxu0 %v2516_v31  ;;  %v2487_v30 = vld [vmem:[#allocation7 + $0x120] sm:$0xff]  ;;  %v2554_v31 = vld [vmem:[#allocation7 + $0x338] sm:$0xff] }
 0x1fc   :  { %2643 = vmatpush2.msra.mxu1 %v2513_v32  ;;  %2712 = vmatpush1.msra.mxu0 %v2515_v33  ;;  %v2486_v33 = vld [vmem:[#allocation7 + $0x118] sm:$0xff] }
 0x1fd   :  { %2644 = vmatprep.subr.mxu1 %v2512_v34  ;;  %2713 = vmatprep.subr.mxu0 %v2578_v35  ;;  %v2553_v34 = vld [vmem:[#allocation7 + $0x330] sm:$0xff] }
 0x1fe   :  { %2645 = vmatpush2.msra.mxu1 %v2511_v36  ;;  %2714 = vmatpush2.msra.mxu0 %v2577_v37  ;;  %v2485_v37 = vld [vmem:[#allocation7 + $0x110] sm:$0xff] }
 0x1ff   :  { %2646 = vmatprep.subr.mxu1 %v2510_v38  ;;  %2715 = vmatprep.subr.mxu0 %v2576_v39  ;;  %v2552_v38 = vld [vmem:[#allocation7 + $0x328] sm:$0xff] }
 0x200   :  { %2647 = vmatpush2.msra.mxu1 %v2509_v40  ;;  %2716 = vmatpush2.msra.mxu0 %v2575_v41  ;;  %v2484_v39 = vld [vmem:[#allocation7 + $0x108] sm:$0xff]  ;;  %v2551_v40 = vld [vmem:[#allocation7 + $0x320] sm:$0xff] }
 0x201   :  { %2648 = vmatprep.subr.mxu1 %v2508_v42  ;;  %2717 = vmatprep.subr.mxu0 %v2574_v43  ;;  %v2483_v41 = vld [vmem:[#allocation7 + $0x100] sm:$0xff]  ;;  %v2550_v42 = vld [vmem:[#allocation7 + $0x318] sm:$0xff] }
 0x202   :  { %2649 = vmatpush2.msra.mxu1 %v2507_v44  ;;  %2718 = vmatpush2.msra.mxu0 %v2573_v45  ;;  %v2549_v44 = vld [vmem:[#allocation7 + $0x310] sm:$0xff]  ;;  %v2598_v45 = vld [vmem:[#allocation7 + $0x498] sm:$0x7f] }
 0x203   :  { %2650 = vmatprep.subr.mxu1 %v2506_v46  ;;  %2719 = vmatprep.subr.mxu0 %v2572_v47 }
 0x204   :  { %2651 = vmatpush2.msra.mxu1 %v2505_v48  ;;  %2720 = vmatpush2.msra.mxu0 %v2571_v49  ;;  %v2548_v49 = vld [vmem:[#allocation7 + $0x308] sm:$0xff] }
 0x205   :  { %2652 = vmatprep.subr.mxu1 %v2504_v50  ;;  %2721 = vmatprep.subr.mxu0 %v2570_v51  ;;  %v2547_v50 = vld [vmem:[#allocation7 + $0x300] sm:$0xff] }
 0x206   :  { %2653 = vmatpush2.msra.mxu1 %v2503_v52  ;;  %2722 = vmatpush2.msra.mxu0 %v2569_v53 }
 0x207   :  { %2654 = vmatprep.subr.mxu1 %v2502_v54  ;;  %2723 = vmatprep.subr.mxu0 %v2568_v55 }
 0x208   :  { %2655 = vmatpush2.msra.mxu1 %v2501_v56  ;;  %2724 = vmatpush2.msra.mxu0 %v2567_v57 }
 0x209   :  { %2656 = vmatprep.subr.mxu1 %v2500_v58  ;;  %2725 = vmatprep.subr.mxu0 %v2566_v59 }
 0x20a   :  { %2657 = vmatpush2.msra.mxu1 %v2499_v60  ;;  %2726 = vmatpush2.msra.mxu0 %v2565_v61 }
 0x20b   :  { %2658 = vmatprep.subr.mxu1 %v2498_v62  ;;  %2727 = vmatprep.subr.mxu0 %v2564_v63 }
 0x20c   :  { %2659 = vmatpush2.msra.mxu1 %v2497_v1  ;;  %2728 = vmatpush2.msra.mxu0 %v2563_v2 }
 0x20d   :  { %2660 = vmatprep.subr.mxu1 %v2496_v3  ;;  %2729 = vmatprep.subr.mxu0 %v2562_v4  ;;  %v2596_v3 = vld [vmem:[#allocation7 + $0x488] sm:$0xff]  ;;  %v2595_v4 = vld [vmem:[#allocation7 + $0x480] sm:$0xff] }
 0x20e   :  { %2661 = vmatpush2.msra.mxu1 %v2495_v5  ;;  %2730 = vmatpush2.msra.mxu0 %v2561_v6  ;;  %v2594_v5 = vld [vmem:[#allocation7 + $0x478] sm:$0xff]  ;;  %v2593_v6 = vld [vmem:[#allocation7 + $0x470] sm:$0xff] }
 0x20f   :  { %2662 = vmatprep.subr.mxu1 %v2494_v8  ;;  %2731 = vmatprep.subr.mxu0 %v2560_v9  ;;  %v2592_v8 = vld [vmem:[#allocation7 + $0x468] sm:$0xff]  ;;  %v2591_v9 = vld [vmem:[#allocation7 + $0x460] sm:$0xff] }
 0x210   :  { %2663 = vmatpush2.msra.mxu1 %v2493_v17  ;;  %2732 = vmatpush2.msra.mxu0 %v2559_v20  ;;  %v2590_v17 = vld [vmem:[#allocation7 + $0x458] sm:$0xff]  ;;  %v2589_v20 = vld [vmem:[#allocation7 + $0x450] sm:$0xff] }
 0x211   :  { %2664 = vmatprep.subr.mxu1 %v2492_v21  ;;  %2733 = vmatprep.subr.mxu0 %v2558_v22  ;;  %v2588_v21 = vld [vmem:[#allocation7 + $0x448] sm:$0xff]  ;;  %v2587_v22 = vld [vmem:[#allocation7 + $0x440] sm:$0xff] }
 0x212   :  { %2665 = vmatpush2.msra.mxu1 %v2491_v23  ;;  %2734 = vmatpush2.msra.mxu0 %v2557_v24  ;;  %v2586_v23 = vld [vmem:[#allocation7 + $0x438] sm:$0xff]  ;;  %v2585_v24 = vld [vmem:[#allocation7 + $0x430] sm:$0xff] }
 0x213   :  { %2666 = vmatprep.subr.mxu1 %v2490_v25  ;;  %2735 = vmatprep.subr.mxu0 %v2556_v27  ;;  %v2584_v25 = vld [vmem:[#allocation7 + $0x428] sm:$0xff]  ;;  %v2582_v27 = vld [vmem:[#allocation7 + $0x418] sm:$0xff] }
 0x214   :  { %2667 = vmatpush2.msra.mxu1 %v2489_v26  ;;  %2736 = vmatpush2.msra.mxu0 %v2555_v29  ;;  %v2583_v26 = vld [vmem:[#allocation7 + $0x420] sm:$0xff]  ;;  %v2580_v29 = vld [vmem:[#allocation7 + $0x408] sm:$0xff] }
 0x215   :  { %2668 = vmatprep.subr.mxu1 %v2488_v28  ;;  %2737 = vmatprep.subr.mxu0 %v2554_v31  ;;  %v2581_v28 = vld [vmem:[#allocation7 + $0x410] sm:$0xff] }
 0x216   :  { %2669 = vmatpush2.msra.mxu1 %v2487_v30  ;;  %2738 = vmatpush2.msra.mxu0 %v2553_v34  ;;  %v2579_v30 = vld [vmem:[#allocation7 + $0x400] sm:$0xff] }
 0x217   :  { %2670 = vmatprep.subr.mxu1 %v2486_v33  ;;  %2739 = vmatprep.subr.mxu0 %v2552_v38 }
 0x218   :  { %2671 = vmatpush2.msra.mxu1 %v2485_v37  ;;  %2740 = vmatpush2.msra.mxu0 %v2551_v40 }
 0x219   :  { %2672 = vmatprep.subr.mxu1 %v2484_v39  ;;  %2741 = vmatprep.subr.mxu0 %v2550_v42  ;;  %v3688_v42 = vld [vmem:[%s6937_s5] sm:$0xff] }
 0x21a   :  { %2673 = vmatpush2.msra.mxu1 %v2483_v41  ;;  %2742 = vmatpush2.msra.mxu0 %v2549_v44  ;;  %v3689_v44 = vld [vmem:[%s6937_s5 + $0x8] sm:$0xff] }
 0x21b   :  { %5395 = vmatprep.subr.msk.mxu1 %vm2603_vm11, %v2598_v45  ;;  %2743 = vmatprep.subr.mxu0 %v2548_v49  ;;  %v3705_v45 = vld [vmem:[#allocation4 + $0x8] sm:$0xff] }
 0x21c   :  { %2744 = vmatpush2.msra.mxu0 %v2547_v50 }
 0x263   :  { %v5827_v32 = vpop.permute.xlu1 %5826  ;;  %v2407_v56 = vpop.permute.xlu0 %2406 }
 0x264   :  { %v5829_v35 = vunpack.i.h.bf16 %v5827_v32  ;;  %v5828_v36 = vunpack.i.l.bf16 %v5827_v32  ;;  %v6463_v59 = vmax.f32 %v2392_v16, %v2407_v56 }
 0x266   :  { %v2409_v46 = vsel %vm170_vm0, %v5828_v36, %v5829_v35 }
 0x267   :  { %v5832_v43 = vpop.permute.xlu1 %5831  ;;  %v2418_v54 = vmax.f32 %v2389_v14, %v2409_v46 }
 0x268   :  { %v5834_v47 = vunpack.i.h.bf16 %v5832_v43  ;;  %v5833_v48 = vunpack.i.l.bf16 %v5832_v43  ;;  %v3704_v43 = vld [vmem:[#allocation4] sm:$0xff] }
 0x26a   :  { %v2410_v51 = vsel %vm170_vm0, %v5829_v35, %v5833_v48  ;;  %v2408_v52 = vsel %vm170_vm0, %v5834_v47, %v5828_v36  ;;  %v2411_v58 = vsel %vm170_vm0, %v5833_v48, %v2407_v56  ;;  %v5398_v48 = vld [vmem:[%s6936_s4 + $0x10] sm:$0xff] }
 0x26b   :  { %v2417_v53 = vmax.f32 %v2388_v19, %v2408_v52  ;;  %v2419_v55 = vmax.f32 %v2390_v11, %v2410_v51  ;;  %v2420_v10 = vmax.f32 %v2391_v18, %v2411_v58  ;;  %v5399_v52 = vld [vmem:[%s6936_s4 + $0x18] sm:$0xff]  ;;  %v5408_v56 = vld [vmem:[%s6936_s4 + $0x30] sm:$0xff] }
 0x26d   :  { %2427 = vrot.lane.b32.xlu0 %v2417_v53, %s6005_s20  ;;  %v5835_v57 = vpack.i.bf16 %v2419_v55, %v2418_v54 }
 0x26f   :  { %5836 = vrot.lane.b32.xlu1 %v5835_v57, %s6005_s20 }
 0x271   :  { %2435 = vrot.lane.b32.xlu0 %v6463_v59, %s6005_s20 }
 0x273   :  { %2433 = vrot.lane.b32.xlu1 %v2420_v10, %s6005_s20  ;;  %s6013_s20 = smov 118  }
 0x2df   :  { %v2428_v7 = vpop.permute.xlu0 %2427 }
 0x2e1   :  { %v5837_v11 = vpop.permute.xlu1 %5836 }
 0x2e2   :  { %v5839_v14 = vunpack.i.h.bf16 %v5837_v11  ;;  %v5838_v15 = vunpack.i.l.bf16 %v5837_v11  ;;  %v5409_v11 = vld [vmem:[%s6936_s4 + $0x38] sm:$0xff] }
 0x2e3   :  { %v2436_v60 = vpop.permute.xlu0 %2435 }
 0x2e4   :  { %v2437_v19 = vsel %vm886_vm5, %v2428_v7, %v5838_v15  ;;  %v2438_v13 = vsel %vm886_vm5, %v5838_v15, %v5839_v14  ;;  %v2450_v31 = vmax.f32 %v6463_v59, %v2436_v60  ;;  %v2824_v7 = vld [vmem:[%s6936_s4 + $0x8] sm:$0xff] }
 0x2e5   :  { %v2446_v16 = vmax.f32 %v2417_v53, %v2437_v19  ;;  %v2434_v61 = vpop.permute.xlu1 %2433  ;;  %v2447_v62 = vmax.f32 %v2418_v54, %v2438_v13  ;;  %v5404_v19 = vld [vmem:[%s6936_s4 + $0x20] sm:$0xff]  ;;  %v5416_v13 = vld [vmem:[%s6936_s4 + $0x50] sm:$0xff] }
 0x2e6   :  { %v2439_v63 = vsel %vm886_vm5, %v5839_v14, %v2434_v61  ;;  %v2440_v1 = vsel %vm886_vm5, %v2434_v61, %v2436_v60  ;;  %vm3789_vm5 = vcmask 318464  }
 0x2e7   :  { %v2448_v18 = vmax.f32 %v2419_v55, %v2439_v63  ;;  %v2449_v2 = vmax.f32 %v2420_v10, %v2440_v1  ;;  %2674 = vmatprep.mubr.f32.mxu1 %v2447_v62  ;;  %v2823_v55 = vld [vmem:[%s6936_s4] sm:$0xff]  ;;  %v5405_v63 = vld [vmem:[%s6936_s4 + $0x28] sm:$0xff]  ;;  %v5417_v1 = vld [vmem:[%s6936_s4 + $0x58] sm:$0xff] }
 0x2e8   :  { %2675 = vmatmul.mubr.f32.vlgmr.msra.gmra.mxu1 %v2446_v16 }
 0x2e9   :  { %5396 = vmatpush1.msk.msra.mxu1 %vm2603_vm11, %v2597_v12  ;;  %2745 = vmatprep.mubr.f32.mxu0 %v2449_v2  ;;  %v5412_v2 = vld [vmem:[%s6936_s4 + $0x40] sm:$0xff] }
 0x2ea   :  { %2766 = vmatprep.subr.mxu1 %v2596_v3  ;;  %2746 = vmatmul.mubr.f32.vlgmr.msra.gmra.mxu0 %v2448_v18  ;;  %v5424_v3 = vld [vmem:[%s6936_s4 + $0x70] sm:$0xff] }
 0x2eb   :  { %2767 = vmatpush1.msra.mxu1 %v2595_v4  ;;  %2816 = vmatprep.mubr.f32.mxu1 %v6002_v0 }
 0x2ec   :  { %2768 = vmatprep.subr.mxu1 %v2594_v5  ;;  %2908 = vmatprep.mubr.f32.mxu0 %v6002_v0 }
 0x2ed   :  { %2769 = vmatpush1.msra.mxu1 %v2593_v6 }
 0x2ee   :  { %2770 = vmatprep.subr.mxu1 %v2592_v8  ;;  %v5413_v8 = vld [vmem:[%s6936_s4 + $0x48] sm:$0xff] }
 0x2ef   :  { %2771 = vmatpush1.msra.mxu1 %v2591_v9  ;;  %v5425_v9 = vld [vmem:[%s6936_s4 + $0x78] sm:$0xff] }
 0x2f0   :  { %2772 = vmatprep.subr.mxu1 %v2590_v17  ;;  %v5420_v17 = vld [vmem:[%s6936_s4 + $0x60] sm:$0xff] }
 0x2f1   :  { %2773 = vmatpush1.msra.mxu1 %v2589_v20 }
 0x2f2   :  { %2774 = vmatprep.subr.mxu1 %v2588_v21 }
 0x2f3   :  { %2775 = vmatpush1.msra.mxu1 %v2587_v22  ;;  %v5421_v22 = vld [vmem:[%s6936_s4 + $0x68] sm:$0xff] }
 0x2f4   :  { %2776 = vmatprep.subr.mxu1 %v2586_v23  ;;  %v5428_v23 = vld [vmem:[%s6936_s4 + $0x80] sm:$0xff] }
 0x2f5   :  { %2777 = vmatpush1.msra.mxu1 %v2585_v24  ;;  %v5429_v24 = vld [vmem:[%s6936_s4 + $0x88] sm:$0xff] }
 0x2f6   :  { %2778 = vmatprep.subr.mxu1 %v2584_v25 }
 0x2f7   :  { %2779 = vmatpush1.msra.mxu1 %v2583_v26 }
 0x2f8   :  { %2780 = vmatprep.subr.mxu1 %v2582_v27 }
 0x2f9   :  { %2781 = vmatpush1.msra.mxu1 %v2581_v28 }
 0x2fa   :  { %2782 = vmatprep.subr.mxu1 %v2580_v29 }
 0x2fb   :  { %2783 = vmatpush1.msra.mxu1 %v2579_v30 }
 0x2fc   :  { %5397 = vmatmul.mubr.msk.f32.vlgmr.msra.gmra.mxu1 %vm2599_vm12, %v2450_v31 }
 0x2fd   :  { %3182 = vmatprep.mubr.f32.mxu1 %v6002_v0 }
 0x3a8   :  { %v2676_v32 = vpop.f32.mrf.mxu1 }
 0x3aa   :  { %v2747_v33 = vpop.f32.mrf.mxu0  ;;  %v2678_v34 = vpop.f32.mrf.mxu1 }
 0x3ab   :  { %v2748_v36 = vadd.f32 %v2747_v33, %v2676_v32 }
 0x3ac   :  { %v2749_v35 = vpop.f32.mrf.mxu0 }
 0x3ad   :  { %v2750_v38 = vadd.f32 %v2749_v35, %v2678_v34 }
 0x3bc   :  { %v2818_v37 = vpop.f32.mrf.mxu1 }
 0x3bd   :  { %v2819_v39 = vadd.f32 %v2818_v37, %v2748_v36 }
 0x3be   :  { %v2820_v40 = vpop.f32.mrf.mxu1 }
 0x3bf   :  { %v2821_v41 = vadd.f32 %v2820_v40, %v2750_v38  ;;  %2830 = vrot.lane.b32.xlu1 %v2819_v39, %s6003_s27 }
 0x3c1   :  { %2832 = vrot.lane.b32.xlu0 %v2821_v41, %s6003_s27 }
 0x3c3   :  { %3007 = vrot.lane.b32.xlu1 %v2819_v39, %s6004_s1 }
 0x3c5   :  { %3009 = vrot.lane.b32.xlu0 %v2821_v41, %s6004_s1 }
 0x3c7   :  { %3104 = vrot.lane.b32.xlu1 %v2819_v39, %s6013_s20 }
 0x3c9   :  { %3106 = vrot.lane.b32.xlu0 %v2821_v41, %s6013_s20 }
 0x3cb   :  { %3202 = vrot.lane.b32.xlu1 %v2819_v39, %s6014_s6 }
 0x3cd   :  { %3204 = vrot.lane.b32.xlu0 %v2821_v41, %s6014_s6 }
 0x3cf   :  { %3300 = vrot.lane.b32.xlu1 %v2819_v39, %s6015_s25 }
 0x3d1   :  { %3302 = vrot.lane.b32.xlu0 %v2821_v41, %s6015_s25 }
 0x3d3   :  { %3398 = vrot.lane.b32.xlu1 %v2819_v39, %s6007_s22 }
 0x3d5   :  { %3400 = vrot.lane.b32.xlu0 %v2821_v41, %s6007_s22  ;;  %s6021_s22 = smov 115  }
 0x3d7   :  { %3495 = vrot.lane.b32.xlu1 %v2819_v39, %s6016_s29 }
 0x3d9   :  { %3497 = vrot.lane.b32.xlu0 %v2821_v41, %s6016_s29 }
 0x3db   :  { %3593 = vrot.lane.b32.xlu1 %v2819_v39, %s6017_s2 }
 0x3dd   :  { %3595 = vrot.lane.b32.xlu0 %v2821_v41, %s6017_s2 }
 0x3df   :  { %3692 = vperm.xlu1 %5823, %v3688_v42  }
 0x3e1   :  { %3708 = vperm.xlu0 %5824, %v3704_v43  }
 0x3e3   :  { %3697 = vperm.xlu1 %5823, %v3689_v44  }
 0x3e5   :  { %3713 = vperm.xlu0 %5824, %v3705_v45  }
 0x431   :  { %v2831_v46 = vpop.permute.xlu1 %2830 }
 0x433   :  { %v2833_v47 = vpop.permute.xlu0 %2832 }
 0x434   :  { %v2834_v49 = vsel %vm170_vm0, %v2831_v46, %v2833_v47  ;;  %2874 = vmatprep.subr.mxu0 %v2833_v47 }
 0x435   :  { %v3008_v50 = vpop.permute.xlu1 %3007  ;;  %2875 = vmatpush1.msra.mxu0 %v2834_v49 }
 0x436   :  { %5400 = vmatmul.mubr.msk.f32.vlgmr.msra.gmra.mxu0 %vm2837_vm13, %v5398_v48  ;;  %2957 = vmatprep.subr.mxu0 %v2821_v41 }
 0x437   :  { %2958 = vmatpush1.msra.mxu0 %v2819_v39  ;;  %v3010_v51 = vpop.permute.xlu0 %3009  ;;  %2914 = vmatprep.mubr.f32.mxu0 %v6002_v0 }
 0x438   :  { %3050 = vmatprep.subr.mxu0 %v3010_v51  ;;  %v3011_v59 = vsel %vm639_vm4, %v3008_v50, %v3010_v51  ;;  %vm3597_vm4 = vcmask 867328  }
 0x439   :  { %v3105_v53 = vpop.permute.xlu1 %3104 }
 0x43a   :  { %5401 = vmatmul.mubr.msk.f32.gmra.mxu0 %vm2837_vm13, %v5399_v52 }
 0x43b   :  { %v3107_v54 = vpop.permute.xlu0 %3106  ;;  %2991 = vmatprep.mubr.f32.mxu0 %v6002_v0 }
 0x43c   :  { %v3109_v57 = vsel %vm3108_vm14, %v3105_v53, %v3107_v54  ;;  %3148 = vmatprep.subr.mxu1 %v3107_v54 }
 0x43d   :  { %v3203_v58 = vpop.permute.xlu1 %3202  ;;  %3149 = vmatpush1.msra.mxu1 %v3109_v57 }
 0x43e   :  { %5402 = vmatmul.mubr.msk.f32.vlgmr.msra.gmra.mxu0 %vm2837_vm13, %v2823_v55  ;;  %5410 = vmatmul.mubr.msk.f32.vlgmr.msra.gmra.mxu1 %vm2837_vm13, %v5408_v56 }
 0x43f   :  { %3051 = vmatpush1.msra.mxu0 %v3011_v59  ;;  %v3205_v10 = vpop.permute.xlu0 %3204  ;;  %2997 = vmatprep.mubr.f32.mxu0 %v6002_v0 }
 0x440   :  { %3246 = vmatprep.subr.mxu0 %v3205_v10  ;;  %3188 = vmatprep.mubr.f32.mxu1 %v6002_v0  ;;  %v3207_v61 = vsel %vm3206_vm2, %v3203_v58, %v3205_v10 }
 0x441   :  { %v3301_v14 = vpop.permute.xlu1 %3300 }
 0x442   :  { %5403 = vmatmul.mubr.msk.f32.gmra.mxu0 %vm2837_vm13, %v2824_v7  ;;  %5411 = vmatmul.mubr.msk.f32.gmra.mxu1 %vm2837_vm13, %v5409_v11 }
 0x443   :  { %v3303_v15 = vpop.permute.xlu0 %3302  ;;  %3084 = vmatprep.mubr.f32.mxu0 %v6002_v0  ;;  %3378 = vmatprep.mubr.f32.mxu1 %v6002_v0 }
 0x444   :  { %v3305_v16 = vsel %vm3304_vm15, %v3301_v14, %v3303_v15  ;;  %3344 = vmatprep.subr.mxu1 %v3303_v15 }
 0x445   :  { %v3399_v60 = vpop.permute.xlu1 %3398  ;;  %3345 = vmatpush1.msra.mxu1 %v3305_v16 }
 0x446   :  { %5406 = vmatmul.mubr.msk.f32.vlgmr.msra.gmra.mxu0 %vm2837_vm13, %v5404_v19  ;;  %5418 = vmatmul.mubr.msk.f32.vlgmr.msra.gmra.mxu1 %vm2837_vm13, %v5416_v13 }
 0x447   :  { %3247 = vmatpush1.msra.mxu0 %v3207_v61  ;;  %v3401_v62 = vpop.permute.xlu0 %3400  ;;  %3090 = vmatprep.mubr.f32.mxu0 %v6002_v0 }
 0x448   :  { %3441 = vmatprep.subr.mxu0 %v3401_v62  ;;  %3384 = vmatprep.mubr.f32.mxu1 %v6002_v0  ;;  %v3402_v5 = vsel %vm1380_vm7, %v3399_v60, %v3401_v62  ;;  %vm5305_vm7 = vcmask 9216  }
 0x449   :  { %v3496_v12 = vpop.permute.xlu1 %3495 }
 0x44a   :  { %5407 = vmatmul.mubr.msk.f32.gmra.mxu0 %vm2837_vm13, %v5405_v63  ;;  %5419 = vmatmul.mubr.msk.f32.gmra.mxu1 %vm2837_vm13, %v5417_v1 }
 0x44b   :  { %v3498_v18 = vpop.permute.xlu0 %3497  ;;  %3280 = vmatprep.mubr.f32.mxu0 %v6002_v0  ;;  %3573 = vmatprep.mubr.f32.mxu1 %v6002_v0 }
 0x44c   :  { %v3500_v4 = vsel %vm3499_vm3, %v3496_v12, %v3498_v18  ;;  %3539 = vmatprep.subr.mxu1 %v3498_v18 }
 0x44d   :  { %3540 = vmatpush1.msra.mxu1 %v3500_v4  ;;  %v3594_v20 = vpop.permute.xlu1 %3593 }
 0x44e   :  { %5414 = vmatmul.mubr.msk.f32.vlgmr.msra.gmra.mxu0 %vm2837_vm13, %v5412_v2  ;;  %5426 = vmatmul.mubr.msk.f32.vlgmr.msra.gmra.mxu1 %vm2837_vm13, %v5424_v3 }
 0x44f   :  { %3442 = vmatpush1.msra.mxu0 %v3402_v5  ;;  %v3596_v6 = vpop.permute.xlu0 %3595  ;;  %3286 = vmatprep.mubr.f32.mxu0 %v6002_v0 }
 0x450   :  { %3637 = vmatprep.subr.mxu0 %v3596_v6  ;;  %3579 = vmatprep.mubr.f32.mxu1 %v6002_v0  ;;  %v3598_v21 = vsel %vm3597_vm4, %v3594_v20, %v3596_v6 }
 0x451   :  { %3799 = vmatprep.subr.mxu1 %v6002_v0 }
 0x452   :  { %5415 = vmatmul.mubr.msk.f32.gmra.mxu0 %vm2837_vm13, %v5413_v8  ;;  %5427 = vmatmul.mubr.msk.f32.gmra.mxu1 %vm2837_vm13, %v5425_v9 }
 0x453   :  { %3475 = vmatprep.mubr.f32.mxu0 %v6002_v0 }
 0x456   :  { %5422 = vmatmul.mubr.msk.f32.vlgmr.msra.gmra.mxu0 %vm2837_vm13, %v5420_v17 }
 0x457   :  { %3638 = vmatpush1.msra.mxu0 %v3598_v21  ;;  %3481 = vmatprep.mubr.f32.mxu0 %v6002_v0 }
 0x45a   :  { %5423 = vmatmul.mubr.msk.f32.gmra.mxu0 %vm2837_vm13, %v5421_v22  ;;  %v3693_v8 = vpop.permute.xlu1 %3692 }
 0x45b   :  { %3671 = vmatprep.mubr.f32.mxu0 %v6002_v0 }
 0x45c   :  { %v3709_v17 = vpop.permute.xlu0 %3708 }
 0x45e   :  { %5430 = vmatmul.mubr.msk.f32.vlgmr.msra.gmra.mxu0 %vm2837_vm13, %v5428_v23 }
 0x45f   :  { %3677 = vmatprep.mubr.f32.mxu0 %v6002_v0 }
 0x462   :  { %5431 = vmatmul.mubr.msk.f32.gmra.mxu0 %vm2837_vm13, %v5429_v24 }
 0x4f6   :  { %v2910_v25 = vpop.f32.mrf.mxu0 }
 0x4f8   :  { %v2912_v26 = vpop.f32.mrf.mxu0 }
 0x4fa   :  { %v2916_v27 = vpop.f32.mrf.mxu0 }
 0x4fc   :  { %v2918_v28 = vpop.f32.mrf.mxu0 }
 0x4fe   :  { %v2993_v29 = vpop.f32.mrf.mxu0  ;;  %v3184_v30 = vpop.f32.mrf.mxu1 }
 0x4ff   :  { %v2994_v42 = vadd.f32 %v2993_v29, %v2910_v25 }
 0x500   :  { %v2995_v31 = vpop.f32.mrf.mxu0  ;;  %v3186_v32 = vpop.f32.mrf.mxu1 }
 0x501   :  { %v2996_v45 = vadd.f32 %v2995_v31, %v2912_v26 }
 0x502   :  { %v2999_v33 = vpop.f32.mrf.mxu0  ;;  %v3190_v34 = vpop.f32.mrf.mxu1 }
 0x503   :  { %v3000_v48 = vadd.f32 %v2999_v33, %v2916_v27  ;;  %v3783_v33 = vld [vmem:[%s6943_s11 + $0x78] sm:$0xff] }
 0x504   :  { %v3001_v35 = vpop.f32.mrf.mxu0  ;;  %v3192_v36 = vpop.f32.mrf.mxu1  ;;  %3800 = vmatpush1.msra.mxu1 %v3783_v33  ;;  %v4898_v33 = vld [vmem:[#allocation6] sm:$0xff] }
 0x505   :  { %v3002_v52 = vadd.f32 %v3001_v35, %v2918_v28  ;;  %v3698_v35 = vpop.permute.xlu1 %3697  ;;  %3801 = vmatprep.subr.mxu1 %v6002_v0 }
 0x506   :  { %v3086_v37 = vpop.f32.mrf.mxu0  ;;  %v3380_v38 = vpop.f32.mrf.mxu1 }
 0x507   :  { %v3097_v46 = vadd.f32 %v3086_v37, %v2994_v42  ;;  %v3714_v42 = vpop.permute.xlu0 %3713 }
 0x508   :  { %v3088_v39 = vpop.f32.mrf.mxu0  ;;  %v3382_v40 = vpop.f32.mrf.mxu1 }
 0x509   :  { %v3098_v49 = vadd.f32 %v3088_v39, %v2996_v45  ;;  %v3195_v53 = vadd.f32 %v3184_v30, %v3097_v46  ;;  %v3780_v46 = vld [vmem:[%s6943_s11 + $0x60] sm:$0xff] }
 0x50a   :  { %v3092_v41 = vpop.f32.mrf.mxu0  ;;  %v3386_v44 = vpop.f32.mrf.mxu1 }
 0x50b   :  { %v3099_v54 = vadd.f32 %v3092_v41, %v3000_v48  ;;  %v3196_v56 = vadd.f32 %v3186_v32, %v3098_v49  ;;  %v3781_v41 = vld [vmem:[%s6943_s11 + $0x68] sm:$0xff]  ;;  %v3779_v49 = vld [vmem:[%s6943_s11 + $0x58] sm:$0xff] }
 0x50c   :  { %v3094_v43 = vpop.f32.mrf.mxu0  ;;  %v3388_v51 = vpop.f32.mrf.mxu1 }
 0x50d   :  { %v3100_v57 = vadd.f32 %v3094_v43, %v3002_v52  ;;  %v3197_v7 = vadd.f32 %v3190_v34, %v3099_v54  ;;  %v3782_v34 = vld [vmem:[%s6943_s11 + $0x70] sm:$0xff]  ;;  %v3777_v52 = vld [vmem:[%s6943_s11 + $0x48] sm:$0xff]  ;;  %v3775_v54 = vld [vmem:[%s6943_s11 + $0x38] sm:$0xff] }
 0x50e   :  { %v3282_v47 = vpop.f32.mrf.mxu0  ;;  %v3575_v10 = vpop.f32.mrf.mxu1  ;;  %3802 = vmatpush1.msra.mxu1 %v3782_v34  ;;  %v4901_v34 = vld [vmem:[#allocation6 + $0x18] sm:$0xff] }
 0x50f   :  { %v3293_v58 = vadd.f32 %v3282_v47, %v3195_v53  ;;  %v3198_v15 = vadd.f32 %v3192_v36, %v3100_v57  ;;  %3803 = vmatprep.subr.mxu1 %v6002_v0  ;;  %v3776_v53 = vld [vmem:[%s6943_s11 + $0x40] sm:$0xff] }
 0x510   :  { %v3284_v50 = vpop.f32.mrf.mxu0  ;;  %v3577_v60 = vpop.f32.mrf.mxu1  ;;  %3804 = vmatpush1.msra.mxu1 %v3781_v41  ;;  %v3772_v57 = vld [vmem:[%s6943_s11 + $0x20] sm:$0xff]  ;;  %v5437_v41 = vld [vmem:[%s6939_s7 + $0x30] sm:$0xff] }
 0x511   :  { %v3294_v11 = vadd.f32 %v3284_v50, %v3196_v56  ;;  %v3391_v19 = vadd.f32 %v3380_v38, %v3293_v58  ;;  %3805 = vmatprep.subr.mxu1 %v6002_v0  ;;  %v3773_v56 = vld [vmem:[%s6943_s11 + $0x28] sm:$0xff]  ;;  %v3771_v58 = vld [vmem:[%s6943_s11 + $0x18] sm:$0xff] }
 0x512   :  { %v3288_v55 = vpop.f32.mrf.mxu0  ;;  %v3581_v3 = vpop.f32.mrf.mxu1  ;;  %3806 = vmatpush1.msra.mxu1 %v3780_v46 }
 0x513   :  { %v3295_v13 = vadd.f32 %v3288_v55, %v3197_v7  ;;  %v3392_v61 = vadd.f32 %v3382_v40, %v3294_v11  ;;  %3807 = vmatprep.subr.mxu1 %v6002_v0  ;;  %v3774_v55 = vld [vmem:[%s6943_s11 + $0x30] sm:$0xff]  ;;  %v3768_v7 = vld [vmem:[%s6943_s11] sm:$0xff] }
 0x514   :  { %v3290_v59 = vpop.f32.mrf.mxu0  ;;  %v3583_v23 = vpop.f32.mrf.mxu1  ;;  %3808 = vmatpush1.msra.mxu1 %v3779_v49  ;;  %v3788_v11 = vld [vmem:[%s6943_s11 + $0xa0] sm:$0x7f]  ;;  %v3876_v49 = vld [vmem:[%s6939_s7 + $0x10] sm:$0xff] }
 0x515   :  { %v3296_v62 = vadd.f32 %v3290_v59, %v3198_v15  ;;  %v3393_v12 = vadd.f32 %v3386_v44, %v3295_v13  ;;  %3809 = vmatprep.subr.mxu1 %v6002_v0  ;;  %v3770_v59 = vld [vmem:[%s6943_s11 + $0x10] sm:$0xff]  ;;  %v3784_v13 = vld [vmem:[%s6943_s11 + $0x80] sm:$0xff] }
 0x516   :  { %v3477_v14 = vpop.f32.mrf.mxu0  ;;  %v3786_v15 = vld [vmem:[%s6943_s11 + $0x90] sm:$0xff] }
 0x517   :  { %v3488_v63 = vadd.f32 %v3477_v14, %v3391_v19  ;;  %v3394_v4 = vadd.f32 %v3388_v51, %v3296_v62  ;;  %v3778_v51 = vld [vmem:[%s6943_s11 + $0x50] sm:$0xff]  ;;  %v3787_v14 = vld [vmem:[%s6943_s11 + $0x98] sm:$0xff]  ;;  %v3785_v19 = vld [vmem:[%s6943_s11 + $0x88] sm:$0xff] }
 0x518   :  { %v3479_v16 = vpop.f32.mrf.mxu0  ;;  %3810 = vmatpush1.msra.mxu1 %v3778_v51  ;;  %v3877_v51 = vld [vmem:[%s6939_s7 + $0x18] sm:$0xff] }
 0x519   :  { %v3489_v18 = vadd.f32 %v3479_v16, %v3392_v61  ;;  %v3586_v5 = vadd.f32 %v3575_v10, %v3488_v63  ;;  %3811 = vmatprep.subr.mxu1 %v6002_v0  ;;  %v3769_v10 = vld [vmem:[%s6943_s11 + $0x8] sm:$0xff] }
 0x51a   :  { %v3483_v1 = vpop.f32.mrf.mxu0  ;;  %3812 = vmatpush1.msra.mxu1 %v3777_v52 }
 0x51b   :  { %v3490_v6 = vadd.f32 %v3483_v1, %v3393_v12  ;;  %v3587_v20 = vadd.f32 %v3577_v60, %v3489_v18  ;;  %3813 = vmatprep.subr.mxu1 %v6002_v0 }
 0x51c   :  { %v3485_v2 = vpop.f32.mrf.mxu0  ;;  %3814 = vmatpush1.msra.mxu1 %v3776_v53  ;;  %v5447_v53 = vld [vmem:[%s6939_s7 + $0x40] sm:$0xff] }
 0x51d   :  { %v3491_v21 = vadd.f32 %v3485_v2, %v3394_v4  ;;  %v3588_v25 = vadd.f32 %v3581_v3, %v3490_v6  ;;  %3815 = vmatprep.subr.mxu1 %v6002_v0 }
 0x51e   :  { %v3673_v9 = vpop.f32.mrf.mxu0  ;;  %3816 = vmatpush1.msra.mxu1 %v3775_v54 }
 0x51f   :  { %v3684_v22 = vadd.f32 %v3673_v9, %v3586_v5  ;;  %v3589_v29 = vadd.f32 %v3583_v23, %v3491_v21  ;;  %3817 = vmatprep.subr.mxu1 %v6002_v0  ;;  %v5435_v23 = vld [vmem:[%s6939_s7 + $0x20] sm:$0xff] }
 0x520   :  { %v3675_v24 = vpop.f32.mrf.mxu0  ;;  %3818 = vmatpush1.msra.mxu1 %v3774_v55  ;;  %v5448_v55 = vld [vmem:[%s6939_s7 + $0x48] sm:$0xff] }
 0x521   :  { %v3700_v26 = vmul.f32 %v3693_v8, %v3684_v22  ;;  %v3685_v27 = vadd.f32 %v3675_v24, %v3587_v20  ;;  %3819 = vmatprep.subr.mxu1 %v6002_v0 }
 0x522   :  { %v3679_v28 = vpop.f32.mrf.mxu0  ;;  %3820 = vmatpush1.msra.mxu1 %v3773_v56  ;;  %v5449_v56 = vld [vmem:[%s6939_s7 + $0x50] sm:$0xff] }
 0x523   :  { %v3701_v30 = vmul.f32 %v3693_v8, %v3685_v27  ;;  %v3686_v31 = vadd.f32 %v3679_v28, %v3588_v25  ;;  %v6589_v32 = vadd.f32 %v3709_v17, %v3700_v26  ;;  %3821 = vmatprep.subr.mxu1 %v6002_v0  ;;  %v5471_v28 = vld [vmem:[%s6939_s7 + $0xa0] sm:$0xff] }
 0x524   :  { %v3681_v36 = vpop.f32.mrf.mxu0  ;;  %3822 = vmatpush1.msra.mxu1 %v3772_v57 }
 0x525   :  { %v3702_v37 = vmul.f32 %v3698_v35, %v3686_v31  ;;  %v3687_v38 = vadd.f32 %v3681_v36, %v3589_v29  ;;  %v3720_v39 = vmax.f32 %v6589_v32, 0.0  ;;  %v6598_v40 = vadd.f32 %v3709_v17, %v3701_v30  ;;  %3823 = vmatprep.subr.mxu1 %v6002_v0  ;;  %v4871_v29 = vld [vmem:[%s6940_s8 + $0x8] sm:$0xff]  ;;  %v4899_v30 = vld [vmem:[#allocation6 + $0x8] sm:$0xff]  ;;  %v4873_v32 = vld [vmem:[%s6940_s8 + $0x18] sm:$0xff] }
 0x526   :  { %3824 = vmatpush1.msra.mxu1 %v3771_v58  ;;  %v4870_v31 = vld [vmem:[%s6940_s8] sm:$0xff]  ;;  %v4900_v36 = vld [vmem:[#allocation6 + $0x10] sm:$0xff] }
 0x527   :  { %v3703_v43 = vmul.f32 %v3698_v35, %v3687_v38  ;;  %3728 = vrot.lane.b32.xlu1 %v3720_v39, %s6003_s27  ;;  %v3721_v44 = vmax.f32 %v6598_v40, 0.0  ;;  %v6608_v45 = vadd.f32 %v3714_v42, %v3702_v37  ;;  %3825 = vmatprep.subr.mxu1 %v6002_v0  ;;  %v4872_v35 = vld [vmem:[%s6940_s8 + $0x10] sm:$0xff]  ;;  %v5436_v40 = vld [vmem:[%s6939_s7 + $0x28] sm:$0xff] }
 0x528   :  { %3826 = vmatpush1.msra.mxu1 %v3770_v59  ;;  %v5472_v58 = vld [vmem:[%s6939_s7 + $0xa8] sm:$0xff] }
 0x529   :  { %3730 = vrot.lane.b32.xlu0 %v3721_v44, %s6003_s27  ;;  %v3722_v47 = vmax.f32 %v6608_v45, 0.0  ;;  %v6618_v48 = vadd.f32 %v3714_v42, %v3703_v43  ;;  %3827 = vmatprep.subr.mxu1 %v6002_v0  ;;  %v3874_v45 = vld [vmem:[%s6939_s7] sm:$0xff] }
 0x52a   :  { %3828 = vmatpush1.msra.mxu1 %v3769_v10  ;;  %v5473_v10 = vld [vmem:[%s6939_s7 + $0xb0] sm:$0xff] }
 0x52b   :  { %3732 = vrot.lane.b32.xlu1 %v3722_v47, %s6003_s27  ;;  %v3723_v50 = vmax.f32 %v6618_v48, 0.0  ;;  %3829 = vmatprep.subr.mxu1 %v6002_v0  ;;  %v3875_v48 = vld [vmem:[%s6939_s7 + $0x8] sm:$0xff] }
 0x52c   :  { %3830 = vmatpush1.msra.mxu1 %v3768_v7  ;;  %v5450_v7 = vld [vmem:[%s6939_s7 + $0x58] sm:$0xff] }
 0x52d   :  { %3734 = vrot.lane.b32.xlu0 %v3723_v50, %s6003_s27  ;;  %3853 = vmatprep.subr.mxu1 %v6002_v0 }
 0x52e   :  { %5432 = vmatpush2.msk.msra.mxu1 %vm2603_vm11, %v3788_v11  ;;  %v5455_v11 = vld [vmem:[%s6939_s7 + $0x60] sm:$0xff] }
 0x52f   :  { %3855 = vmatprep.subr.mxu1 %v6002_v0 }
 0x530   :  { %3856 = vmatpush2.msra.mxu1 %v3787_v14 }
 0x531   :  { %3857 = vmatprep.subr.mxu1 %v6002_v0 }
 0x532   :  { %3858 = vmatpush2.msra.mxu1 %v3786_v15  ;;  %v5474_v15 = vld [vmem:[%s6939_s7 + $0xb8] sm:$0xff] }
 0x533   :  { %3859 = vmatprep.subr.mxu1 %v6002_v0 }
 0x534   :  { %3860 = vmatpush2.msra.mxu1 %v3785_v19  ;;  %v5456_v19 = vld [vmem:[%s6939_s7 + $0x68] sm:$0xff] }
 0x535   :  { %3861 = vmatprep.subr.mxu1 %v6002_v0 }
 0x536   :  { %3862 = vmatpush2.msra.mxu1 %v3784_v13 }
 0x599   :  { %v3729_v16 = vpop.permute.xlu1 %3728 }
 0x59b   :  { %v3731_v60 = vpop.permute.xlu0 %3730 }
 0x59c   :  { %v3736_v61 = vsel %vm170_vm0, %v3729_v16, %v3731_v60  ;;  %v3743_v62 = vmax.f32 %v3721_v44, %v3731_v60  ;;  %v5438_v44 = vld [vmem:[%s6939_s7 + $0x38] sm:$0xff]  ;;  %v5457_v16 = vld [vmem:[%s6939_s7 + $0x70] sm:$0xff]  ;;  %v5487_v60 = vld [vmem:[%s6939_s7 + $0xe0] sm:$0xff] }
 0x59d   :  { %v3742_v63 = vmax.f32 %v3720_v39, %v3736_v61  ;;  %v3733_v1 = vpop.permute.xlu1 %3732  ;;  %v5488_v61 = vld [vmem:[%s6939_s7 + $0xe8] sm:$0xff] }
 0x59e   :  { %3752 = vrot.lane.b32.xlu0 %v3743_v62, %s6013_s20 }
 0x59f   :  { %3750 = vrot.lane.b32.xlu1 %v3742_v63, %s6013_s20  ;;  %v3735_v12 = vpop.permute.xlu0 %3734 }
 0x5a0   :  { %v3737_v18 = vsel %vm170_vm0, %v3733_v1, %v3735_v12  ;;  %v3745_v0 = vmax.f32 %v3723_v50, %v3735_v12  ;;  %vm3891_vm0 = vcmask 130048   ;;  %v5489_v1 = vld [vmem:[%s6939_s7 + $0xf0] sm:$0xff]  ;;  %v5490_v12 = vld [vmem:[%s6939_s7 + $0xf8] sm:$0xff] }
 0x5a1   :  { %v3744_v2 = vmax.f32 %v3722_v47, %v3737_v18  ;;  %5660 = vmatprep.mubr.msk.f32.mxu0 %vm3891_vm0, %v5435_v23  ;;  %v5464_v18 = vld [vmem:[%s6939_s7 + $0x88] sm:$0xff] }
 0x5a2   :  { %3756 = vrot.lane.b32.xlu0 %v3745_v0, %s6013_s20 }
 0x5a3   :  { %3754 = vrot.lane.b32.xlu1 %v3744_v2, %s6013_s20  ;;  %s6018_s20 = smov 122  }
 0x610   :  { %v3753_v3 = vpop.permute.xlu0 %3752 }
 0x611   :  { %v3765_v4 = vmax.f32 %v3743_v62, %v3753_v3  ;;  %v3751_v5 = vpop.permute.xlu1 %3750  ;;  %v5458_v62 = vld [vmem:[%s6939_s7 + $0x78] sm:$0xff] }
 0x612   :  { %v3758_v6 = vsel %vm3108_vm14, %v3751_v5, %v3753_v3  ;;  %v5479_v3 = vld [vmem:[%s6939_s7 + $0xc0] sm:$0xff]  ;;  %v5480_v5 = vld [vmem:[%s6939_s7 + $0xc8] sm:$0xff] }
 0x613   :  { %v3764_v8 = vmax.f32 %v3742_v63, %v3758_v6  ;;  %5433 = vmatprep.mubr.msk.f32.mxu1 %vm3789_vm5, %v3765_v4  ;;  %v5463_v63 = vld [vmem:[%s6939_s7 + $0x80] sm:$0xff]  ;;  %v5481_v6 = vld [vmem:[%s6939_s7 + $0xd0] sm:$0xff] }
 0x614   :  { %v3757_v9 = vpop.permute.xlu0 %3756 }
 0x615   :  { %v3767_v17 = vmax.f32 %v3745_v0, %v3757_v9  ;;  %v3755_v20 = vpop.permute.xlu1 %3754  ;;  %3864 = vmatmul.mubr.f32.vlgmr.msra.gmra.mxu1 %v3764_v8  ;;  %v5465_v0 = vld [vmem:[%s6939_s7 + $0x90] sm:$0xff] }
 0x616   :  { %v3759_v21 = vsel %vm3108_vm14, %v3755_v20, %v3757_v9  ;;  %v5482_v9 = vld [vmem:[%s6939_s7 + $0xd8] sm:$0xff]  ;;  %v5496_v20 = vld [vmem:[%s6939_s7 + $0x108] sm:$0xff] }
 0x617   :  { %v3766_v22 = vmax.f32 %v3744_v2, %v3759_v21  ;;  %5434 = vmatprep.mubr.msk.f32.mxu1 %vm3789_vm5, %v3767_v17  ;;  %v5466_v2 = vld [vmem:[%s6939_s7 + $0x98] sm:$0xff]  ;;  %v5495_v17 = vld [vmem:[%s6939_s7 + $0x100] sm:$0xff]  ;;  %v5497_v21 = vld [vmem:[%s6939_s7 + $0x110] sm:$0xff] }
 0x619   :  { %3869 = vmatmul.mubr.f32.gmra.mxu1 %v3766_v22  ;;  %v5498_v22 = vld [vmem:[%s6939_s7 + $0x118] sm:$0xff] }
 0x61a   :  { %5710 = vmatprep.mubr.msk.f32.mxu1 %vm3891_vm0, %v5471_v28 }
 0x6d5   :  { %v3865_v24 = vpop.f32.mrf.mxu1 }
 0x6d6   :  { %3885 = vrot.lane.b32.xlu0 %v3865_v24, %s6003_s27 }
 0x6d7   :  { %v3867_v25 = vpop.f32.mrf.mxu1 }
 0x6d9   :  { %v3870_v26 = vpop.f32.mrf.mxu1 }
 0x6da   :  { %4091 = vrot.lane.b32.xlu0 %v3865_v24, %s6004_s1  ;;  %3887 = vrot.lane.b32.xlu1 %v3870_v26, %s6003_s27 }
 0x6db   :  { %v3872_v27 = vpop.f32.mrf.mxu1 }
 0x6de   :  { %4203 = vrot.lane.b32.xlu0 %v3865_v24, %s6018_s20  ;;  %4093 = vrot.lane.b32.xlu1 %v3870_v26, %s6004_s1  ;;  %s6022_s1 = smov 114  }
 0x6e2   :  { %4315 = vrot.lane.b32.xlu0 %v3865_v24, %s6019_s9  ;;  %4205 = vrot.lane.b32.xlu1 %v3870_v26, %s6018_s20 }
 0x6e6   :  { %4427 = vrot.lane.b32.xlu0 %v3865_v24, %s6020_s10  ;;  %4317 = vrot.lane.b32.xlu1 %v3870_v26, %s6019_s9 }
 0x6ea   :  { %4539 = vrot.lane.b32.xlu0 %v3865_v24, %s6015_s25  ;;  %4429 = vrot.lane.b32.xlu1 %v3870_v26, %s6020_s10 }
 0x6ee   :  { %4651 = vrot.lane.b32.xlu0 %v3865_v24, %s6021_s22  ;;  %4541 = vrot.lane.b32.xlu1 %v3870_v26, %s6015_s25 }
 0x6f2   :  { %4763 = vrot.lane.b32.xlu0 %v3865_v24, %s6022_s1  ;;  %4653 = vrot.lane.b32.xlu1 %v3870_v26, %s6021_s22 }
 0x6f6   :  { %4881 = vperm.xlu0 %5824, %v4871_v29   ;;  %4765 = vrot.lane.b32.xlu1 %v3870_v26, %s6022_s1 }
 0x6fa   :  { %4909 = vperm.xlu0 %5824, %v4899_v30   ;;  %4876 = vperm.xlu1 %5823, %v4870_v31  }
 0x6fe   :  { %4891 = vperm.xlu0 %5824, %v4873_v32   ;;  %4904 = vperm.xlu1 %5823, %v4898_v33  }
 0x702   :  { %4919 = vperm.xlu0 %5824, %v4901_v34   ;;  %4886 = vperm.xlu1 %5823, %v4872_v35  }
 0x706   :  { %4914 = vperm.xlu1 %5823, %v4900_v36  }
 0x748   :  { %v3886_v37 = vpop.permute.xlu0 %3885 }
 0x74c   :  { %v3888_v38 = vpop.permute.xlu1 %3887  ;;  %v4092_v39 = vpop.permute.xlu0 %4091 }
 0x74d   :  { %5656 = vmatprep.subr.mxu0 %v3888_v38 }
 0x74e   :  { %5657 = vmatpush3.msra.mxu0 %v3888_v38 }
 0x74f   :  { %5658 = vmatprep.subr.mxu0 %v3886_v37 }
 0x750   :  { %v4094_v42 = vpop.permute.xlu1 %4093  ;;  %5659 = vmatpush3.msra.mxu0 %v3886_v37  ;;  %v4204_v43 = vpop.permute.xlu0 %4203 }
 0x751   :  { %5661 = vmatmul.mubr.msk.f32.vlgmr.msra.gmra.mxu0 %vm3891_vm0, %v5436_v40  ;;  %5666 = vmatprep.subr.mxu0 %v3870_v26 }
 0x752   :  { %5667 = vmatpush3.msra.mxu0 %v3870_v26  ;;  %5663 = vmatprep.mubr.msk.f32.mxu0 %vm3891_vm0, %v5437_v41 }
 0x753   :  { %5668 = vmatprep.subr.mxu0 %v3865_v24 }
 0x754   :  { %v4206_v46 = vpop.permute.xlu1 %4205  ;;  %5669 = vmatpush3.msra.mxu0 %v3865_v24  ;;  %v4316_v47 = vpop.permute.xlu0 %4315 }
 0x755   :  { %5664 = vmatmul.mubr.msk.f32.gmra.mxu0 %vm3891_vm0, %v5438_v44  ;;  %5676 = vmatprep.subr.mxu0 %v4094_v42 }
 0x756   :  { %5670 = vmatprep.mubr.msk.f32.mxu0 %vm3891_vm0, %v3874_v45 }
 0x758   :  { %v4318_v50 = vpop.permute.xlu1 %4317  ;;  %v4428_v52 = vpop.permute.xlu0 %4427 }
 0x759   :  { %5671 = vmatmul.mubr.msk.f32.vlgmr.msra.gmra.mxu0 %vm3891_vm0, %v3875_v48 }
 0x75a   :  { %5677 = vmatpush3.msra.mxu0 %v4094_v42  ;;  %5673 = vmatprep.mubr.msk.f32.mxu0 %vm3891_vm0, %v3876_v49 }
 0x75b   :  { %5678 = vmatprep.subr.mxu0 %v4092_v39 }
 0x75c   :  { %5679 = vmatpush3.msra.mxu0 %v4092_v39  ;;  %v4430_v54 = vpop.permute.xlu1 %4429  ;;  %v4540_v59 = vpop.permute.xlu0 %4539 }
 0x75d   :  { %5686 = vmatprep.subr.mxu0 %v4206_v46  ;;  %5674 = vmatmul.mubr.msk.f32.gmra.mxu0 %vm3891_vm0, %v3877_v51 }
 0x75e   :  { %5706 = vmatprep.subr.mxu1 %v4430_v54  ;;  %5680 = vmatprep.mubr.msk.f32.mxu0 %vm3891_vm0, %v5447_v53 }
 0x75f   :  { %5707 = vmatpush3.msra.mxu1 %v4430_v54 }
 0x760   :  { %5708 = vmatprep.subr.mxu1 %v4428_v52  ;;  %v4542_v57 = vpop.permute.xlu1 %4541  ;;  %v4652_v13 = vpop.permute.xlu0 %4651 }
 0x761   :  { %5709 = vmatpush3.msra.mxu1 %v4428_v52  ;;  %5681 = vmatmul.mubr.msk.f32.vlgmr.msra.gmra.mxu0 %vm3891_vm0, %v5448_v55 }
 0x762   :  { %5687 = vmatpush3.msra.mxu0 %v4206_v46  ;;  %5683 = vmatprep.mubr.msk.f32.mxu0 %vm3891_vm0, %v5449_v56 }
 0x763   :  { %5688 = vmatprep.subr.mxu0 %v4204_v43  ;;  %5711 = vmatmul.mubr.msk.f32.vlgmr.msra.gmra.mxu1 %vm3891_vm0, %v5472_v58 }
 0x764   :  { %5689 = vmatpush3.msra.mxu0 %v4204_v43  ;;  %v4654_v14 = vpop.permute.xlu1 %4653  ;;  %5713 = vmatprep.mubr.msk.f32.mxu1 %vm3891_vm0, %v5473_v10  ;;  %v4764_v8 = vpop.permute.xlu0 %4763 }
 0x765   :  { %5696 = vmatprep.subr.mxu0 %v4318_v50  ;;  %5684 = vmatmul.mubr.msk.f32.gmra.mxu0 %vm3891_vm0, %v5450_v7 }
 0x766   :  { %5726 = vmatprep.subr.mxu1 %v4654_v14  ;;  %5690 = vmatprep.mubr.msk.f32.mxu0 %vm3891_vm0, %v5455_v11 }
 0x767   :  { %5727 = vmatpush3.msra.mxu1 %v4654_v14 }
 0x768   :  { %5728 = vmatprep.subr.mxu1 %v4652_v13  ;;  %5714 = vmatmul.mubr.msk.f32.gmra.mxu1 %vm3891_vm0, %v5474_v15  ;;  %v4766_v4 = vpop.permute.xlu1 %4765 }
 0x769   :  { %5729 = vmatpush3.msra.mxu1 %v4652_v13  ;;  %5691 = vmatmul.mubr.msk.f32.vlgmr.msra.gmra.mxu0 %vm3891_vm0, %v5456_v19 }
 0x76a   :  { %5697 = vmatpush3.msra.mxu0 %v4318_v50  ;;  %5693 = vmatprep.mubr.msk.f32.mxu0 %vm3891_vm0, %v5457_v16 }
 0x76b   :  { %5698 = vmatprep.subr.mxu0 %v4316_v47  ;;  %5730 = vmatprep.mubr.msk.f32.mxu1 %vm3891_vm0, %v5487_v60 }
 0x76c   :  { %5699 = vmatpush3.msra.mxu0 %v4316_v47  ;;  %5731 = vmatmul.mubr.msk.f32.vlgmr.msra.gmra.mxu1 %vm3891_vm0, %v5488_v61 }
 0x76d   :  { %5716 = vmatprep.subr.mxu0 %v4542_v57  ;;  %5694 = vmatmul.mubr.msk.f32.gmra.mxu0 %vm3891_vm0, %v5458_v62 }
 0x76e   :  { %5700 = vmatprep.mubr.msk.f32.mxu0 %vm3891_vm0, %v5463_v63  ;;  %5733 = vmatprep.mubr.msk.f32.mxu1 %vm3891_vm0, %v5489_v1 }
 0x770   :  { %5734 = vmatmul.mubr.msk.f32.gmra.mxu1 %vm3891_vm0, %v5490_v12 }
 0x771   :  { %5701 = vmatmul.mubr.msk.f32.vlgmr.msra.gmra.mxu0 %vm3891_vm0, %v5464_v18  ;;  %v4882_v52 = vpop.permute.xlu0 %4881 }
 0x772   :  { %5717 = vmatpush3.msra.mxu0 %v4542_v57  ;;  %5703 = vmatprep.mubr.msk.f32.mxu0 %vm3891_vm0, %v5465_v0 }
 0x773   :  { %5718 = vmatprep.subr.mxu0 %v4540_v59 }
 0x774   :  { %5719 = vmatpush3.msra.mxu0 %v4540_v59 }
 0x775   :  { %5736 = vmatprep.subr.mxu0 %v4766_v4  ;;  %5704 = vmatmul.mubr.msk.f32.gmra.mxu0 %vm3891_vm0, %v5466_v2  ;;  %v4877_v59 = vpop.permute.xlu1 %4876  ;;  %v4910_v61 = vpop.permute.xlu0 %4909 }
 0x776   :  { %5720 = vmatprep.mubr.msk.f32.mxu0 %vm3891_vm0, %v5479_v3 }
 0x779   :  { %5721 = vmatmul.mubr.msk.f32.vlgmr.msra.gmra.mxu0 %vm3891_vm0, %v5480_v5  ;;  %v4905_v18 = vpop.permute.xlu1 %4904 }
 0x77a   :  { %5737 = vmatpush3.msra.mxu0 %v4766_v4  ;;  %5723 = vmatprep.mubr.msk.f32.mxu0 %vm3891_vm0, %v5481_v6 }
 0x77b   :  { %5738 = vmatprep.subr.mxu0 %v4764_v8 }
 0x77c   :  { %5739 = vmatpush3.msra.mxu0 %v4764_v8 }
 0x77d   :  { %5724 = vmatmul.mubr.msk.f32.gmra.mxu0 %vm3891_vm0, %v5482_v9 }
 0x77e   :  { %5740 = vmatprep.mubr.msk.f32.mxu0 %vm3891_vm0, %v5495_v17  ;;  %v4892_v17 = vpop.permute.xlu0 %4891 }
 0x781   :  { %5741 = vmatmul.mubr.msk.f32.vlgmr.msra.gmra.mxu0 %vm3891_vm0, %v5496_v20 }
 0x782   :  { %5743 = vmatprep.mubr.msk.f32.mxu0 %vm3891_vm0, %v5497_v21 }
 0x785   :  { %5744 = vmatmul.mubr.msk.f32.gmra.mxu0 %vm3891_vm0, %v5498_v22 }
 0x811   :  { %v5662_v23 = vpop.f32.mrf.mxu0 }
 0x813   :  { %v3970_v24 = vpop.f32.mrf.mxu0 }
 0x815   :  { %v5665_v25 = vpop.f32.mrf.mxu0 }
 0x817   :  { %v3980_v26 = vpop.f32.mrf.mxu0 }
 0x819   :  { %v5672_v27 = vpop.f32.mrf.mxu0 }
 0x81a   :  { %v4073_v42 = vadd.f32 %v5672_v27, %v5662_v23 }
 0x81b   :  { %v4067_v28 = vpop.f32.mrf.mxu0 }
 0x81c   :  { %v4068_v44 = vadd.f32 %v4067_v28, %v3970_v24  ;;  %v4887_v28 = vpop.permute.xlu1 %4886 }
 0x81d   :  { %v5675_v29 = vpop.f32.mrf.mxu0 }
 0x81e   :  { %v4083_v48 = vadd.f32 %v5675_v29, %v5665_v25 }
 0x81f   :  { %v4077_v30 = vpop.f32.mrf.mxu0 }
 0x820   :  { %v4078_v53 = vadd.f32 %v4077_v30, %v3980_v26 }
 0x821   :  { %v5682_v31 = vpop.f32.mrf.mxu0 }
 0x822   :  { %v4195_v45 = vadd.f32 %v5682_v31, %v4073_v42 }
 0x823   :  { %v4175_v32 = vpop.f32.mrf.mxu0  ;;  %v5712_v35 = vpop.f32.mrf.mxu1 }
 0x824   :  { %v4194_v49 = vadd.f32 %v4175_v32, %v4068_v44 }
 0x825   :  { %v5685_v33 = vpop.f32.mrf.mxu0  ;;  %v4511_v38 = vpop.f32.mrf.mxu1 }
 0x826   :  { %v4197_v54 = vadd.f32 %v5685_v33, %v4083_v48  ;;  %v4975_v48 = vld [vmem:[%s6944_s12 + $0x28] sm:$0xff] }
 0x827   :  { %v4185_v34 = vpop.f32.mrf.mxu0 }
 0x828   :  { %v5715_v41 = vpop.f32.mrf.mxu1  ;;  %v4196_v10 = vadd.f32 %v4185_v34, %v4078_v53  ;;  %v4970_v53 = vld [vmem:[%s6944_s12] sm:$0xff] }
 0x829   :  { %v5692_v36 = vpop.f32.mrf.mxu0 }
 0x82a   :  { %v4521_v47 = vpop.f32.mrf.mxu1  ;;  %v4307_v50 = vadd.f32 %v5692_v36, %v4195_v45 }
 0x82b   :  { %v4287_v37 = vpop.f32.mrf.mxu0 }
 0x82c   :  { %v4306_v55 = vadd.f32 %v4287_v37, %v4194_v49  ;;  %v5732_v58 = vpop.f32.mrf.mxu1  ;;  %v4974_v49 = vld [vmem:[%s6944_s12 + $0x20] sm:$0xff] }
 0x82d   :  { %v5695_v39 = vpop.f32.mrf.mxu0 }
 0x82e   :  { %v4309_v7 = vadd.f32 %v5695_v39, %v4197_v54  ;;  %v4735_v60 = vpop.f32.mrf.mxu1  ;;  %v4920_v39 = vpop.permute.xlu0 %4919 }
 0x82f   :  { %v4297_v40 = vpop.f32.mrf.mxu0 }
 0x830   :  { %v4308_v15 = vadd.f32 %v4297_v40, %v4196_v10  ;;  %v5735_v4 = vpop.f32.mrf.mxu1 }
 0x831   :  { %v5702_v43 = vpop.f32.mrf.mxu0 }
 0x832   :  { %v4419_v56 = vadd.f32 %v5702_v43, %v4307_v50  ;;  %v4745_v23 = vpop.f32.mrf.mxu1  ;;  %v4915_v43 = vpop.permute.xlu1 %4914  ;;  %v4973_v50 = vld [vmem:[%s6944_s12 + $0x18] sm:$0xff] }
 0x833   :  { %v4399_v46 = vpop.f32.mrf.mxu0 }
 0x834   :  { %v4418_v11 = vadd.f32 %v4399_v46, %v4306_v55  ;;  %v4531_v19 = vadd.f32 %v5712_v35, %v4419_v56 }
 0x835   :  { %v5705_v51 = vpop.f32.mrf.mxu0 }
 0x836   :  { %v4421_v13 = vadd.f32 %v5705_v51, %v4309_v7  ;;  %v4530_v62 = vadd.f32 %v4511_v38, %v4418_v11  ;;  %v4972_v51 = vld [vmem:[%s6944_s12 + $0x10] sm:$0xff] }
 0x837   :  { %v4409_v57 = vpop.f32.mrf.mxu0  ;;  %v5084_v11 = vld [vmem:[%s6946_s14 + $0x10] sm:$0xff] }
 0x838   :  { %v4420_v63 = vadd.f32 %v4409_v57, %v4308_v15  ;;  %v4533_v0 = vadd.f32 %v5715_v41, %v4421_v13  ;;  %v5082_v15 = vld [vmem:[%s6946_s14] sm:$0xff]  ;;  %v5211_v13 = vld [vmem:[#allocation12 + $0x8] sm:$0x3] }
 0x839   :  { %v5722_v14 = vpop.f32.mrf.mxu0 }
 0x83a   :  { %v4643_v1 = vadd.f32 %v5722_v14, %v4531_v19  ;;  %v4532_v5 = vadd.f32 %v4521_v47, %v4420_v63  ;;  %v4976_v47 = vld [vmem:[%s6944_s12 + $0x30] sm:$0x7]  ;;  %v5085_v14 = vld [vmem:[%s6946_s14 + $0x18] sm:$0xff]  ;;  %v5083_v19 = vld [vmem:[%s6946_s14 + $0x8] sm:$0xff] }
 0x83b   :  { %v4623_v16 = vpop.f32.mrf.mxu0  ;;  %5746 = vmatprep.subr.msk.mxu1 %vm179_vm1, %v4976_v47 }
 0x83c   :  { %v4642_v2 = vadd.f32 %v4623_v16, %v4530_v62  ;;  %v4755_v6 = vadd.f32 %v5732_v58, %v4643_v1  ;;  %5747 = vmatpush3.msk.msra.mxu1 %vm179_vm1, %v4976_v47  ;;  %v5210_v16 = vld [vmem:[#allocation12] sm:$0xff]  ;;  %vm4977_vm1 = vcmask 416768  }
 0x83d   :  { %v5725_v12 = vpop.f32.mrf.mxu0  ;;  %5748 = vmatprep.subr.mxu1 %v4975_v48 }
 0x83e   :  { %v4645_v8 = vadd.f32 %v5725_v12, %v4533_v0  ;;  %v4754_v20 = vadd.f32 %v4735_v60, %v4642_v2  ;;  %5749 = vmatpush3.msra.mxu1 %v4975_v48  ;;  %v5078_v2 = vld [vmem:[#allocation9] sm:$0xff] }
 0x83f   :  { %v4633_v3 = vpop.f32.mrf.mxu0  ;;  %5750 = vmatprep.subr.mxu1 %v4974_v49  ;;  %5774 = vmatprep.mubr.msk.f32.mxu0 %vm5106_vm6, %v5078_v2 }
 0x840   :  { %v4644_v21 = vadd.f32 %v4633_v3, %v4532_v5  ;;  %v4757_v25 = vadd.f32 %v5735_v4, %v4645_v8  ;;  %5751 = vmatpush3.msra.mxu1 %v4974_v49  ;;  %v5079_v8 = vld [vmem:[#allocation9 + $0x8] sm:$0xff] }
 0x841   :  { %v5742_v9 = vpop.f32.mrf.mxu0  ;;  %5752 = vmatprep.subr.mxu1 %v4973_v50 }
 0x842   :  { %v4867_v22 = vadd.f32 %v5742_v9, %v4755_v6  ;;  %v4756_v30 = vadd.f32 %v4745_v23, %v4644_v21  ;;  %5753 = vmatpush3.msra.mxu1 %v4973_v50  ;;  %v5080_v9 = vld [vmem:[#allocation9 + $0x10] sm:$0xff] }
 0x843   :  { %v4847_v24 = vpop.f32.mrf.mxu0  ;;  %5754 = vmatprep.subr.mxu1 %v4972_v51 }
 0x844   :  { %v4895_v26 = vmul.f32 %v4882_v52, %v4867_v22  ;;  %v4866_v27 = vadd.f32 %v4847_v24, %v4754_v20  ;;  %5755 = vmatpush3.msra.mxu1 %v4972_v51  ;;  %v4971_v52 = vld [vmem:[%s6944_s12 + $0x8] sm:$0xff]  ;;  %v5208_v20 = vld [vmem:[#allocation10] sm:$0xff] }
 0x845   :  { %v5745_v29 = vpop.f32.mrf.mxu0  ;;  %5756 = vmatprep.subr.mxu1 %v4971_v52 }
 0x846   :  { %v4923_v31 = vadd.f32 %v4910_v61, %v4895_v26  ;;  %v4894_v32 = vmul.f32 %v4877_v59, %v4866_v27  ;;  %v4869_v33 = vadd.f32 %v5745_v29, %v4757_v25  ;;  %5757 = vmatpush3.msra.mxu1 %v4971_v52 }
 0x847   :  { %v4857_v34 = vpop.f32.mrf.mxu0  ;;  %5758 = vmatprep.subr.mxu1 %v4970_v53 }
 0x848   :  { %v4927_v35 = vmax.f32 %v4923_v31, 0.0  ;;  %v4922_v36 = vadd.f32 %v4905_v18, %v4894_v32  ;;  %v4897_v37 = vmul.f32 %v4892_v17, %v4869_v33  ;;  %v4868_v38 = vadd.f32 %v4857_v34, %v4756_v30  ;;  %5759 = vmatpush3.msra.mxu1 %v4970_v53  ;;  %v5081_v17 = vld [vmem:[#allocation9 + $0x18] sm:$0xff] }
 0x84a   :  { %v4926_v40 = vmax.f32 %v4922_v36, 0.0  ;;  %v4925_v41 = vadd.f32 %v4920_v39, %v4897_v37  ;;  %v4896_v42 = vmul.f32 %v4887_v28, %v4868_v38  ;;  %4936 = vrot.lane.b32.xlu0 %v4927_v35, %s6003_s27  ;;  %v5209_v37 = vld [vmem:[#allocation10 + $0x8] sm:$0x3] }
 0x84c   :  { %v4929_v44 = vmax.f32 %v4925_v41, 0.0  ;;  %v4924_v45 = vadd.f32 %v4915_v43, %v4896_v42  ;;  %4934 = vrot.lane.b32.xlu1 %v4926_v40, %s6003_s27 }
 0x84e   :  { %v4928_v46 = vmax.f32 %v4924_v45, 0.0  ;;  %4940 = vrot.lane.b32.xlu0 %v4929_v44, %s6003_s27 }
 0x850   :  { %4938 = vrot.lane.b32.xlu1 %v4928_v46, %s6003_s27 }
 0x8bc   :  { %v4937_v54 = vpop.permute.xlu0 %4936 }
 0x8bd   :  { %v4947_v55 = vmax.f32 %v4927_v35, %v4937_v54 }
 0x8be   :  { %v4935_v56 = vpop.permute.xlu1 %4934 }
 0x8bf   :  { %v4946_v57 = vmax.f32 %v4926_v40, %v4935_v56  ;;  %4956 = vrot.lane.b32.xlu0 %v4947_v55, %s6018_s20 }
 0x8c0   :  { %v4941_v58 = vpop.permute.xlu0 %4940 }
 0x8c1   :  { %v4949_v59 = vmax.f32 %v4929_v44, %v4941_v58  ;;  %4954 = vrot.lane.b32.xlu1 %v4946_v57, %s6018_s20 }
 0x8c2   :  { %v4939_v10 = vpop.permute.xlu1 %4938 }
 0x8c3   :  { %v4948_v7 = vmax.f32 %v4928_v46, %v4939_v10  ;;  %4960 = vrot.lane.b32.xlu0 %v4949_v59, %s6018_s20 }
 0x8c5   :  { %4958 = vrot.lane.b32.xlu1 %v4948_v7, %s6018_s20 }
 0x8c7   :  { %5098 = vperm.xlu0 %5824, %v5084_v11  }
 0x8c9   :  { %5103 = vperm.xlu1 %5823, %v5085_v14  }
 0x8cb   :  { %5088 = vperm.xlu0 %5824, %v5082_v15  }
 0x8cd   :  { %5093 = vperm.xlu1 %5823, %v5083_v19  }
 0x8cf   :  { %5219 = vperm.xlu0 %5824, %v5211_v13  }
 0x8d1   :  { %5214 = vperm.xlu1 %5823, %v5210_v16  }
 0x931   :  { %v4957_v60 = vpop.permute.xlu0 %4956 }
 0x932   :  { %v4967_v63 = vmax.f32 %v4947_v55, %v4957_v60 }
 0x933   :  { %v4955_v61 = vpop.permute.xlu1 %4954 }
 0x934   :  { %v4966_v62 = vmax.f32 %v4946_v57, %v4955_v61 }
 0x935   :  { %v4961_v1 = vpop.permute.xlu0 %4960 }
 0x936   :  { %5760 = vmatprep.mubr.msk.f32.mxu1 %vm4977_vm1, %v4966_v62  ;;  %v4969_v0 = vmax.f32 %v4949_v59, %v4961_v1 }
 0x937   :  { %v4959_v12 = vpop.permute.xlu1 %4958  ;;  %5761 = vmatmul.mubr.msk.f32.vlgmr.msra.gmra.mxu1 %vm4977_vm1, %v4967_v63 }
 0x938   :  { %v4968_v18 = vmax.f32 %v4948_v7, %v4959_v12 }
 0x93a   :  { %5763 = vmatprep.mubr.msk.f32.mxu1 %vm4977_vm1, %v4968_v18 }
 0x93b   :  { %5764 = vmatmul.mubr.msk.f32.gmra.mxu1 %vm4977_vm1, %v4969_v0 }
 0x942   :  { %v5099_v23 = vpop.permute.xlu0 %5098 }
 0x944   :  { %v5104_v21 = vpop.permute.xlu1 %5103 }
 0x946   :  { %v5089_v32 = vpop.permute.xlu0 %5088 }
 0x948   :  { %v5094_v27 = vpop.permute.xlu1 %5093 }
 0x94a   :  { %v5220_v38 = vpop.permute.xlu0 %5219 }
 0x94c   :  { %v5215_v41 = vpop.permute.xlu1 %5214 }
 0x9f7   :  { %v5762_v3 = vpop.f32.mrf.mxu1 }
 0x9f9   :  { %v5059_v4 = vpop.f32.mrf.mxu1 }
 0x9fb   :  { %v5765_v5 = vpop.f32.mrf.mxu1 }
 0x9fc   :  { %5766 = vmatprep.subr.mxu0 %v5765_v5 }
 0x9fd   :  { %v5069_v6 = vpop.f32.mrf.mxu1  ;;  %5767 = vmatpush3.msra.mxu0 %v5765_v5 }
 0x9fe   :  { %5768 = vmatprep.subr.mxu0 %v5069_v6 }
 0x9ff   :  { %5769 = vmatpush3.msra.mxu0 %v5069_v6 }
 0xa00   :  { %5770 = vmatprep.subr.mxu0 %v5762_v3 }
 0xa01   :  { %5771 = vmatpush3.msra.mxu0 %v5762_v3 }
 0xa02   :  { %5772 = vmatprep.subr.mxu0 %v5059_v4 }
 0xa03   :  { %5773 = vmatpush3.msra.mxu0 %v5059_v4 }
 0xa04   :  { %5775 = vmatmul.mubr.msk.f32.vlgmr.msra.gmra.mxu0 %vm5106_vm6, %v5079_v8 }
 0xa05   :  { %5777 = vmatprep.mubr.msk.f32.mxu0 %vm5106_vm6, %v5080_v9 }
 0xa08   :  { %5778 = vmatmul.mubr.msk.f32.gmra.mxu0 %vm5106_vm6, %v5081_v17 }
 0xa09   :  { %5788 = vmatprep.mubr.msk.f32.mxu0 %vm5106_vm6, %v5208_v20 }
 0xac4   :  { %v5776_v22 = vpop.f32.mrf.mxu0 }
 0xac5   :  { %v5191_v29 = vadd.f32 %v5776_v22, %v5094_v27 }
 0xac6   :  { %v5185_v24 = vpop.f32.mrf.mxu0 }
 0xac7   :  { %v5186_v33 = vadd.f32 %v5185_v24, %v5089_v32  ;;  %v5205_v35 = vmax.f32 %v5191_v29, 0.0 }
 0xac8   :  { %v5779_v25 = vpop.f32.mrf.mxu0 }
 0xac9   :  { %v5201_v26 = vadd.f32 %v5779_v25, %v5104_v21  ;;  %v5204_v36 = vmax.f32 %v5186_v33, 0.0 }
 0xaca   :  { %v5195_v28 = vpop.f32.mrf.mxu0 }
 0xacb   :  { %v5207_v30 = vmax.f32 %v5201_v26, 0.0  ;;  %v5196_v31 = vadd.f32 %v5195_v28, %v5099_v23 }
 0xacd   :  { %v5206_v34 = vmax.f32 %v5196_v31, 0.0  ;;  %5780 = vmatprep.subr.mxu0 %v5207_v30 }
 0xace   :  { %5781 = vmatpush3.msra.mxu0 %v5207_v30 }
 0xacf   :  { %5782 = vmatprep.subr.mxu0 %v5206_v34 }
 0xad0   :  { %5783 = vmatpush3.msra.mxu0 %v5206_v34 }
 0xad1   :  { %5784 = vmatprep.subr.mxu0 %v5205_v35 }
 0xad2   :  { %5785 = vmatpush3.msra.mxu0 %v5205_v35 }
 0xad3   :  { %5786 = vmatprep.subr.mxu0 %v5204_v36 }
 0xad4   :  { %5787 = vmatpush3.msra.mxu0 %v5204_v36 }
 0xad5   :  { %5789 = vmatmul.mubr.msk.f32.vlgmr.msra.gmra.mxu0 %vm5106_vm6, %v5209_v37 }
 0xb95   :  { %v5790_v39 = vpop.f32.mrf.mxu0 }
 0xb96   :  { %v5300_v40 = vadd.f32 %v5790_v39, %v5220_v38 }
 0xb97   :  { %v5294_v42 = vpop.f32.mrf.mxu0 }
 0xb98   :  { %5306 = vst.msk [vmem:[%s6949_s17 + $0x8] sm:$0x3] %vm5305_vm7, %v5300_v40  ;;  %v5295_v43 = vadd.f32 %v5294_v42, %v5215_v41 }
 0xb9a   :  { %5304 = vst.msk [vmem:[%s6949_s17] sm:$0xff] %vm5303_vm8, %v5295_v43 }
 0xb9b   :  { %5311 = vsyncpa [#allocation3], 1 }
 0xb9c   :  { %5312 = vsyncpa [#allocation5], 1 }
 0xb9d   :  { %5313 = vsyncpa [#allocation8], 1 }
 0xb9e   :  { %5314 = vsyncpa [#allocation11], 1 }

</bundles_post_ra>
